<compile_context>
chip_gen: v5e
topology: v5e:2x2
jax: 0.10.0
libtpu: 0.0.40
codegen_flags: <defaults>
</compile_context>

<pallas_src>
import math
from functools import partial

import jax
import jax.numpy as jnp
from jax.experimental import pallas as pl
from jax.experimental.pallas import tpu as pltpu


def _round_up(x, m):
    return ((x + m - 1) // m) * m


# ---------------------------------------------------------------------------
# Kernel
# ---------------------------------------------------------------------------
def _generator_kernel(noise_ref, labels_ref,
                      w1a_ref, w1b_ref, b1_ref,
                      w2_ref, b2_ref,
                      w3_ref, b3_ref,
                      w4_ref, b4_ref,
                      w5_ref, b5_ref,
                      out_ref, *, act_dtype):
    """One batch tile of the full MLP chain.  Weights (bf16) are VMEM-resident
    across grid iterations; MXU accumulates in f32; the elementwise epilogue
    runs in `act_dtype` (bf16 on v6e/v7x, f32 recommended on v5e)."""

    def mm(x, w_ref):
        return jnp.dot(x, w_ref[...], preferred_element_type=jnp.float32)

    def bias_leaky(acc_f32, b_ref):
        # f32 bias add, single cast, then LeakyReLU(0.2) as max(h, 0.2*h):
        # 2 VALU ops instead of cmp+select+mul.
        h = (acc_f32 + b_ref[...]).astype(act_dtype)
        return jnp.maximum(h, 0.2 * h)

    # Layer 1: split matmul replaces concat(noise, labels) @ W1.
    h = bias_leaky(mm(noise_ref[...], w1a_ref) + mm(labels_ref[...], w1b_ref),
                   b1_ref)
    h = bias_leaky(mm(h, w2_ref), b2_ref)
    h = bias_leaky(mm(h, w3_ref), b3_ref)
    h = bias_leaky(mm(h, w4_ref), b4_ref)

    # Final layer: f32 bias add + tanh (EUP), lane-dense padded width.
    out_ref[...] = jnp.tanh(mm(h, w5_ref) + b5_ref[...])


# ---------------------------------------------------------------------------
# Parameter construction / preparation
# ---------------------------------------------------------------------------
def init_generator_params(key, img_size, n_classes):
    """PyTorch-style Linear init: U(-1/sqrt(fan_in), +1/sqrt(fan_in)), f32.
    Weights stored as [in_features, out_features]."""
    dims = [img_size + n_classes, 128, 256, 512, 1024, img_size]
    params = []
    for i in range(len(dims) - 1):
        fan_in, fan_out = dims[i], dims[i + 1]
        key, kw, kb = jax.random.split(key, 3)
        bound = 1.0 / math.sqrt(fan_in)
        w = jax.random.uniform(kw, (fan_in, fan_out), jnp.float32, -bound, bound)
        b = jax.random.uniform(kb, (1, fan_out), jnp.float32, -bound, bound)
        params.append((w, b))
    return params


def prepare_generator_params(params, img_size, n_classes):
    """Convert f32 [in,out] params into kernel-ready form:
    split W1 (noise/label halves), cast weights to bf16, pad the last layer
    to a 128-multiple (lane-dense) output width."""
    (w1, b1), (w2, b2), (w3, b3), (w4, b4), (w5, b5) = params

    w1a = w1[:img_size, :].astype(jnp.bfloat16)                       # noise part
    w1b = w1[img_size:img_size + n_classes, :].astype(jnp.bfloat16)   # label part

    out_pad = _round_up(img_size, 128)
    w5p = jnp.zeros((w5.shape[0], out_pad), jnp.bfloat16)
    w5p = w5p.at[:, :img_size].set(w5.astype(jnp.bfloat16))
    b5p = jnp.zeros((1, out_pad), jnp.float32).at[:, :img_size].set(b5)

    return (w1a, w1b, b1.astype(jnp.float32),
            w2.astype(jnp.bfloat16), b2.astype(jnp.float32),
            w3.astype(jnp.bfloat16), b3.astype(jnp.float32),
            w4.astype(jnp.bfloat16), b4.astype(jnp.float32),
            w5p, b5p)


# ---------------------------------------------------------------------------
# Forward wrapper
# ---------------------------------------------------------------------------
@partial(jax.jit,
         static_argnames=("img_size", "n_classes", "block_batch", "act_dtype"))
def generator_forward(noise, labels, prepared, *, img_size, n_classes,
                      block_batch=512, act_dtype=jnp.bfloat16):
    B = noise.shape[0]
    out_pad = _round_up(img_size, 128)

    # Batch tiling:
    #  * aim for >= 2 tiles so both v7x TensorCores get work,
    #  * derive TB from cdiv(B, n_tiles) so batch padding is minimized,
    #  * round rows to 16 (bf16 sublane packing), cap at block_batch.
    n_tiles = max(2, -(-B // block_batch))
    TB = _round_up(max(1, -(-B // n_tiles)), 16)
    TB = min(TB, _round_up(block_batch, 16))
    Bp = _round_up(B, TB)

    noise = noise.astype(jnp.bfloat16)
    labels = labels.astype(jnp.bfloat16)
    if Bp != B:
        noise = jnp.pad(noise, ((0, Bp - B), (0, 0)))
        labels = jnp.pad(labels, ((0, Bp - B), (0, 0)))

    grid = (Bp // TB,)

    def batch_spec(feat):
        return pl.BlockSpec((TB, feat), lambda i: (i, 0))

    def resident_spec(shape):
        # Constant block index => stays VMEM-resident across the grid;
        # single-buffered since it is never re-fetched.
        return pl.BlockSpec(shape, lambda i: (0, 0), pipeline_mode=pl.Buffered(1))

    (w1a, w1b, b1, w2, b2, w3, b3, w4, b4, w5p, b5p) = prepared

    in_specs = [
        batch_spec(img_size),                   # noise  (bf16, streamed)
        batch_spec(n_classes),                  # labels (bf16, streamed)
        resident_spec(w1a.shape), resident_spec(w1b.shape), resident_spec(b1.shape),
        resident_spec(w2.shape), resident_spec(b2.shape),
        resident_spec(w3.shape), resident_spec(b3.shape),
        resident_spec(w4.shape), resident_spec(b4.shape),
        resident_spec(w5p.shape), resident_spec(b5p.shape),
    ]

    out_padded = pl.pallas_call(
        partial(_generator_kernel, act_dtype=act_dtype),
        out_shape=jax.ShapeDtypeStruct((Bp, out_pad), jnp.float32),
        grid=grid,
        in_specs=in_specs,
        out_specs=pl.BlockSpec((TB, out_pad), lambda i: (i, 0)),
        compiler_params=pltpu.CompilerParams(
            dimension_semantics=("parallel",),
            # ~3.5 MiB resident bf16 weights + activation temps + 2x-buffered
            # I/O tiles stays well under 32 MiB even at TB=512, img_size=1024.
            vmem_limit_bytes=32 * 1024 * 1024,
        ),
    )(noise, labels, w1a, w1b, b1, w2, b2, w3, b3, w4, b4, w5p, b5p)

    # Trim batch padding and lane padding of the last layer.
    return out_padded[:B, :img_size]


# ---------------------------------------------------------------------------
# Pure-JAX reference (mirrors the kernel's bf16-operand / f32-accumulate math)
# ---------------------------------------------------------------------------
def generator_forward_ref(noise, labels, params, img_size,
                          act_dtype=jnp.bfloat16):
    (w1, b1), (w2, b2), (w3, b3), (w4, b4), (w5, b5) = params
    w1a = w1[:img_size, :].astype(jnp.bfloat16)
    w1b = w1[img_size:, :].astype(jnp.bfloat16)

    def mm(x, w):
        return jnp.dot(x, w.astype(jnp.bfloat16),
                       preferred_element_type=jnp.float32)

    def bias_leaky(acc, b):
        h = (acc + b).astype(act_dtype)
        return jnp.maximum(h, 0.2 * h)

    nb = noise.astype(jnp.bfloat16)
    lb = labels.astype(jnp.bfloat16)
    h = bias_leaky(mm(nb, w1a) + mm(lb, w1b), b1)
    h = bias_leaky(mm(h, w2), b2)
    h = bias_leaky(mm(h, w3), b3)
    h = bias_leaky(mm(h, w4), b4)
    return jnp.tanh(mm(h, w5) + b5)


# ---------------------------------------------------------------------------
if __name__ == "__main__":
    img_size = 32
    n_classes = 8
    batch = 8

    key = jax.random.PRNGKey(0)
    k_params, k_noise, k_labels = jax.random.split(key, 3)

    params = init_generator_params(k_params, img_size, n_classes)
    prepared = prepare_generator_params(params, img_size, n_classes)

    noise = jax.random.normal(k_noise, (batch, img_size), jnp.float32)
    label_ids = jax.random.randint(k_labels, (batch,), 0, n_classes)
    labels = jax.nn.one_hot(label_ids, n_classes, dtype=jnp.float32)

    out = generator_forward(noise, labels, prepared,
                            img_size=img_size, n_classes=n_classes)
    out = jax.block_until_ready(out)

    ref = generator_forward_ref(noise, labels, params, img_size)
    assert out.shape == (batch, img_size), out.shape
    assert jnp.allclose(out, ref, atol=1e-2, rtol=1e-2), "mismatch vs reference"

    print("KERNEL_OK")
</pallas_src>

<mosaic_0001>
module attributes {stable_mosaic.version = 11 : i64} {
  func.func @_generator_kernel(%arg0: i32, %arg1: memref<16x32xbf16, #tpu.memory_space<vmem>>, %arg2: memref<16x8xbf16, #tpu.memory_space<vmem>>, %arg3: memref<32x128xbf16, #tpu.memory_space<vmem>>, %arg4: memref<8x128xbf16, #tpu.memory_space<vmem>>, %arg5: memref<1x128xf32, #tpu.memory_space<vmem>>, %arg6: memref<128x256xbf16, #tpu.memory_space<vmem>>, %arg7: memref<1x256xf32, #tpu.memory_space<vmem>>, %arg8: memref<256x512xbf16, #tpu.memory_space<vmem>>, %arg9: memref<1x512xf32, #tpu.memory_space<vmem>>, %arg10: memref<512x1024xbf16, #tpu.memory_space<vmem>>, %arg11: memref<1x1024xf32, #tpu.memory_space<vmem>>, %arg12: memref<1024x128xbf16, #tpu.memory_space<vmem>>, %arg13: memref<1x128xf32, #tpu.memory_space<vmem>>, %arg14: memref<16x128xf32, #tpu.memory_space<vmem>>) attributes {dimension_semantics = [#tpu.dimension_semantics<parallel>], iteration_bounds = array<i64: 1>, scalar_prefetch = 0 : i64, scratch_operands = 0 : i64, tpu.core_type = #tpu.core_type<tc>, window_params = [{transform_indices = @transform_0, window_bounds = array<i64: 16, 32>}, {transform_indices = @transform_1, window_bounds = array<i64: 16, 8>}, {pipeline_mode = #tpu.pipeline_mode<synchronous>, transform_indices = @transform_2, window_bounds = array<i64: 32, 128>}, {pipeline_mode = #tpu.pipeline_mode<synchronous>, transform_indices = @transform_3, window_bounds = array<i64: 8, 128>}, {pipeline_mode = #tpu.pipeline_mode<synchronous>, transform_indices = @transform_4, window_bounds = array<i64: 1, 128>}, {pipeline_mode = #tpu.pipeline_mode<synchronous>, transform_indices = @transform_5, window_bounds = array<i64: 128, 256>}, {pipeline_mode = #tpu.pipeline_mode<synchronous>, transform_indices = @transform_6, window_bounds = array<i64: 1, 256>}, {pipeline_mode = #tpu.pipeline_mode<synchronous>, transform_indices = @transform_7, window_bounds = array<i64: 256, 512>}, {pipeline_mode = #tpu.pipeline_mode<synchronous>, transform_indices = @transform_8, window_bounds = array<i64: 1, 512>}, {pipeline_mode = #tpu.pipeline_mode<synchronous>, transform_indices = @transform_9, window_bounds = array<i64: 512, 1024>}, {pipeline_mode = #tpu.pipeline_mode<synchronous>, transform_indices = @transform_10, window_bounds = array<i64: 1, 1024>}, {pipeline_mode = #tpu.pipeline_mode<synchronous>, transform_indices = @transform_11, window_bounds = array<i64: 1024, 128>}, {pipeline_mode = #tpu.pipeline_mode<synchronous>, transform_indices = @transform_12, window_bounds = array<i64: 1, 128>}, {transform_indices = @transform_13, window_bounds = array<i64: 16, 128>}]} {
    %c0 = arith.constant 0 : index
    %c0_0 = arith.constant 0 : index
    %0 = vector.load %arg1[%c0, %c0_0] : memref<16x32xbf16, #tpu.memory_space<vmem>>, vector<16x32xbf16>
    %c0_1 = arith.constant 0 : index
    %c0_2 = arith.constant 0 : index
    %1 = vector.load %arg3[%c0_1, %c0_2] : memref<32x128xbf16, #tpu.memory_space<vmem>>, vector<32x128xbf16>
    %cst = arith.constant dense<0.000000e+00> : vector<16x128xf32>
    %2 = tpu.matmul %0, %1, %cst {dimension_numbers = #tpu.dot_dimension_numbers<[1], [0], [0], [1], [0, 0, 1, 1], [], []>} : vector<16x32xbf16>, vector<32x128xbf16>, vector<16x128xf32> -> vector<16x128xf32>
    %c0_3 = arith.constant 0 : index
    %c0_4 = arith.constant 0 : index
    %3 = vector.load %arg2[%c0_3, %c0_4] : memref<16x8xbf16, #tpu.memory_space<vmem>>, vector<16x8xbf16>
    %c0_5 = arith.constant 0 : index
    %c0_6 = arith.constant 0 : index
    %4 = vector.load %arg4[%c0_5, %c0_6] : memref<8x128xbf16, #tpu.memory_space<vmem>>, vector<8x128xbf16>
    %cst_7 = arith.constant dense<0.000000e+00> : vector<16x128xf32>
    %5 = tpu.matmul %3, %4, %cst_7 {dimension_numbers = #tpu.dot_dimension_numbers<[1], [0], [0], [1], [0, 0, 1, 1], [], []>} : vector<16x8xbf16>, vector<8x128xbf16>, vector<16x128xf32> -> vector<16x128xf32>
    %6 = arith.addf %2, %5 : vector<16x128xf32>
    %c0_8 = arith.constant 0 : index
    %c0_9 = arith.constant 0 : index
    %7 = vector.load %arg5[%c0_8, %c0_9] : memref<1x128xf32, #tpu.memory_space<vmem>>, vector<1x128xf32>
    %8 = vector.broadcast %7 : vector<1x128xf32> to vector<16x128xf32>
    %9 = arith.addf %6, %8 : vector<16x128xf32>
    %10 = arith.truncf %9 : vector<16x128xf32> to vector<16x128xbf16>
    %cst_10 = arith.constant 2.001950e-01 : bf16
    %11 = vector.broadcast %cst_10 : bf16 to vector<16x128xbf16>
    %12 = arith.mulf %11, %10 : vector<16x128xbf16>
    %13 = arith.maximumf %10, %12 : vector<16x128xbf16>
    %c0_11 = arith.constant 0 : index
    %c0_12 = arith.constant 0 : index
    %14 = vector.load %arg6[%c0_11, %c0_12] : memref<128x256xbf16, #tpu.memory_space<vmem>>, vector<128x256xbf16>
    %cst_13 = arith.constant dense<0.000000e+00> : vector<16x256xf32>
    %15 = tpu.matmul %13, %14, %cst_13 {dimension_numbers = #tpu.dot_dimension_numbers<[1], [0], [0], [1], [0, 0, 1, 1], [], []>} : vector<16x128xbf16>, vector<128x256xbf16>, vector<16x256xf32> -> vector<16x256xf32>
    %c0_14 = arith.constant 0 : index
    %c0_15 = arith.constant 0 : index
    %16 = vector.load %arg7[%c0_14, %c0_15] : memref<1x256xf32, #tpu.memory_space<vmem>>, vector<1x256xf32>
    %17 = vector.broadcast %16 : vector<1x256xf32> to vector<16x256xf32>
    %18 = arith.addf %15, %17 : vector<16x256xf32>
    %19 = arith.truncf %18 : vector<16x256xf32> to vector<16x256xbf16>
    %cst_16 = arith.constant 2.001950e-01 : bf16
    %20 = vector.broadcast %cst_16 : bf16 to vector<16x256xbf16>
    %21 = arith.mulf %20, %19 : vector<16x256xbf16>
    %22 = arith.maximumf %19, %21 : vector<16x256xbf16>
    %c0_17 = arith.constant 0 : index
    %c0_18 = arith.constant 0 : index
    %23 = vector.load %arg8[%c0_17, %c0_18] : memref<256x512xbf16, #tpu.memory_space<vmem>>, vector<256x512xbf16>
    %cst_19 = arith.constant dense<0.000000e+00> : vector<16x512xf32>
    %24 = tpu.matmul %22, %23, %cst_19 {dimension_numbers = #tpu.dot_dimension_numbers<[1], [0], [0], [1], [0, 0, 1, 1], [], []>} : vector<16x256xbf16>, vector<256x512xbf16>, vector<16x512xf32> -> vector<16x512xf32>
    %c0_20 = arith.constant 0 : index
    %c0_21 = arith.constant 0 : index
    %25 = vector.load %arg9[%c0_20, %c0_21] : memref<1x512xf32, #tpu.memory_space<vmem>>, vector<1x512xf32>
    %26 = vector.broadcast %25 : vector<1x512xf32> to vector<16x512xf32>
    %27 = arith.addf %24, %26 : vector<16x512xf32>
    %28 = arith.truncf %27 : vector<16x512xf32> to vector<16x512xbf16>
    %cst_22 = arith.constant 2.001950e-01 : bf16
    %29 = vector.broadcast %cst_22 : bf16 to vector<16x512xbf16>
    %30 = arith.mulf %29, %28 : vector<16x512xbf16>
    %31 = arith.maximumf %28, %30 : vector<16x512xbf16>
    %c0_23 = arith.constant 0 : index
    %c0_24 = arith.constant 0 : index
    %32 = vector.load %arg10[%c0_23, %c0_24] : memref<512x1024xbf16, #tpu.memory_space<vmem>>, vector<512x1024xbf16>
    %cst_25 = arith.constant dense<0.000000e+00> : vector<16x1024xf32>
    %33 = tpu.matmul %31, %32, %cst_25 {dimension_numbers = #tpu.dot_dimension_numbers<[1], [0], [0], [1], [0, 0, 1, 1], [], []>} : vector<16x512xbf16>, vector<512x1024xbf16>, vector<16x1024xf32> -> vector<16x1024xf32>
    %c0_26 = arith.constant 0 : index
    %c0_27 = arith.constant 0 : index
    %34 = vector.load %arg11[%c0_26, %c0_27] : memref<1x1024xf32, #tpu.memory_space<vmem>>, vector<1x1024xf32>
    %35 = vector.broadcast %34 : vector<1x1024xf32> to vector<16x1024xf32>
    %36 = arith.addf %33, %35 : vector<16x1024xf32>
    %37 = arith.truncf %36 : vector<16x1024xf32> to vector<16x1024xbf16>
    %cst_28 = arith.constant 2.001950e-01 : bf16
    %38 = vector.broadcast %cst_28 : bf16 to vector<16x1024xbf16>
    %39 = arith.mulf %38, %37 : vector<16x1024xbf16>
    %40 = arith.maximumf %37, %39 : vector<16x1024xbf16>
    %c0_29 = arith.constant 0 : index
    %c0_30 = arith.constant 0 : index
    %41 = vector.load %arg12[%c0_29, %c0_30] : memref<1024x128xbf16, #tpu.memory_space<vmem>>, vector<1024x128xbf16>
    %cst_31 = arith.constant dense<0.000000e+00> : vector<16x128xf32>
    %42 = tpu.matmul %40, %41, %cst_31 {dimension_numbers = #tpu.dot_dimension_numbers<[1], [0], [0], [1], [0, 0, 1, 1], [], []>} : vector<16x1024xbf16>, vector<1024x128xbf16>, vector<16x128xf32> -> vector<16x128xf32>
    %c0_32 = arith.constant 0 : index
    %c0_33 = arith.constant 0 : index
    %43 = vector.load %arg13[%c0_32, %c0_33] : memref<1x128xf32, #tpu.memory_space<vmem>>, vector<1x128xf32>
    %44 = vector.broadcast %43 : vector<1x128xf32> to vector<16x128xf32>
    %45 = arith.addf %42, %44 : vector<16x128xf32>
    %46 = math.tanh %45 : vector<16x128xf32>
    %c0_34 = arith.constant 0 : index
    %c0_35 = arith.constant 0 : index
    %47 = vector.load %arg14[%c0_34, %c0_35] : memref<16x128xf32, #tpu.memory_space<vmem>>, vector<16x128xf32>
    tpu.vector_store %arg14[%c0_34, %c0_35], %46 {strides = array<i32>} : memref<16x128xf32, #tpu.memory_space<vmem>>, vector<16x128xf32>,
    return
  }
  func.func @transform_0(%arg0: i32) -> (i32, i32) {
    %c0_i32 = arith.constant 0 : i32
    %c0_i32_0 = arith.constant 0 : i32
    return %arg0, %c0_i32 : i32, i32
  }
  func.func @transform_1(%arg0: i32) -> (i32, i32) {
    %c0_i32 = arith.constant 0 : i32
    %c0_i32_0 = arith.constant 0 : i32
    return %arg0, %c0_i32 : i32, i32
  }
  func.func @transform_2(%arg0: i32) -> (i32, i32) {
    %c0_i32 = arith.constant 0 : i32
    %c0_i32_0 = arith.constant 0 : i32
    %c0_i32_1 = arith.constant 0 : i32
    return %c0_i32, %c0_i32_0 : i32, i32
  }
  func.func @transform_3(%arg0: i32) -> (i32, i32) {
    %c0_i32 = arith.constant 0 : i32
    %c0_i32_0 = arith.constant 0 : i32
    %c0_i32_1 = arith.constant 0 : i32
    return %c0_i32, %c0_i32_0 : i32, i32
  }
  func.func @transform_4(%arg0: i32) -> (i32, i32) {
    %c0_i32 = arith.constant 0 : i32
    %c0_i32_0 = arith.constant 0 : i32
    %c0_i32_1 = arith.constant 0 : i32
    return %c0_i32, %c0_i32_0 : i32, i32
  }
  func.func @transform_5(%arg0: i32) -> (i32, i32) {
    %c0_i32 = arith.constant 0 : i32
    %c0_i32_0 = arith.constant 0 : i32
    %c0_i32_1 = arith.constant 0 : i32
    return %c0_i32, %c0_i32_0 : i32, i32
  }
  func.func @transform_6(%arg0: i32) -> (i32, i32) {
    %c0_i32 = arith.constant 0 : i32
    %c0_i32_0 = arith.constant 0 : i32
    %c0_i32_1 = arith.constant 0 : i32
    return %c0_i32, %c0_i32_0 : i32, i32
  }
  func.func @transform_7(%arg0: i32) -> (i32, i32) {
    %c0_i32 = arith.constant 0 : i32
    %c0_i32_0 = arith.constant 0 : i32
    %c0_i32_1 = arith.constant 0 : i32
    return %c0_i32, %c0_i32_0 : i32, i32
  }
  func.func @transform_8(%arg0: i32) -> (i32, i32) {
    %c0_i32 = arith.constant 0 : i32
    %c0_i32_0 = arith.constant 0 : i32
    %c0_i32_1 = arith.constant 0 : i32
    return %c0_i32, %c0_i32_0 : i32, i32
  }
  func.func @transform_9(%arg0: i32) -> (i32, i32) {
    %c0_i32 = arith.constant 0 : i32
    %c0_i32_0 = arith.constant 0 : i32
    %c0_i32_1 = arith.constant 0 : i32
    return %c0_i32, %c0_i32_0 : i32, i32
  }
  func.func @transform_10(%arg0: i32) -> (i32, i32) {
    %c0_i32 = arith.constant 0 : i32
    %c0_i32_0 = arith.constant 0 : i32
    %c0_i32_1 = arith.constant 0 : i32
    return %c0_i32, %c0_i32_0 : i32, i32
  }
  func.func @transform_11(%arg0: i32) -> (i32, i32) {
    %c0_i32 = arith.constant 0 : i32
    %c0_i32_0 = arith.constant 0 : i32
    %c0_i32_1 = arith.constant 0 : i32
    return %c0_i32, %c0_i32_0 : i32, i32
  }
  func.func @transform_12(%arg0: i32) -> (i32, i32) {
    %c0_i32 = arith.constant 0 : i32
    %c0_i32_0 = arith.constant 0 : i32
    %c0_i32_1 = arith.constant 0 : i32
    return %c0_i32, %c0_i32_0 : i32, i32
  }
  func.func @transform_13(%arg0: i32) -> (i32, i32) {
    %c0_i32 = arith.constant 0 : i32
    %c0_i32_0 = arith.constant 0 : i32
    return %arg0, %c0_i32 : i32, i32
  }
}

</mosaic_0001>

<bundles_post_ra>
// kernel: generator_forward.1
= control target key start
LH: loop header
LB: loop body
LE: loop exit
PB: predicated region body
PF: predicated region fallthrough
CT: control target
= control target key end

     0   :  { %18 = vsyncpa [#allocation3], 0  ;;  %s6031_s0 = inlined_call_operand.vmem [shape: bf16[16,32], index: 0, kind: input, shape index: {}]   ;;  %s6032_s1 = inlined_call_operand.vmem [shape: bf16[16,8], index: 1, kind: input, shape index: {}]   ;;  %s6033_s2 = inlined_call_operand.vmem [shape: bf16[32,128], index: 2, kind: input, shape index: {}]   ;;  %s6034_s3 = inlined_call_operand.vmem [shape: bf16[8,128], index: 3, kind: input, shape index: {}]   ;;  %s6035_s4 = inlined_call_operand.vmem [shape: f32[1,128], index: 4, kind: input, shape index: {}]   ;;  %s6036_s5 = inlined_call_operand.hbm [shape: bf16[128,256], index: 5, kind: input, shape index: {}]   ;;  %s6037_s6 = inlined_call_operand.vmem [shape: f32[1,256], index: 6, kind: input, shape index: {}]   ;;  %s6038_s7 = inlined_call_operand.hbm [shape: bf16[256,512], index: 7, kind: input, shape index: {}]   ;;  %s6039_s8 = inlined_call_operand.vmem [shape: f32[1,512], index: 8, kind: input, shape index: {}]   ;;  %s6040_s9 = inlined_call_operand.hbm [shape: bf16[512,1024], index: 9, kind: input, shape index: {}]   ;;  %s6041_s10 = inlined_call_operand.vmem [shape: f32[1,1024], index: 10, kind: input, shape index: {}]   ;;  %s6042_s11 = inlined_call_operand.hbm [shape: bf16[1024,128], index: 11, kind: input, shape index: {}]   ;;  %s6043_s12 = inlined_call_operand.vmem [shape: f32[1,128], index: 12, kind: input, shape index: {}]   ;;  %s6044_s13 = inlined_call_operand.vmem [shape: f32[16,128], index: 13, kind: output, shape index: {}]  }
   0x1   :  { %19 = vsyncpa [#allocation5], 0  ;;  %s50_s27 = sshll.u32 %s6038_s7, 4  ;;  %s51_s27 = int_to_ptr.hbm [resolvable:$true] %s50_s27 }
   0x2   :  { %20 = vsyncpa [#allocation8], 0  ;;  %s5771_s28 = smov [#allocation4]   ;;  %s35_s15 = sshll.u32 %s6036_s5, 4  ;;  %s36_s15 = int_to_ptr.hbm [resolvable:$true] %s35_s15 }
   0x3   :  { %s52_s29 = sshll.u32 %s5771_s28, 4  ;;  %s5772_s16 = smov 256   ;;  %s53_s29 = int_to_ptr.vmem [resolvable:$true] %s52_s29 }
   0x4   :  { %s5773_s17 = smov 16   ;;  %s5774_s18 = smov [#allocation2]  }
   0x5   :  { %58 = dma.hbm_to_vmem [thread:$0]  %s51_s27, 8192, %s53_s29, [#allocation5], %s5772_s16, %s5772_s16, %s5773_s17  }
   0x6   :  { %s37_s19 = sshll.u32 %s5774_s18, 4  ;;  %s5775_s20 = smov 128   ;;  %s38_s19 = int_to_ptr.vmem [resolvable:$true] %s37_s19 }
   0x7   :  { %s5776_s21 = smov 8   ;;  %s65_s23 = sshll.u32 %s6040_s9, 4  ;;  %s66_s23 = int_to_ptr.hbm [resolvable:$true] %s65_s23 }
   0x8   :  { %43 = dma.hbm_to_vmem [thread:$0]  %s36_s15, 2048, %s38_s19, [#allocation3], %s5775_s20, %s5775_s20, %s5776_s21  }
   0x9   :  { %s5777_s24 = smov [#allocation6]   ;;  %s80_s28 = sshll.u32 %s6042_s11, 4  ;;  %s81_s28 = int_to_ptr.hbm [resolvable:$true] %s80_s28 }
   0xa   :  { %s67_s25 = sshll.u32 %s5777_s24, 4  ;;  %s5778_s27 = smov 512   ;;  %s68_s25 = int_to_ptr.vmem [resolvable:$true] %s67_s25 }
   0xb   :  { %s5779_s29 = smov 32   ;;  %s5780_s30 = smov [#allocation7]  }
   0xc   :  { %73 = dma.hbm_to_vmem [thread:$0]  %s66_s23, 32768, %s68_s25, [#allocation5], %s5778_s27, %s5778_s27, %s5779_s29  }
   0xd   :  { %s82_s14 = sshll.u32 %s5780_s30, 4  ;;  %s5781_s15 = smov 64   ;;  %s83_s14 = int_to_ptr.vmem [resolvable:$true] %s82_s14 }
   0xe   :  { %s5782_s16 = smov 4  }
   0xf   :  { %88 = dma.hbm_to_vmem [thread:$0]  %s81_s28, 8192, %s83_s14, [#allocation8], %s5781_s15, %s5781_s15, %s5782_s16  }
  0x10   :  { %5765 = dma.done.wait [#allocation3], 2048  }
  0x11   :  { %5766 = vsyncadd [#allocation3], 4294965248 }
  0x12   :  { %5767 = dma.done.wait [#allocation5], 40960  }
  0x13   :  { %5768 = vsyncadd [#allocation5], 4294926336 }
  0x14   :  { %5769 = dma.done.wait [#allocation8], 8192  }
  0x15   :  { %5770 = vsyncadd [#allocation8], 4294959104  ;;  %vm126_vm0 = vcmask 1043456   ;;  %v116_v0 = vld [vmem:[%s6034_s3] sm:$0xf]  ;;  %v5249_v1 = vld [vmem:[%s6033_s2 + $0x8] sm:$0xff] }
  0x16   :  { %v128_v2 = vsel %vm126_vm0, %v116_v0, 0  ;;  %v5250_v3 = vld [vmem:[%s6032_s1] sm:$0xff]  ;;  %vm122_vm1 = vcmask 64512   ;;  %v3705_v5 = vld [vmem:[#allocation2 + $0x70] sm:$0xf]  ;;  %171 = vmatpush.bf16.msra.mxu1 %v5249_v1  ;;  %vm161_vm2 = vcmask 261120  }
  0x17   :  { %v5248_v4 = vld [vmem:[%s6033_s2] sm:$0xff]  ;;  %137 = vmatpush.bf16.msra.mxu0 %v128_v2  ;;  %v5266_v6 = vld [vmem:[#allocation2 + $0x74] sm:$0xf0]  ;;  %v5265_v7 = vld [vmem:[#allocation2 + $0x74] sm:$0xf] }
  0x18   :  { %v3707_v8 = vld [vmem:[#allocation2 + $0x78] sm:$0xf0]  ;;  %v3706_v9 = vor.u32 %v5266_v6, %v3705_v5  ;;  %v5247_v11 = vld [vmem:[%s6031_s0] sm:$0xff]  ;;  %v5264_v13 = vld [vmem:[#allocation2 + $0x64] sm:$0xf0] }
  0x19   :  { %v3710_v10 = vor.u32 %v5265_v7, %v3707_v8  ;;  %v3697_v12 = vld [vmem:[#allocation2 + $0x60] sm:$0xf]  ;;  %v5263_v14 = vld [vmem:[#allocation2 + $0x64] sm:$0xf]  ;;  %v3699_v16 = vld [vmem:[#allocation2 + $0x68] sm:$0xf0] }
  0x1a   :  { %3633 = vmatmul.msk.bf16.vlgmr.msra.gmra.mxu0 %vm122_vm1, %v5250_v3  ;;  %300 = vmatpush.bf16.msra.mxu2 %v3706_v9  ;;  %v3698_v15 = vor.u32 %v5264_v13, %v3697_v12  ;;  %v3702_v17 = vor.u32 %v5263_v14, %v3699_v16  ;;  %v3689_v18 = vld [vmem:[#allocation2 + $0x50] sm:$0xf]  ;;  %v5262_v19 = vld [vmem:[#allocation2 + $0x54] sm:$0xf0]  ;;  %v5261_v20 = vld [vmem:[#allocation2 + $0x54] sm:$0xf] }
  0x1b   :  { %172 = vmatpush.bf16.msra.mxu1 %v5248_v4  ;;  %314 = vmatpush.bf16.msra.mxu3 %v3710_v10  ;;  %v3690_v21 = vor.u32 %v5262_v19, %v3689_v18  ;;  %v3691_v22 = vld [vmem:[#allocation2 + $0x58] sm:$0xf0]  ;;  %v3681_v24 = vld [vmem:[#allocation2 + $0x40] sm:$0xf]  ;;  %v5260_v25 = vld [vmem:[#allocation2 + $0x44] sm:$0xf0] }
  0x1c   :  { %v3694_v23 = vor.u32 %v5261_v20, %v3691_v22  ;;  %v3682_v26 = vor.u32 %v5260_v25, %v3681_v24  ;;  %v5259_v27 = vld [vmem:[#allocation2 + $0x44] sm:$0xf]  ;;  %v3683_v28 = vld [vmem:[#allocation2 + $0x48] sm:$0xf0]  ;;  %v3673_v30 = vld [vmem:[#allocation2 + $0x30] sm:$0xf] }
  0x1d   :  { %v3686_v29 = vor.u32 %v5259_v27, %v3683_v28  ;;  %v5258_v31 = vld [vmem:[#allocation2 + $0x34] sm:$0xf0]  ;;  %v5257_v32 = vld [vmem:[#allocation2 + $0x34] sm:$0xf]  ;;  %v3675_v34 = vld [vmem:[#allocation2 + $0x38] sm:$0xf0] }
  0x1e   :  { %3646 = vmatmul.msk.bf16.vlgmr.msra.gmra.mxu1 %vm161_vm2, %v5247_v11  ;;  %301 = vmatpush.bf16.msra.mxu2 %v3698_v15  ;;  %v3674_v33 = vor.u32 %v5258_v31, %v3673_v30  ;;  %v3678_v35 = vor.u32 %v5257_v32, %v3675_v34  ;;  %v3665_v36 = vld [vmem:[#allocation2 + $0x20] sm:$0xf]  ;;  %v5256_v37 = vld [vmem:[#allocation2 + $0x24] sm:$0xf0]  ;;  %v5255_v38 = vld [vmem:[#allocation2 + $0x24] sm:$0xf] }
  0x1f   :  { %315 = vmatpush.bf16.msra.mxu3 %v3702_v17  ;;  %v3666_v39 = vor.u32 %v5256_v37, %v3665_v36  ;;  %v3667_v40 = vld [vmem:[#allocation2 + $0x28] sm:$0xf0]  ;;  %v3657_v42 = vld [vmem:[#allocation2 + $0x10] sm:$0xf]  ;;  %v5254_v43 = vld [vmem:[#allocation2 + $0x14] sm:$0xf0] }
  0x20   :  { %v3670_v41 = vor.u32 %v5255_v38, %v3667_v40  ;;  %v5253_v44 = vld [vmem:[#allocation2 + $0x14] sm:$0xf]  ;;  %v3658_v45 = vor.u32 %v5254_v43, %v3657_v42  ;;  %v3659_v46 = vld [vmem:[#allocation2 + $0x18] sm:$0xf0]  ;;  %v3649_v48 = vld [vmem:[#allocation2] sm:$0xf] }
  0x21   :  { %v3662_v47 = vor.u32 %v5253_v44, %v3659_v46  ;;  %v5252_v49 = vld [vmem:[#allocation2 + $0x4] sm:$0xf0]  ;;  %v5251_v50 = vld [vmem:[#allocation2 + $0x4] sm:$0xf]  ;;  %v3651_v52 = vld [vmem:[#allocation2 + $0x8] sm:$0xf0] }
  0x22   :  { %302 = vmatpush.bf16.msra.mxu2 %v3690_v21  ;;  %v3650_v51 = vor.u32 %v5252_v49, %v3649_v48  ;;  %v3654_v53 = vor.u32 %v5251_v50, %v3651_v52  ;;  %v3825_v54 = vld [vmem:[#allocation4 + $0xe0] sm:$0xf]  ;;  %v5297_v55 = vld [vmem:[#allocation4 + $0xec] sm:$0xf0]  ;;  %v5295_v59 = vld [vmem:[#allocation4 + $0xe4] sm:$0xf] }
  0x23   :  { %316 = vmatpush.bf16.msra.mxu3 %v3694_v23  ;;  %v3953_v56 = vld [vmem:[#allocation4 + $0x1e0] sm:$0xf]  ;;  %v3826_v57 = vor.u32 %v5297_v55, %v3825_v54  ;;  %v5329_v58 = vld [vmem:[#allocation4 + $0x1ec] sm:$0xf0]  ;;  %v3827_v60 = vld [vmem:[#allocation4 + $0xf0] sm:$0xf0] }
  0x24   :  { %v3954_v61 = vor.u32 %v5329_v58, %v3953_v56  ;;  %v3830_v62 = vor.u32 %v5295_v59, %v3827_v60  ;;  %v5327_v63 = vld [vmem:[#allocation4 + $0x1e4] sm:$0xf]  ;;  %v3955_v0 = vld [vmem:[#allocation4 + $0x1f0] sm:$0xf0]  ;;  %v3809_v1 = vld [vmem:[#allocation4 + $0xc0] sm:$0xf] }
  0x25   :  { %744 = vmatpush.bf16.msrb.mxu0 %v3826_v57  ;;  %v3958_v2 = vor.u32 %v5327_v63, %v3955_v0  ;;  %v5293_v3 = vld [vmem:[#allocation4 + $0xcc] sm:$0xf0]  ;;  %v3937_v4 = vld [vmem:[#allocation4 + $0x1c0] sm:$0xf]  ;;  %v5291_v8 = vld [vmem:[#allocation4 + $0xc4] sm:$0xf] }
  0x26   :  { %303 = vmatpush.bf16.msra.mxu2 %v3682_v26  ;;  %v5325_v5 = vld [vmem:[#allocation4 + $0x1cc] sm:$0xf0]  ;;  %758 = vmatpush.bf16.msrb.mxu1 %v3954_v61  ;;  %v3810_v6 = vor.u32 %v5293_v3, %v3809_v1  ;;  %v3811_v9 = vld [vmem:[#allocation4 + $0xd0] sm:$0xf0]  ;;  %v5323_v10 = vld [vmem:[#allocation4 + $0x1c4] sm:$0xf] }
  0x27   :  { %317 = vmatpush.bf16.msra.mxu3 %v3686_v29  ;;  %v3938_v7 = vor.u32 %v5325_v5, %v3937_v4  ;;  %v3814_v11 = vor.u32 %v5291_v8, %v3811_v9  ;;  %v3939_v12 = vld [vmem:[#allocation4 + $0x1d0] sm:$0xf0]  ;;  %v3793_v13 = vld [vmem:[#allocation4 + $0xa0] sm:$0xf]  ;;  %v5289_v14 = vld [vmem:[#allocation4 + $0xac] sm:$0xf0] }
  0x28   :  { %v5883_v15 = vld [vmem:[%s6035_s4] ss:$0 sm:$0xff]  ;;  %v3942_v16 = vor.u32 %v5323_v10, %v3939_v12  ;;  %v5321_v18 = vld [vmem:[#allocation4 + $0x1ac] sm:$0xf0]  ;;  %v5287_v19 = vld [vmem:[#allocation4 + $0xa4] sm:$0xf]  ;;  %v3794_v21 = vor.u32 %v5289_v14, %v3793_v13 }
  0x29   :  { %v3921_v17 = vld [vmem:[#allocation4 + $0x1a0] sm:$0xf]  ;;  %745 = vmatpush.bf16.msrb.mxu0 %v3810_v6  ;;  %v3795_v22 = vld [vmem:[#allocation4 + $0xb0] sm:$0xf0]  ;;  %v5319_v23 = vld [vmem:[#allocation4 + $0x1a4] sm:$0xf] }
  0x2a   :  { %304 = vmatpush.bf16.msra.mxu2 %v3674_v33  ;;  %v3923_v24 = vld [vmem:[#allocation4 + $0x1b0] sm:$0xf0]  ;;  %759 = vmatpush.bf16.msrb.mxu1 %v3938_v7  ;;  %v3922_v25 = vor.u32 %v5321_v18, %v3921_v17  ;;  %v3798_v26 = vor.u32 %v5287_v19, %v3795_v22  ;;  %v3777_v27 = vld [vmem:[#allocation4 + $0x80] sm:$0xf]  ;;  %v5285_v28 = vld [vmem:[#allocation4 + $0x8c] sm:$0xf0] }
  0x2b   :  { %318 = vmatpush.bf16.msra.mxu3 %v3678_v35  ;;  %v3905_v29 = vld [vmem:[#allocation4 + $0x180] sm:$0xf]  ;;  %v3926_v31 = vor.u32 %v5319_v23, %v3923_v24  ;;  %v5317_v32 = vld [vmem:[#allocation4 + $0x18c] sm:$0xf0]  ;;  %v5283_v33 = vld [vmem:[#allocation4 + $0x84] sm:$0xf]  ;;  %v3778_v38 = vor.u32 %v5285_v28, %v3777_v27 }
  0x2c   :  { %v3779_v34 = vld [vmem:[#allocation4 + $0x90] sm:$0xf0]  ;;  %v5315_v36 = vld [vmem:[#allocation4 + $0x184] sm:$0xf]  ;;  %v3906_v40 = vor.u32 %v5317_v32, %v3905_v29  ;;  %v3761_v42 = vld [vmem:[#allocation4 + $0x60] sm:$0xf] }
  0x2d   :  { %v3907_v37 = vld [vmem:[#allocation4 + $0x190] sm:$0xf0]  ;;  %746 = vmatpush.bf16.msrb.mxu0 %v3794_v21  ;;  %v5281_v43 = vld [vmem:[#allocation4 + $0x6c] sm:$0xf0]  ;;  %v3889_v44 = vld [vmem:[#allocation4 + $0x160] sm:$0xf] }
  0x2e   :  { %305 = vmatpush.bf16.msra.mxu2 %v3666_v39  ;;  %760 = vmatpush.bf16.msrb.mxu1 %v3922_v25  ;;  %v5313_v46 = vld [vmem:[#allocation4 + $0x16c] sm:$0xf0]  ;;  %v3763_v48 = vld [vmem:[#allocation4 + $0x70] sm:$0xf0]  ;;  %v5311_v49 = vld [vmem:[#allocation4 + $0x164] sm:$0xf] }
  0x2f   :  { %319 = vmatpush.bf16.msra.mxu3 %v3670_v41  ;;  %v3782_v41 = vor.u32 %v5283_v33, %v3779_v34  ;;  %v3891_v50 = vld [vmem:[#allocation4 + $0x170] sm:$0xf0]  ;;  %v3745_v55 = vld [vmem:[#allocation4 + $0x40] sm:$0xf]  ;;  %v5277_v56 = vld [vmem:[#allocation4 + $0x4c] sm:$0xf0] }
  0x30   :  { %v3873_v57 = vld [vmem:[#allocation4 + $0x140] sm:$0xf]  ;;  %v3894_v60 = vor.u32 %v5311_v49, %v3891_v50  ;;  %v5309_v61 = vld [vmem:[#allocation4 + $0x14c] sm:$0xf0]  ;;  %v3747_v63 = vld [vmem:[#allocation4 + $0x50] sm:$0xf0]  ;;  %v3746_v3 = vor.u32 %v5277_v56, %v3745_v55 }
  0x31   :  { %747 = vmatpush.bf16.msrb.mxu0 %v3778_v38  ;;  %v5307_v1 = vld [vmem:[#allocation4 + $0x144] sm:$0xf]  ;;  %v3874_v6 = vor.u32 %v5309_v61, %v3873_v57  ;;  %v5273_v17 = vld [vmem:[#allocation4 + $0x2c] sm:$0xf0]  ;;  %v3857_v18 = vld [vmem:[#allocation4 + $0x120] sm:$0xf] }
  0x32   :  { %306 = vmatpush.bf16.msra.mxu2 %v3658_v45  ;;  %v3910_v45 = vor.u32 %v5315_v36, %v3907_v37  ;;  %761 = vmatpush.bf16.msrb.mxu1 %v3906_v40  ;;  %v5271_v21 = vld [vmem:[#allocation4 + $0x24] sm:$0xf]  ;;  %v3731_v23 = vld [vmem:[#allocation4 + $0x30] sm:$0xf0]  ;;  %v3713_v28 = vld [vmem:[#allocation4] sm:$0xf] }
  0x33   :  { %320 = vmatpush.bf16.msra.mxu3 %v3662_v47  ;;  %v5279_v47 = vld [vmem:[#allocation4 + $0x64] sm:$0xf]  ;;  %v3859_v25 = vld [vmem:[#allocation4 + $0x130] sm:$0xf0]  ;;  %v5269_v29 = vld [vmem:[#allocation4 + $0xc] sm:$0xf0] }
  0x34   :  { %v3766_v54 = vor.u32 %v5279_v47, %v3763_v48  ;;  %v5303_v24 = vld [vmem:[#allocation4 + $0x124] sm:$0xf]  ;;  %v5301_v32 = vld [vmem:[#allocation4 + $0x10c] sm:$0xf0]  ;;  %v3715_v34 = vld [vmem:[#allocation4 + $0x10] sm:$0xf0] }
  0x35   :  { %v3862_v27 = vor.u32 %v5303_v24, %v3859_v25  ;;  %v5267_v33 = vld [vmem:[#allocation4 + $0x4] sm:$0xf]  ;;  %v3843_v38 = vld [vmem:[#allocation4 + $0x110] sm:$0xf0]  ;;  %v3835_v47 = vld [vmem:[#allocation4 + $0xf8] sm:$0xf0] }
  0x36   :  { %307 = vmatpush.bf16.msra.mxu2 %v3650_v51  ;;  %v3762_v51 = vor.u32 %v5281_v43, %v3761_v42  ;;  %v3718_v36 = vor.u32 %v5267_v33, %v3715_v34  ;;  %v5299_v37 = vld [vmem:[#allocation4 + $0x104] sm:$0xf]  ;;  %v3961_v42 = vld [vmem:[#allocation4 + $0x1e8] sm:$0xf]  ;;  %v5330_v43 = vld [vmem:[#allocation4 + $0x1f4] sm:$0xf0] }
  0x37   :  { %321 = vmatpush.bf16.msra.mxu3 %v3654_v53  ;;  %v3890_v53 = vor.u32 %v5313_v46, %v3889_v44  ;;  %v3846_v40 = vor.u32 %v5299_v37, %v3843_v38  ;;  %v5296_v46 = vld [vmem:[#allocation4 + $0xec] sm:$0xf]  ;;  %v3963_v50 = vld [vmem:[#allocation4 + $0x1f8] sm:$0xf0]  ;;  %v3945_v55 = vld [vmem:[#allocation4 + $0x1c8] sm:$0xf] }
  0x38   :  { %748 = vmatpush.bf16.msrb.mxu0 %v3762_v51  ;;  %v5328_v48 = vld [vmem:[#allocation4 + $0x1ec] sm:$0xf]  ;;  %v3838_v49 = vor.u32 %v5296_v46, %v3835_v47  ;;  %v3817_v51 = vld [vmem:[#allocation4 + $0xc8] sm:$0xf]  ;;  %v5326_v56 = vld [vmem:[#allocation4 + $0x1d4] sm:$0xf0] }
  0x39   :  { %762 = vmatpush.bf16.msrb.mxu1 %v3890_v53  ;;  %v3966_v53 = vor.u32 %v5328_v48, %v3963_v50  ;;  %v5292_v57 = vld [vmem:[#allocation4 + $0xcc] sm:$0xf]  ;;  %v3947_v61 = vld [vmem:[#allocation4 + $0x1d8] sm:$0xf0]  ;;  %v3769_v24 = vld [vmem:[#allocation4 + $0x68] sm:$0xf] }
  0x3a   :  { %772 = vmatpush.bf16.msrb.mxu2 %v3830_v62  ;;  %v5275_v62 = vld [vmem:[#allocation4 + $0x44] sm:$0xf]  ;;  %v5282_v25 = vld [vmem:[#allocation4 + $0x74] sm:$0xf0]  ;;  %v5312_v33 = vld [vmem:[#allocation4 + $0x16c] sm:$0xf] }
  0x3b   :  { %786 = vmatpush.bf16.msrb.mxu3 %v3958_v2  ;;  %v3875_v2 = vld [vmem:[#allocation4 + $0x150] sm:$0xf0]  ;;  %v3750_v7 = vor.u32 %v5275_v62, %v3747_v63  ;;  %v3899_v34 = vld [vmem:[#allocation4 + $0x178] sm:$0xf0]  ;;  %v5278_v38 = vld [vmem:[#allocation4 + $0x54] sm:$0xf0] }
  0x3c   :  { %v3878_v8 = vor.u32 %v5307_v1, %v3875_v2  ;;  %749 = vmatpush.bf16.msrb.mxu0 %v3746_v3  ;;  %v5290_v1 = vld [vmem:[#allocation4 + $0xb4] sm:$0xf0]  ;;  %v3929_v2 = vld [vmem:[#allocation4 + $0x1a8] sm:$0xf]  ;;  %v3902_v37 = vor.u32 %v5312_v33, %v3899_v34  ;;  %v3883_v47 = vld [vmem:[#allocation4 + $0x158] sm:$0xf0] }
  0x3d   :  { %763 = vmatpush.bf16.msrb.mxu1 %v3874_v6  ;;  %v3803_v6 = vld [vmem:[#allocation4 + $0xb8] sm:$0xf0]  ;;  %v3737_v48 = vld [vmem:[#allocation4 + $0x28] sm:$0xf]  ;;  %v4705_v33 = vld [vmem:[#allocation6 + $0x5c0] sm:$0xf] }
  0x3e   :  { %773 = vmatpush.bf16.msrb.mxu2 %v3814_v11 }
  0x3f   :  { %787 = vmatpush.bf16.msrb.mxu3 %v3942_v16 }
  0x42   :  { %774 = vmatpush.bf16.msrb.mxu2 %v3798_v26  ;;  %v3734_v26 = vor.u32 %v5271_v21, %v3731_v23  ;;  %v5316_v21 = vld [vmem:[#allocation4 + $0x18c] sm:$0xf] }
  0x43   :  { %788 = vmatpush.bf16.msrb.mxu3 %v3926_v31  ;;  %v3714_v31 = vor.u32 %v5269_v29, %v3713_v28  ;;  %v5314_v28 = vld [vmem:[#allocation4 + $0x174] sm:$0xf0]  ;;  %v5280_v29 = vld [vmem:[#allocation4 + $0x6c] sm:$0xf] }
  0x46   :  { %775 = vmatpush.bf16.msrb.mxu2 %v3782_v41  ;;  %v5298_v41 = vld [vmem:[#allocation4 + $0xf4] sm:$0xf0] }
  0x47   :  { %789 = vmatpush.bf16.msrb.mxu3 %v3910_v45  ;;  %v3962_v45 = vor.u32 %v5330_v43, %v3961_v42  ;;  %v5276_v43 = vld [vmem:[#allocation4 + $0x4c] sm:$0xf] }
  0x4a   :  { %776 = vmatpush.bf16.msrb.mxu2 %v3766_v54 }
  0x4b   :  { %790 = vmatpush.bf16.msrb.mxu3 %v3894_v60  ;;  %v5324_v60 = vld [vmem:[#allocation4 + $0x1cc] sm:$0xf] }
  0x4c   :  { %v3950_v63 = vor.u32 %v5324_v60, %v3947_v61  ;;  %v3721_v61 = vld [vmem:[#allocation4 + $0x8] sm:$0xf] }
  0x4e   :  { %777 = vmatpush.bf16.msrb.mxu2 %v3750_v7 }
  0x4f   :  { %791 = vmatpush.bf16.msrb.mxu3 %v3878_v8 }
  0x52   :  { %778 = vmatpush.bf16.msrb.mxu2 %v3734_v26  ;;  %v3897_v26 = vld [vmem:[#allocation4 + $0x168] sm:$0xf] }
  0x53   :  { %792 = vmatpush.bf16.msrb.mxu3 %v3862_v27  ;;  %v3770_v27 = vor.u32 %v5282_v25, %v3769_v24 }
  0x56   :  { %779 = vmatpush.bf16.msrb.mxu2 %v3718_v36  ;;  %v5890_v36 = vld [vmem:[%s6037_s6] sm:$0x3] }
  0x57   :  { %793 = vmatpush.bf16.msrb.mxu3 %v3846_v40  ;;  %v5310_v40 = vld [vmem:[#allocation4 + $0x154] sm:$0xf0] }
  0x97   :  { %v139_v20 = vpop.f32.mrf.mxu0 }
  0x9b   :  { %v174_v30 = vpop.f32.mrf.mxu1 }
  0x9c   :  { %v175_v35 = vadd.f32 %v174_v30, %v139_v20  ;;  %v5305_v20 = vld [vmem:[#allocation4 + $0x12c] sm:$0xf0]  ;;  %v3841_v30 = vld [vmem:[#allocation4 + $0x100] sm:$0xf] }
  0x9d   :  { %v3858_v22 = vor.u32 %v5305_v20, %v3857_v18  ;;  %v3787_v18 = vld [vmem:[#allocation4 + $0x98] sm:$0xf0] }
  0x9e   :  { %v183_v39 = vadd.f32 %v5883_v15, %v175_v35  ;;  %v3842_v35 = vor.u32 %v5301_v32, %v3841_v30  ;;  %v3771_v30 = vld [vmem:[#allocation4 + $0x78] sm:$0xf0] }
  0x9f   :  { %v141_v58 = vpop.f32.mrf.mxu0  ;;  %764 = vmatpush.bf16.msrb.mxu1 %v3858_v22  ;;  %v3915_v22 = vld [vmem:[#allocation4 + $0x198] sm:$0xf0]  ;;  %v3774_v32 = vor.u32 %v5280_v29, %v3771_v30  ;;  %v4193_v29 = vld [vmem:[#allocation6 + $0x1c0] sm:$0xf] }
  0xa0   :  { %v185_v52 = vpack.c.bf16 %v183_v39, %v183_v39  ;;  %v3833_v39 = vld [vmem:[#allocation4 + $0xe8] sm:$0xf]  ;;  %v3918_v23 = vor.u32 %v5316_v21, %v3915_v22  ;;  %v5391_v30 = vld [vmem:[#allocation6 + $0x1dc] sm:$0xf0] }
  0xa1   :  { %v3834_v44 = vor.u32 %v5298_v41, %v3833_v39  ;;  %v3881_v39 = vld [vmem:[#allocation4 + $0x148] sm:$0xf] }
  0xa2   :  { %v187_v4 = vunpack.c.l.bf16 %v185_v52  ;;  %v5294_v52 = vld [vmem:[#allocation4 + $0xd4] sm:$0xf0]  ;;  %v3882_v42 = vor.u32 %v5310_v40, %v3881_v39  ;;  %v4961_v39 = vld [vmem:[#allocation6 + $0x7c0] sm:$0xf] }
  0xa3   :  { %v176_v59 = vpop.f32.mrf.mxu1  ;;  %765 = vmatpush.bf16.msrb.mxu1 %v3842_v35  ;;  %v3818_v54 = vor.u32 %v5294_v52, %v3817_v51  ;;  %v3753_v35 = vld [vmem:[#allocation4 + $0x48] sm:$0xf]  ;;  %v5306_v52 = vld [vmem:[#allocation4 + $0x134] sm:$0xf0]  ;;  %v5583_v40 = vld [vmem:[#allocation6 + $0x7dc] sm:$0xf0] }
  0xa4   :  { %v177_v0 = vadd.f32 %v176_v59, %v141_v58  ;;  %v189_v11 = vmul.f32 0.20019531, %v187_v4  ;;  %v3946_v58 = vor.u32 %v5326_v56, %v3945_v55  ;;  %v3819_v59 = vld [vmem:[#allocation4 + $0xd8] sm:$0xf0]  ;;  %v3754_v41 = vor.u32 %v5278_v38, %v3753_v35  ;;  %v3865_v51 = vld [vmem:[#allocation4 + $0x128] sm:$0xf] }
  0xa5   :  { %v3822_v62 = vor.u32 %v5292_v57, %v3819_v59  ;;  %v5304_v55 = vld [vmem:[#allocation4 + $0x12c] sm:$0xf]  ;;  %v3867_v56 = vld [vmem:[#allocation4 + $0x138] sm:$0xf0]  ;;  %v216_v57 = vperm.slane %v5890_v36, 0  ;;  %v3866_v60 = vor.u32 %v5306_v52, %v3865_v51 }
  0xa6   :  { %v184_v5 = vadd.f32 %v5883_v15, %v177_v0  ;;  %v195_v13 = vmax.f32 %v187_v4, %v189_v11  ;;  %v3729_v15 = vld [vmem:[#allocation4 + $0x20] sm:$0xf]  ;;  %v3801_v0 = vld [vmem:[#allocation4 + $0xa8] sm:$0xf]  ;;  %v5322_v4 = vld [vmem:[#allocation4 + $0x1b4] sm:$0xf0] }
  0xa7   :  { %v3730_v19 = vor.u32 %v5273_v17, %v3729_v15  ;;  %814 = vmatpush.bf16.msra.mxu1 %v3962_v45  ;;  %v3802_v3 = vor.u32 %v5290_v1, %v3801_v0  ;;  %v3930_v7 = vor.u32 %v5322_v4, %v3929_v2  ;;  %v5318_v15 = vld [vmem:[#allocation4 + $0x194] sm:$0xf0]  ;;  %v5284_v17 = vld [vmem:[#allocation4 + $0x8c] sm:$0xf]  ;;  %v3849_v0 = vld [vmem:[#allocation4 + $0x108] sm:$0xf]  ;;  %v3870_v2 = vor.u32 %v5304_v55, %v3867_v56 }
  0xa8   :  { %v186_v9 = vpack.c.bf16 %v184_v5, %v184_v5  ;;  %v5288_v5 = vld [vmem:[#allocation4 + $0xac] sm:$0xf]  ;;  %v3790_v20 = vor.u32 %v5284_v17, %v3787_v18  ;;  %v5302_v1 = vld [vmem:[#allocation4 + $0x114] sm:$0xf0]  ;;  %v3723_v4 = vld [vmem:[#allocation4 + $0x18] sm:$0xf0] }
  0xa9   :  { %750 = vmatpush.bf16.msrb.mxu0 %v3730_v19  ;;  %v3806_v8 = vor.u32 %v5288_v5, %v3803_v6  ;;  %v5308_v45 = vld [vmem:[#allocation4 + $0x14c] sm:$0xf]  ;;  %v3851_v6 = vld [vmem:[#allocation4 + $0x118] sm:$0xf0]  ;;  %v5519_v38 = vld [vmem:[#allocation6 + $0x5dc] sm:$0xf0] }
  0xaa   :  { %v188_v10 = vunpack.c.l.bf16 %v186_v9  ;;  %v5320_v9 = vld [vmem:[#allocation4 + $0x1ac] sm:$0xf]  ;;  %v3886_v50 = vor.u32 %v5308_v45, %v3883_v47  ;;  %v4161_v45 = vld [vmem:[#allocation6 + $0x180] sm:$0xf] }
  0xab   :  { %815 = vmatpush.bf16.msra.mxu1 %v3946_v58  ;;  %v217_v58 = vperm.slane %v5890_v36, 1  ;;  %v5300_v5 = vld [vmem:[#allocation4 + $0x10c] sm:$0xf]  ;;  %v4417_v47 = vld [vmem:[#allocation6 + $0x380] sm:$0xf] }
  0xac   :  { %v190_v12 = vmul.f32 0.20019531, %v188_v10  ;;  %v4673_v51 = vld [vmem:[#allocation6 + $0x580] sm:$0xf] }
  0xad   :  { %751 = vmatpush.bf16.msrb.mxu0 %v3714_v31  ;;  %v3898_v31 = vor.u32 %v5314_v28, %v3897_v26  ;;  %v5511_v52 = vld [vmem:[#allocation6 + $0x59c] sm:$0xf0] }
  0xae   :  { %v196_v14 = vmax.f32 %v188_v10, %v190_v12  ;;  %v3931_v10 = vld [vmem:[#allocation4 + $0x1b8] sm:$0xf0]  ;;  %v3785_v12 = vld [vmem:[#allocation4 + $0x88] sm:$0xf] }
  0xaf   :  { %v3934_v11 = vor.u32 %v5320_v9, %v3931_v10  ;;  %816 = vmatpush.bf16.msra.mxu1 %v3930_v7  ;;  %v3850_v10 = vor.u32 %v5302_v1, %v3849_v0  ;;  %v5503_v0 = vld [vmem:[#allocation6 + $0x55c] sm:$0xf0] }
  0xb0   :  { %v197_v16 = vpack.c.bf16 %v196_v14, %v195_v13  ;;  %v5286_v13 = vld [vmem:[#allocation4 + $0x94] sm:$0xf0]  ;;  %v3913_v14 = vld [vmem:[#allocation4 + $0x188] sm:$0xf]  ;;  %v4897_v1 = vld [vmem:[#allocation6 + $0x740] sm:$0xf] }
  0xb1   :  { %800 = vmatpush.bf16.msra.mxu0 %v3834_v44  ;;  %v3914_v19 = vor.u32 %v5318_v15, %v3913_v14  ;;  %v3755_v44 = vld [vmem:[#allocation4 + $0x58] sm:$0xf0]  ;;  %v3854_v14 = vor.u32 %v5300_v5, %v3851_v6  ;;  %v4097_v5 = vld [vmem:[#allocation6 + $0x100] sm:$0xf] }
  0xb2   :  { %308 = vmatmul.bf16.vlgmr.msra.gmra.mxu2 %v197_v16  ;;  %322 = vmatmul.bf16.vlgmr.msra.gmra.mxu3 %v197_v16  ;;  %v3786_v16 = vor.u32 %v5286_v13, %v3785_v12  ;;  %v3758_v46 = vor.u32 %v5276_v43, %v3755_v44  ;;  %v4194_v43 = vor.u32 %v5391_v30, %v4193_v29  ;;  %v5367_v6 = vld [vmem:[#allocation6 + $0x11c] sm:$0xf0] }
  0xb3   :  { %828 = vmatpush.bf16.msra.mxu2 %v3838_v49  ;;  %842 = vmatpush.bf16.msra.mxu3 %v3966_v53  ;;  %v5274_v49 = vld [vmem:[#allocation4 + $0x34] sm:$0xf0]  ;;  %v5272_v53 = vld [vmem:[#allocation4 + $0x2c] sm:$0xf] }
  0xb4   :  { %817 = vmatpush.bf16.msra.mxu1 %v3914_v19  ;;  %v3738_v59 = vor.u32 %v5274_v49, %v3737_v48  ;;  %v5447_v48 = vld [vmem:[#allocation6 + $0x39c] sm:$0xf0]  ;;  %v4706_v49 = vor.u32 %v5519_v38, %v4705_v33 }
  0xb5   :  { %801 = vmatpush.bf16.msra.mxu0 %v3818_v54  ;;  %v3739_v54 = vld [vmem:[#allocation4 + $0x38] sm:$0xf0]  ;;  %v4418_v56 = vor.u32 %v5447_v48, %v4417_v47  ;;  %v4257_v33 = vld [vmem:[#allocation6 + $0x240] sm:$0xf]  ;;  %v4451_v47 = vld [vmem:[#allocation6 + $0x3e0] sm:$0xf0] }
  0xb6   :  { %v5335_v38 = vld [vmem:[#allocation6 + $0x1c] sm:$0xf0] }
  0xb7   :  { %829 = vmatpush.bf16.msra.mxu2 %v3822_v62  ;;  %843 = vmatpush.bf16.msra.mxu3 %v3950_v63  ;;  %v3742_v62 = vor.u32 %v5272_v53, %v3739_v54  ;;  %v5270_v63 = vld [vmem:[#allocation4 + $0x14] sm:$0xf0]  ;;  %v4929_v53 = vld [vmem:[#allocation6 + $0x780] sm:$0xf] }
  0xb8   :  { %818 = vmatpush.bf16.msra.mxu1 %v3898_v31  ;;  %v3722_v9 = vor.u32 %v5270_v63, %v3721_v61  ;;  %v4449_v31 = vld [vmem:[#allocation6 + $0x3c0] sm:$0xf]  ;;  %v4674_v61 = vor.u32 %v5511_v52, %v4673_v51 }
  0xb9   :  { %802 = vmatpush.bf16.msra.mxu0 %v3802_v3  ;;  %v5268_v3 = vld [vmem:[#allocation4 + $0xc] sm:$0xf]  ;;  %v5575_v54 = vld [vmem:[#allocation6 + $0x79c] sm:$0xf0] }
  0xba   :  { %v3726_v13 = vor.u32 %v5268_v3, %v3723_v4  ;;  %v4641_v63 = vld [vmem:[#allocation6 + $0x540] sm:$0xf] }
  0xbb   :  { %830 = vmatpush.bf16.msra.mxu2 %v3806_v8  ;;  %844 = vmatpush.bf16.msra.mxu3 %v3934_v11  ;;  %v4833_v51 = vld [vmem:[#allocation6 + $0x6c0] sm:$0xf] }
  0xbc   :  { %819 = vmatpush.bf16.msra.mxu1 %v3882_v42 }
  0xbd   :  { %803 = vmatpush.bf16.msra.mxu0 %v3786_v16 }
  0xbf   :  { %831 = vmatpush.bf16.msra.mxu2 %v3790_v20  ;;  %845 = vmatpush.bf16.msra.mxu3 %v3918_v23 }
  0xc0   :  { %820 = vmatpush.bf16.msra.mxu1 %v3866_v60  ;;  %v5439_v60 = vld [vmem:[#allocation6 + $0x35c] sm:$0xf0] }
  0xc1   :  { %804 = vmatpush.bf16.msra.mxu0 %v3770_v27 }
  0xc3   :  { %832 = vmatpush.bf16.msra.mxu2 %v3774_v32  ;;  %846 = vmatpush.bf16.msra.mxu3 %v3902_v37  ;;  %v5455_v32 = vld [vmem:[#allocation6 + $0x3dc] sm:$0xf0] }
  0xc4   :  { %821 = vmatpush.bf16.msra.mxu1 %v3850_v10  ;;  %v4450_v44 = vor.u32 %v5455_v32, %v4449_v31  ;;  %v4001_v31 = vld [vmem:[#allocation6 + $0x40] sm:$0xf] }
  0xc5   :  { %805 = vmatpush.bf16.msra.mxu0 %v3754_v41  ;;  %v5343_v32 = vld [vmem:[#allocation6 + $0x5c] sm:$0xf0] }
  0xc7   :  { %833 = vmatpush.bf16.msra.mxu2 %v3758_v46  ;;  %847 = vmatpush.bf16.msra.mxu3 %v3886_v50  ;;  %v5383_v46 = vld [vmem:[#allocation6 + $0x19c] sm:$0xf0]  ;;  %v4962_v50 = vor.u32 %v5583_v40, %v4961_v39 }
  0xc8   :  { %v4162_v55 = vor.u32 %v5383_v46, %v4161_v45  ;;  %v4225_v39 = vld [vmem:[#allocation6 + $0x200] sm:$0xf]  ;;  %v5451_v45 = vld [vmem:[#allocation6 + $0x3c4] sm:$0xf] }
  0xc9   :  { %806 = vmatpush.bf16.msra.mxu0 %v3738_v59  ;;  %v4385_v59 = vld [vmem:[#allocation6 + $0x340] sm:$0xf]  ;;  %v4454_v48 = vor.u32 %v5451_v45, %v4451_v47  ;;  %v4675_v45 = vld [vmem:[#allocation6 + $0x5a0] sm:$0xf0] }
  0xca   :  { %v4386_v4 = vor.u32 %v5439_v60, %v4385_v59  ;;  %v5399_v40 = vld [vmem:[#allocation6 + $0x21c] sm:$0xf0]  ;;  %v4419_v59 = vld [vmem:[#allocation6 + $0x3a0] sm:$0xf0] }
  0xcb   :  { %834 = vmatpush.bf16.msra.mxu2 %v3742_v62  ;;  %848 = vmatpush.bf16.msra.mxu3 %v3870_v2  ;;  %v4930_v62 = vor.u32 %v5575_v54, %v4929_v53  ;;  %v5567_v2 = vld [vmem:[#allocation6 + $0x75c] sm:$0xf0]  ;;  %v5379_v54 = vld [vmem:[#allocation6 + $0x184] sm:$0xf] }
  0xcc   :  { %v4898_v10 = vor.u32 %v5567_v2, %v4897_v1  ;;  %v5551_v53 = vld [vmem:[#allocation6 + $0x6dc] sm:$0xf0]  ;;  %v5371_v2 = vld [vmem:[#allocation6 + $0x144] sm:$0xf] }
  0xcd   :  { %807 = vmatpush.bf16.msra.mxu0 %v3722_v9  ;;  %v4642_v9 = vor.u32 %v5503_v0, %v4641_v63  ;;  %v4801_v63 = vld [vmem:[#allocation6 + $0x680] sm:$0xf] }
  0xce   :  { %v5543_v1 = vld [vmem:[#allocation6 + $0x69c] sm:$0xf0] }
  0xcf   :  { %835 = vmatpush.bf16.msra.mxu2 %v3726_v13  ;;  %849 = vmatpush.bf16.msra.mxu3 %v3854_v14  ;;  %v4865_v13 = vld [vmem:[#allocation6 + $0x700] sm:$0xf] }
  0xd0   :  { %v5559_v14 = vld [vmem:[#allocation6 + $0x71c] sm:$0xf0] }
 0x135   :  { %v309_v7 = vpop.f32.mrf.mxu2  ;;  %v323_v8 = vpop.f32.mrf.mxu3 }
 0x136   :  { %v310_v11 = vadd.f32 %v309_v7, %v216_v57  ;;  %v324_v12 = vadd.f32 %v323_v8, %v217_v58  ;;  %v4353_v7 = vld [vmem:[#allocation6 + $0x300] sm:$0xf] }
 0x137   :  { %v5431_v8 = vld [vmem:[#allocation6 + $0x31c] sm:$0xf0] }
 0x138   :  { %v328_v16 = vpack.c.bf16 %v324_v12, %v310_v11  ;;  %v4609_v11 = vld [vmem:[#allocation6 + $0x500] sm:$0xf] }
 0x139   :  { %v5495_v12 = vld [vmem:[#allocation6 + $0x51c] sm:$0xf0] }
 0x13a   :  { %v330_v18 = vunpack.c.l.bf16 %v328_v16  ;;  %v331_v19 = vunpack.c.h.bf16 %v328_v16  ;;  %v4098_v16 = vor.u32 %v5367_v6, %v4097_v5  ;;  %v5435_v6 = vld [vmem:[#allocation6 + $0x344] sm:$0xf] }
 0x13c   :  { %v334_v23 = vmul.f32 0.20019531, %v330_v18  ;;  %v335_v24 = vmul.f32 0.20019531, %v331_v19 }
 0x13d   :  { %v311_v15 = vpop.f32.mrf.mxu2  ;;  %v325_v17 = vpop.f32.mrf.mxu3 }
 0x13e   :  { %v312_v20 = vadd.f32 %v311_v15, %v216_v57  ;;  %v326_v21 = vadd.f32 %v325_v17, %v217_v58  ;;  %v344_v34 = vmax.f32 %v330_v18, %v334_v23  ;;  %v345_v35 = vmax.f32 %v331_v19, %v335_v24  ;;  %v4129_v57 = vld [vmem:[#allocation6 + $0x140] sm:$0xf] }
 0x13f   :  { %v5375_v58 = vld [vmem:[#allocation6 + $0x15c] sm:$0xf0]  ;;  %v4354_v15 = vor.u32 %v5431_v8, %v4353_v7  ;;  %v4387_v7 = vld [vmem:[#allocation6 + $0x360] sm:$0xf0] }
 0x140   :  { %v329_v22 = vpack.c.bf16 %v326_v21, %v312_v20  ;;  %v4130_v3 = vor.u32 %v5375_v58, %v4129_v57  ;;  %v4065_v17 = vld [vmem:[#allocation6 + $0xc0] sm:$0xf]  ;;  %v4610_v21 = vor.u32 %v5495_v12, %v4609_v11  ;;  %v5443_v58 = vld [vmem:[#allocation6 + $0x384] sm:$0xf]  ;;  %v4390_v8 = vor.u32 %v5435_v6, %v4387_v7 }
 0x141   :  { %v5359_v18 = vld [vmem:[#allocation6 + $0xdc] sm:$0xf0]  ;;  %v4422_v60 = vor.u32 %v5443_v58, %v4419_v59  ;;  %v4643_v58 = vld [vmem:[#allocation6 + $0x560] sm:$0xf0] }
 0x142   :  { %v332_v25 = vunpack.c.l.bf16 %v329_v22  ;;  %v333_v26 = vunpack.c.h.bf16 %v329_v22  ;;  %v4321_v19 = vld [vmem:[#allocation6 + $0x2c0] sm:$0xf]  ;;  %v4866_v22 = vor.u32 %v5559_v14, %v4865_v13  ;;  %v4066_v23 = vor.u32 %v5359_v18, %v4065_v17  ;;  %v5363_v14 = vld [vmem:[#allocation6 + $0x104] sm:$0xf] }
 0x143   :  { %v5423_v20 = vld [vmem:[#allocation6 + $0x2dc] sm:$0xf0]  ;;  %v5427_v18 = vld [vmem:[#allocation6 + $0x304] sm:$0xf] }
 0x144   :  { %v336_v27 = vmul.f32 0.20019531, %v332_v25  ;;  %v337_v28 = vmul.f32 0.20019531, %v333_v26  ;;  %v4322_v24 = vor.u32 %v5423_v20, %v4321_v19  ;;  %v4769_v11 = vld [vmem:[#allocation6 + $0x640] sm:$0xf]  ;;  %v4355_v19 = vld [vmem:[#allocation6 + $0x320] sm:$0xf0] }
 0x145   :  { %v5535_v13 = vld [vmem:[#allocation6 + $0x65c] sm:$0xf0]  ;;  %v4358_v20 = vor.u32 %v5427_v18, %v4355_v19  ;;  %v5563_v59 = vld [vmem:[#allocation6 + $0x744] sm:$0xf] }
 0x146   :  { %v346_v36 = vmax.f32 %v332_v25, %v336_v27  ;;  %v347_v37 = vmax.f32 %v333_v26, %v337_v28  ;;  %v4033_v25 = vld [vmem:[#allocation6 + $0x80] sm:$0xf] }
 0x147   :  { %v5351_v26 = vld [vmem:[#allocation6 + $0x9c] sm:$0xf0] }
 0x148   :  { %v5894_v41 = vpack.c.bf16 %v346_v36, %v344_v34  ;;  %v5896_v42 = vpack.c.bf16 %v347_v37, %v345_v35  ;;  %v4289_v27 = vld [vmem:[#allocation6 + $0x280] sm:$0xf]  ;;  %v4034_v29 = vor.u32 %v5351_v26, %v4033_v25  ;;  %v4002_v35 = vor.u32 %v5343_v32, %v4001_v31  ;;  %v5355_v26 = vld [vmem:[#allocation6 + $0xc4] sm:$0xf] }
 0x149   :  { %v5415_v28 = vld [vmem:[#allocation6 + $0x29c] sm:$0xf0]  ;;  %v4323_v31 = vld [vmem:[#allocation6 + $0x2e0] sm:$0xf0] }
 0x14a   :  { %752 = vmatmul.bf16.vlgmr.msrb.gmra.mxu0 %v5894_v41  ;;  %766 = vmatmul.bf16.vlgmr.msrb.gmra.mxu1 %v5896_v42  ;;  %v4290_v30 = vor.u32 %v5415_v28, %v4289_v27  ;;  %v5407_v34 = vld [vmem:[#allocation6 + $0x25c] sm:$0xf0]  ;;  %v4067_v27 = vld [vmem:[#allocation6 + $0xe0] sm:$0xf0] }
 0x14b   :  { %780 = vmatmul.bf16.vlgmr.msrb.gmra.mxu2 %v5894_v41  ;;  %794 = vmatmul.bf16.vlgmr.msrb.gmra.mxu3 %v5896_v42  ;;  %v4258_v36 = vor.u32 %v5407_v34, %v4257_v33  ;;  %v3969_v37 = vld [vmem:[#allocation6] sm:$0xf]  ;;  %v5515_v32 = vld [vmem:[#allocation6 + $0x5c4] sm:$0xf] }
 0x14c   :  { %2454 = vmatpush.bf16.msrb.mxu0 %v4194_v43  ;;  %2468 = vmatpush.bf16.msrb.mxu1 %v4450_v44  ;;  %v5387_v43 = vld [vmem:[#allocation6 + $0x1c4] sm:$0xf]  ;;  %v5527_v25 = vld [vmem:[#allocation6 + $0x61c] sm:$0xf0] }
 0x14d   :  { %2482 = vmatpush.bf16.msrb.mxu2 %v4706_v49  ;;  %2496 = vmatpush.bf16.msrb.mxu3 %v4962_v50  ;;  %v4195_v44 = vld [vmem:[#allocation6 + $0x1e0] sm:$0xf0]  ;;  %v4577_v49 = vld [vmem:[#allocation6 + $0x4c0] sm:$0xf] }
 0x14e   :  { %v4198_v46 = vor.u32 %v5387_v43, %v4195_v44  ;;  %v5487_v50 = vld [vmem:[#allocation6 + $0x4dc] sm:$0xf0]  ;;  %v4707_v34 = vld [vmem:[#allocation6 + $0x5e0] sm:$0xf0] }
 0x14f   :  { %v4578_v52 = vor.u32 %v5487_v50, %v4577_v49  ;;  %v4291_v43 = vld [vmem:[#allocation6 + $0x2a0] sm:$0xf0] }
 0x150   :  { %2455 = vmatpush.bf16.msrb.mxu0 %v4162_v55  ;;  %2469 = vmatpush.bf16.msrb.mxu1 %v4418_v56  ;;  %v4163_v55 = vld [vmem:[#allocation6 + $0x1a0] sm:$0xf0]  ;;  %v4834_v56 = vor.u32 %v5551_v53, %v4833_v51 }
 0x151   :  { %2483 = vmatpush.bf16.msrb.mxu2 %v4674_v61  ;;  %2497 = vmatpush.bf16.msrb.mxu3 %v4930_v62  ;;  %v4166_v57 = vor.u32 %v5379_v54, %v4163_v55  ;;  %v4545_v61 = vld [vmem:[#allocation6 + $0x480] sm:$0xf]  ;;  %v5507_v44 = vld [vmem:[#allocation6 + $0x584] sm:$0xf] }
 0x152   :  { %v5479_v62 = vld [vmem:[#allocation6 + $0x49c] sm:$0xf0]  ;;  %v4678_v47 = vor.u32 %v5507_v44, %v4675_v45  ;;  %v4931_v49 = vld [vmem:[#allocation6 + $0x7a0] sm:$0xf0] }
 0x153   :  { %v4546_v0 = vor.u32 %v5479_v62, %v4545_v61  ;;  %v5339_v51 = vld [vmem:[#allocation6 + $0x44] sm:$0xf] }
 0x154   :  { %2456 = vmatpush.bf16.msrb.mxu0 %v4130_v3  ;;  %2470 = vmatpush.bf16.msrb.mxu1 %v4386_v4  ;;  %v4131_v3 = vld [vmem:[#allocation6 + $0x160] sm:$0xf0]  ;;  %v4802_v4 = vor.u32 %v5543_v1, %v4801_v63 }
 0x155   :  { %2484 = vmatpush.bf16.msrb.mxu2 %v4642_v9  ;;  %2498 = vmatpush.bf16.msrb.mxu3 %v4898_v10  ;;  %v4134_v5 = vor.u32 %v5371_v2, %v4131_v3  ;;  %v4513_v9 = vld [vmem:[#allocation6 + $0x440] sm:$0xf]  ;;  %v5403_v54 = vld [vmem:[#allocation6 + $0x244] sm:$0xf] }
 0x156   :  { %v5471_v10 = vld [vmem:[#allocation6 + $0x45c] sm:$0xf0]  ;;  %v4259_v55 = vld [vmem:[#allocation6 + $0x260] sm:$0xf0] }
 0x157   :  { %v4514_v12 = vor.u32 %v5471_v10, %v4513_v9  ;;  %v5331_v63 = vld [vmem:[#allocation6 + $0x4] sm:$0xf] }
 0x158   :  { %2457 = vmatpush.bf16.msrb.mxu0 %v4098_v16  ;;  %2471 = vmatpush.bf16.msrb.mxu1 %v4354_v15  ;;  %v4099_v16 = vld [vmem:[#allocation6 + $0x120] sm:$0xf0]  ;;  %v4770_v15 = vor.u32 %v5535_v13, %v4769_v11  ;;  %v5909_v11 = vld [vmem:[%s6039_s8] sm:$0xf] }
 0x159   :  { %2485 = vmatpush.bf16.msrb.mxu2 %v4610_v21  ;;  %2499 = vmatpush.bf16.msrb.mxu3 %v4866_v22  ;;  %v4102_v17 = vor.u32 %v5363_v14, %v4099_v16  ;;  %v4481_v21 = vld [vmem:[#allocation6 + $0x400] sm:$0xf]  ;;  %v5395_v1 = vld [vmem:[#allocation6 + $0x204] sm:$0xf]  ;;  %v416_v19 = vperm.slane %v5909_v11, 0 }
 0x15a   :  { %808 = vmatmul.bf16.vlgmr.msra.gmra.mxu0 %v5894_v41  ;;  %822 = vmatmul.bf16.vlgmr.msra.gmra.mxu1 %v5896_v42  ;;  %v5463_v22 = vld [vmem:[#allocation6 + $0x41c] sm:$0xf0]  ;;  %v4227_v3 = vld [vmem:[#allocation6 + $0x220] sm:$0xf0] }
 0x15b   :  { %836 = vmatmul.bf16.vlgmr.msra.gmra.mxu2 %v5894_v41  ;;  %850 = vmatmul.bf16.vlgmr.msra.gmra.mxu3 %v5896_v42  ;;  %v3970_v41 = vor.u32 %v5335_v38, %v3969_v37  ;;  %v4226_v42 = vor.u32 %v5399_v40, %v4225_v39  ;;  %v4963_v37 = vld [vmem:[#allocation6 + $0x7e0] sm:$0xf0]  ;;  %v4230_v6 = vor.u32 %v5395_v1, %v4227_v3 }
 0x15c   :  { %2458 = vmatpush.bf16.msrb.mxu0 %v4066_v23  ;;  %2472 = vmatpush.bf16.msrb.mxu1 %v4322_v24  ;;  %v4737_v23 = vld [vmem:[#allocation6 + $0x600] sm:$0xf]  ;;  %v4482_v24 = vor.u32 %v5463_v22, %v4481_v21  ;;  %v5347_v39 = vld [vmem:[#allocation6 + $0x84] sm:$0xf] }
 0x15d   :  { %2486 = vmatpush.bf16.msrb.mxu2 %v4578_v52  ;;  %2500 = vmatpush.bf16.msrb.mxu3 %v4834_v56  ;;  %v4738_v28 = vor.u32 %v5527_v25, %v4737_v23  ;;  %v4035_v40 = vld [vmem:[#allocation6 + $0xa0] sm:$0xf0] }
 0x15e   :  { %v4003_v52 = vld [vmem:[#allocation6 + $0x60] sm:$0xf0] }
 0x15f   :  { %v4006_v53 = vor.u32 %v5339_v51, %v4003_v52  ;;  %v5499_v56 = vld [vmem:[#allocation6 + $0x544] sm:$0xf] }
 0x160   :  { %2459 = vmatpush.bf16.msrb.mxu0 %v4034_v29  ;;  %2473 = vmatpush.bf16.msrb.mxu1 %v4290_v30  ;;  %v4070_v29 = vor.u32 %v5355_v26, %v4067_v27  ;;  %v5419_v30 = vld [vmem:[#allocation6 + $0x2c4] sm:$0xf]  ;;  %v4646_v61 = vor.u32 %v5499_v56, %v4643_v58 }
 0x161   :  { %2487 = vmatpush.bf16.msrb.mxu2 %v4546_v0  ;;  %2501 = vmatpush.bf16.msrb.mxu3 %v4802_v4  ;;  %v4326_v33 = vor.u32 %v5419_v30, %v4323_v31  ;;  %v3971_v0 = vld [vmem:[#allocation6 + $0x20] sm:$0xf0] }
 0x162   :  { %v3974_v2 = vor.u32 %v5331_v63, %v3971_v0  ;;  %v5491_v4 = vld [vmem:[#allocation6 + $0x504] sm:$0xf] }
 0x163   :  { %v4867_v9 = vld [vmem:[#allocation6 + $0x720] sm:$0xf0] }
 0x164   :  { %2460 = vmatpush.bf16.msrb.mxu0 %v4002_v35  ;;  %2474 = vmatpush.bf16.msrb.mxu1 %v4258_v36  ;;  %v5579_v35 = vld [vmem:[#allocation6 + $0x7c4] sm:$0xf]  ;;  %v4710_v36 = vor.u32 %v5515_v32, %v4707_v34 }
 0x165   :  { %2488 = vmatpush.bf16.msrb.mxu2 %v4514_v12  ;;  %2502 = vmatpush.bf16.msrb.mxu3 %v4770_v15  ;;  %v4966_v38 = vor.u32 %v5579_v35, %v4963_v37  ;;  %v5483_v12 = vld [vmem:[#allocation6 + $0x4c4] sm:$0xf] }
 0x166   :  { %v4579_v13 = vld [vmem:[#allocation6 + $0x4e0] sm:$0xf0] }
 0x167   :  { %v5547_v14 = vld [vmem:[#allocation6 + $0x6c4] sm:$0xf]  ;;  %v4582_v15 = vor.u32 %v5483_v12, %v4579_v13  ;;  %v5456_v12 = vld [vmem:[#allocation6 + $0x3e4] sm:$0xf0] }
 0x168   :  { %2461 = vmatpush.bf16.msrb.mxu0 %v3970_v41  ;;  %2475 = vmatpush.bf16.msrb.mxu1 %v4226_v42  ;;  %v5411_v41 = vld [vmem:[#allocation6 + $0x284] sm:$0xf]  ;;  %v4038_v42 = vor.u32 %v5347_v39, %v4035_v40 }
 0x169   :  { %2489 = vmatpush.bf16.msrb.mxu2 %v4482_v24  ;;  %2503 = vmatpush.bf16.msrb.mxu3 %v4738_v28  ;;  %v5475_v21 = vld [vmem:[#allocation6 + $0x484] sm:$0xf]  ;;  %v417_v24 = vperm.slane %v5909_v11, 1 }
 0x16a   :  { %v4547_v22 = vld [vmem:[#allocation6 + $0x4a0] sm:$0xf0] }
 0x16b   :  { %v5539_v23 = vld [vmem:[#allocation6 + $0x684] sm:$0xf]  ;;  %v4550_v25 = vor.u32 %v5475_v21, %v4547_v22 }
 0x16c   :  { %2510 = vmatpush.bf16.msra.mxu0 %v4198_v46  ;;  %2524 = vmatpush.bf16.msra.mxu1 %v4454_v48  ;;  %v4294_v46 = vor.u32 %v5411_v41, %v4291_v43  ;;  %v5571_v48 = vld [vmem:[#allocation6 + $0x784] sm:$0xf] }
 0x16d   :  { %2538 = vmatpush.bf16.msra.mxu2 %v4710_v36  ;;  %2552 = vmatpush.bf16.msra.mxu3 %v4966_v38  ;;  %v4934_v50 = vor.u32 %v5571_v48, %v4931_v49  ;;  %v4803_v26 = vld [vmem:[#allocation6 + $0x6a0] sm:$0xf0] }
 0x16e   :  { %v4806_v27 = vor.u32 %v5539_v23, %v4803_v26  ;;  %v5467_v31 = vld [vmem:[#allocation6 + $0x444] sm:$0xf]  ;;  %v5448_v26 = vld [vmem:[#allocation6 + $0x3a4] sm:$0xf0] }
 0x16f   :  { %v4515_v32 = vld [vmem:[#allocation6 + $0x460] sm:$0xf0] }
 0x170   :  { %2511 = vmatpush.bf16.msra.mxu0 %v4166_v57  ;;  %2525 = vmatpush.bf16.msra.mxu1 %v4422_v60  ;;  %v4262_v57 = vor.u32 %v5403_v54, %v4259_v55  ;;  %v4899_v60 = vld [vmem:[#allocation6 + $0x760] sm:$0xf0]  ;;  %v4518_v36 = vor.u32 %v5467_v31, %v4515_v32  ;;  %v4137_v32 = vld [vmem:[#allocation6 + $0x148] sm:$0xf] }
 0x171   :  { %2539 = vmatpush.bf16.msra.mxu2 %v4678_v47  ;;  %2553 = vmatpush.bf16.msra.mxu3 %v4934_v50  ;;  %v4902_v62 = vor.u32 %v5563_v59, %v4899_v60  ;;  %v4771_v37 = vld [vmem:[#allocation6 + $0x660] sm:$0xf0]  ;;  %v418_v59 = vperm.slane %v5909_v11, 2  ;;  %v419_v60 = vperm.slane %v5909_v11, 3 }
 0x172   :  { %v5459_v41 = vld [vmem:[#allocation6 + $0x404] sm:$0xf] }
 0x173   :  { %v5523_v43 = vld [vmem:[#allocation6 + $0x604] sm:$0xf] }
 0x174   :  { %2512 = vmatpush.bf16.msra.mxu0 %v4134_v5  ;;  %2526 = vmatpush.bf16.msra.mxu1 %v4390_v8  ;;  %v4611_v5 = vld [vmem:[#allocation6 + $0x520] sm:$0xf0] }
 0x175   :  { %2540 = vmatpush.bf16.msra.mxu2 %v4646_v61  ;;  %2554 = vmatpush.bf16.msra.mxu3 %v4902_v62  ;;  %v4614_v7 = vor.u32 %v5491_v4, %v4611_v5  ;;  %v5555_v8 = vld [vmem:[#allocation6 + $0x704] sm:$0xf]  ;;  %v4201_v4 = vld [vmem:[#allocation6 + $0x1c8] sm:$0xf] }
 0x176   :  { %v4870_v10 = vor.u32 %v5555_v8, %v4867_v9  ;;  %v5392_v5 = vld [vmem:[#allocation6 + $0x1e4] sm:$0xf0] }
 0x178   :  { %2513 = vmatpush.bf16.msra.mxu0 %v4102_v17  ;;  %2527 = vmatpush.bf16.msra.mxu1 %v4358_v20  ;;  %v4835_v17 = vld [vmem:[#allocation6 + $0x6e0] sm:$0xf0] }
 0x179   :  { %2541 = vmatpush.bf16.msra.mxu2 %v4614_v7  ;;  %2555 = vmatpush.bf16.msra.mxu3 %v4870_v10  ;;  %v4838_v18 = vor.u32 %v5547_v14, %v4835_v17  ;;  %v4457_v10 = vld [vmem:[#allocation6 + $0x3c8] sm:$0xf] }
 0x17c   :  { %2514 = vmatpush.bf16.msra.mxu0 %v4070_v29  ;;  %2528 = vmatpush.bf16.msra.mxu1 %v4326_v33  ;;  %v5531_v33 = vld [vmem:[#allocation6 + $0x644] sm:$0xf] }
 0x17d   :  { %2542 = vmatpush.bf16.msra.mxu2 %v4582_v15  ;;  %2556 = vmatpush.bf16.msra.mxu3 %v4838_v18  ;;  %v4774_v38 = vor.u32 %v5531_v33, %v4771_v37  ;;  %v4202_v18 = vor.u32 %v5392_v5, %v4201_v4  ;;  %v4969_v4 = vld [vmem:[#allocation6 + $0x7c8] sm:$0xf] }
 0x17e   :  { %v5584_v5 = vld [vmem:[#allocation6 + $0x7e4] sm:$0xf0] }
 0x180   :  { %2515 = vmatpush.bf16.msra.mxu0 %v4038_v42  ;;  %2529 = vmatpush.bf16.msra.mxu1 %v4294_v46  ;;  %v4483_v42 = vld [vmem:[#allocation6 + $0x420] sm:$0xf0] }
 0x181   :  { %2543 = vmatpush.bf16.msra.mxu2 %v4550_v25  ;;  %2557 = vmatpush.bf16.msra.mxu3 %v4806_v27  ;;  %v4486_v45 = vor.u32 %v5459_v41, %v4483_v42  ;;  %v4739_v46 = vld [vmem:[#allocation6 + $0x620] sm:$0xf0]  ;;  %v4425_v25 = vld [vmem:[#allocation6 + $0x388] sm:$0xf] }
 0x182   :  { %v4742_v48 = vor.u32 %v5523_v43, %v4739_v46  ;;  %v4426_v31 = vor.u32 %v5448_v26, %v4425_v25  ;;  %v5344_v25 = vld [vmem:[#allocation6 + $0x64] sm:$0xf0] }
 0x184   :  { %2516 = vmatpush.bf16.msra.mxu0 %v4006_v53  ;;  %2530 = vmatpush.bf16.msra.mxu1 %v4262_v57 }
 0x185   :  { %2544 = vmatpush.bf16.msra.mxu2 %v4518_v36  ;;  %2558 = vmatpush.bf16.msra.mxu3 %v4774_v38  ;;  %v5440_v36 = vld [vmem:[#allocation6 + $0x364] sm:$0xf0] }
 0x188   :  { %2517 = vmatpush.bf16.msra.mxu0 %v3974_v2  ;;  %2531 = vmatpush.bf16.msra.mxu1 %v4230_v6 }
 0x189   :  { %2545 = vmatpush.bf16.msra.mxu2 %v4486_v45  ;;  %2559 = vmatpush.bf16.msra.mxu3 %v4742_v48  ;;  %v4105_v45 = vld [vmem:[#allocation6 + $0x108] sm:$0xf] }
 0x18a   :  { %v4361_v48 = vld [vmem:[#allocation6 + $0x308] sm:$0xf] }
 0x1c7   :  { %v753_v16 = vpop.f32.mrf.mxu0  ;;  %v767_v20 = vpop.f32.mrf.mxu1 }
 0x1c8   :  { %v754_v28 = vadd.f32 %v753_v16, %v416_v19 }
 0x1ca   :  { %v768_v40 = vadd.f32 %v767_v20, %v754_v28  ;;  %v4169_v20 = vld [vmem:[#allocation6 + $0x188] sm:$0xf] }
 0x1ce   :  { %v781_v29 = vpop.f32.mrf.mxu2  ;;  %v795_v30 = vpop.f32.mrf.mxu3 }
 0x1cf   :  { %v782_v34 = vadd.f32 %v781_v29, %v417_v24  ;;  %v755_v35 = vpop.f32.mrf.mxu0  ;;  %v769_v44 = vpop.f32.mrf.mxu1 }
 0x1d0   :  { %v756_v49 = vadd.f32 %v755_v35, %v416_v19  ;;  %v4458_v19 = vor.u32 %v5456_v12, %v4457_v10  ;;  %v4393_v35 = vld [vmem:[#allocation6 + $0x348] sm:$0xf] }
 0x1d1   :  { %v796_v39 = vadd.f32 %v795_v30, %v782_v34  ;;  %v5376_v34 = vld [vmem:[#allocation6 + $0x164] sm:$0xf0] }
 0x1d2   :  { %v770_v56 = vadd.f32 %v769_v44, %v756_v49  ;;  %v4138_v43 = vor.u32 %v5376_v34, %v4137_v32  ;;  %v4394_v44 = vor.u32 %v5440_v36, %v4393_v35  ;;  %v5432_v49 = vld [vmem:[#allocation6 + $0x324] sm:$0xf0] }
 0x1d3   :  { %v856_v47 = vpack.c.bf16 %v796_v39, %v768_v40  ;;  %v4041_v10 = vld [vmem:[#allocation6 + $0x88] sm:$0xf] }
 0x1d4   :  { %v5352_v12 = vld [vmem:[#allocation6 + $0xa4] sm:$0xf0] }
 0x1d5   :  { %v860_v53 = vunpack.c.l.bf16 %v856_v47  ;;  %v861_v55 = vunpack.c.h.bf16 %v856_v47  ;;  %v5368_v47 = vld [vmem:[#allocation6 + $0x124] sm:$0xf0] }
 0x1d6   :  { %v783_v50 = vpop.f32.mrf.mxu2  ;;  %v797_v51 = vpop.f32.mrf.mxu3  ;;  %v4905_v32 = vld [vmem:[#allocation6 + $0x748] sm:$0xf] }
 0x1d7   :  { %v784_v52 = vadd.f32 %v783_v50, %v417_v24  ;;  %v809_v54 = vpop.f32.mrf.mxu0  ;;  %v868_v61 = vmul.f32 0.20019531, %v860_v53  ;;  %v869_v62 = vmul.f32 0.20019531, %v861_v55  ;;  %v823_v1 = vpop.f32.mrf.mxu1  ;;  %v5384_v24 = vld [vmem:[#allocation6 + $0x1a4] sm:$0xf0] }
 0x1d8   :  { %v810_v8 = vadd.f32 %v809_v54, %v418_v59  ;;  %v4170_v30 = vor.u32 %v5384_v24, %v4169_v20  ;;  %v4106_v54 = vor.u32 %v5368_v47, %v4105_v45  ;;  %v4042_v20 = vor.u32 %v5352_v12, %v4041_v10  ;;  %v4009_v24 = vld [vmem:[#allocation6 + $0x48] sm:$0xf]  ;;  %v4203_v47 = vld [vmem:[#allocation6 + $0x1e8] sm:$0xf0] }
 0x1d9   :  { %v798_v57 = vadd.f32 %v797_v51, %v784_v52  ;;  %v888_v13 = vmax.f32 %v860_v53, %v868_v61  ;;  %v889_v14 = vmax.f32 %v861_v55, %v869_v62  ;;  %v4362_v55 = vor.u32 %v5432_v49, %v4361_v48  ;;  %v5424_v61 = vld [vmem:[#allocation6 + $0x2e4] sm:$0xf0]  ;;  %v5452_v48 = vld [vmem:[#allocation6 + $0x3cc] sm:$0xf] }
 0x1da   :  { %v824_v23 = vadd.f32 %v823_v1, %v810_v8  ;;  %v4713_v62 = vld [vmem:[#allocation6 + $0x5c8] sm:$0xf]  ;;  %v4010_v34 = vor.u32 %v5344_v25, %v4009_v24  ;;  %v4459_v49 = vld [vmem:[#allocation6 + $0x3e8] sm:$0xf0] }
 0x1db   :  { %v858_v58 = vpack.c.bf16 %v798_v57, %v770_v56  ;;  %v3977_v36 = vld [vmem:[#allocation6 + $0x8] sm:$0xf]  ;;  %v5372_v10 = vld [vmem:[#allocation6 + $0x14c] sm:$0xf] }
 0x1dc   :  { %v5560_v45 = vld [vmem:[#allocation6 + $0x724] sm:$0xf0]  ;;  %v4139_v12 = vld [vmem:[#allocation6 + $0x168] sm:$0xf0] }
 0x1dd   :  { %v864_v63 = vunpack.c.l.bf16 %v858_v58  ;;  %v865_v0 = vunpack.c.h.bf16 %v858_v58  ;;  %v4073_v58 = vld [vmem:[#allocation6 + $0xc8] sm:$0xf]  ;;  %v5364_v24 = vld [vmem:[#allocation6 + $0x10c] sm:$0xf] }
 0x1de   :  { %v837_v2 = vpop.f32.mrf.mxu2  ;;  %v851_v3 = vpop.f32.mrf.mxu3  ;;  %v4107_v25 = vld [vmem:[#allocation6 + $0x128] sm:$0xf0] }
 0x1df   :  { %v872_v6 = vmul.f32 0.20019531, %v864_v63  ;;  %v873_v7 = vmul.f32 0.20019531, %v865_v0  ;;  %v838_v9 = vadd.f32 %v837_v2, %v419_v60  ;;  %v811_v17 = vpop.f32.mrf.mxu0  ;;  %v825_v37 = vpop.f32.mrf.mxu1 }
 0x1e0   :  { %v812_v28 = vadd.f32 %v811_v17, %v418_v59  ;;  %v5360_v59 = vld [vmem:[#allocation6 + $0xe4] sm:$0xf0] }
 0x1e1   :  { %v892_v16 = vmax.f32 %v864_v63, %v872_v6  ;;  %v893_v15 = vmax.f32 %v865_v0, %v873_v7  ;;  %v852_v11 = vadd.f32 %v851_v3, %v838_v9  ;;  %v5520_v3 = vld [vmem:[#allocation6 + $0x5e4] sm:$0xf0]  ;;  %v4074_v8 = vor.u32 %v5360_v59, %v4073_v58 }
 0x1e2   :  { %v826_v41 = vadd.f32 %v825_v37, %v812_v28  ;;  %v5512_v17 = vld [vmem:[#allocation6 + $0x5a4] sm:$0xf0] }
 0x1e3   :  { %v5915_v21 = vpack.c.bf16 %v892_v16, %v888_v13  ;;  %v5917_v22 = vpack.c.bf16 %v893_v15, %v889_v14  ;;  %v857_v27 = vpack.c.bf16 %v852_v11, %v824_v23  ;;  %v4714_v13 = vor.u32 %v5520_v3, %v4713_v62  ;;  %v4297_v16 = vld [vmem:[#allocation6 + $0x288] sm:$0xf]  ;;  %v5444_v62 = vld [vmem:[#allocation6 + $0x38c] sm:$0xf] }
 0x1e4   :  { %v4970_v14 = vor.u32 %v5584_v5, %v4969_v4  ;;  %v5416_v15 = vld [vmem:[#allocation6 + $0x2a4] sm:$0xf0] }
 0x1e5   :  { %2462 = vmatmul.bf16.vlgmr.msrb.gmra.mxu0 %v5915_v21  ;;  %2476 = vmatmul.bf16.vlgmr.msrb.gmra.mxu1 %v5917_v22  ;;  %v862_v39 = vunpack.c.l.bf16 %v857_v27  ;;  %v863_v40 = vunpack.c.h.bf16 %v857_v27  ;;  %v4681_v11 = vld [vmem:[#allocation6 + $0x588] sm:$0xf]  ;;  %v4298_v23 = vor.u32 %v5416_v15, %v4297_v16 }
 0x1e6   :  { %2566 = vmatpush.bf16.msrb.mxu0 %v4202_v18  ;;  %2580 = vmatpush.bf16.msrb.mxu1 %v4458_v19  ;;  %v839_v29 = vpop.f32.mrf.mxu2  ;;  %v853_v38 = vpop.f32.mrf.mxu3  ;;  %v4937_v18 = vld [vmem:[#allocation6 + $0x788] sm:$0xf]  ;;  %v4682_v26 = vor.u32 %v5512_v17, %v4681_v11 }
 0x1e7   :  { %v840_v33 = vadd.f32 %v839_v29, %v419_v60  ;;  %v870_v50 = vmul.f32 0.20019531, %v862_v39  ;;  %v871_v51 = vmul.f32 0.20019531, %v863_v40  ;;  %v4329_v60 = vld [vmem:[#allocation6 + $0x2c8] sm:$0xf] }
 0x1e8   :  { %v4330_v9 = vor.u32 %v5424_v61, %v4329_v60  ;;  %v5576_v19 = vld [vmem:[#allocation6 + $0x7a4] sm:$0xf0]  ;;  %v5380_v60 = vld [vmem:[#allocation6 + $0x18c] sm:$0xf] }
 0x1e9   :  { %v854_v42 = vadd.f32 %v853_v38, %v840_v33  ;;  %v890_v63 = vmax.f32 %v862_v39, %v870_v50  ;;  %v891_v0 = vmax.f32 %v863_v40, %v871_v51  ;;  %v4938_v27 = vor.u32 %v5576_v19, %v4937_v18  ;;  %v4265_v28 = vld [vmem:[#allocation6 + $0x248] sm:$0xf]  ;;  %v4171_v61 = vld [vmem:[#allocation6 + $0x1a8] sm:$0xf0] }
 0x1ea   :  { %2567 = vmatpush.bf16.msrb.mxu0 %v4170_v30  ;;  %2581 = vmatpush.bf16.msrb.mxu1 %v4426_v31  ;;  %v5408_v29 = vld [vmem:[#allocation6 + $0x264] sm:$0xf0]  ;;  %v4174_v4 = vor.u32 %v5380_v60, %v4171_v61  ;;  %v4142_v18 = vor.u32 %v5372_v10, %v4139_v12  ;;  %v5340_v60 = vld [vmem:[#allocation6 + $0x4c] sm:$0xf] }
 0x1eb   :  { %v859_v46 = vpack.c.bf16 %v854_v42, %v826_v41  ;;  %v4649_v30 = vld [vmem:[#allocation6 + $0x548] sm:$0xf]  ;;  %v4266_v35 = vor.u32 %v5408_v29, %v4265_v28  ;;  %v4011_v61 = vld [vmem:[#allocation6 + $0x68] sm:$0xf0] }
 0x1ec   :  { %v5504_v31 = vld [vmem:[#allocation6 + $0x564] sm:$0xf0]  ;;  %v5332_v10 = vld [vmem:[#allocation6 + $0xc] sm:$0xf] }
 0x1ed   :  { %v866_v52 = vunpack.c.l.bf16 %v859_v46  ;;  %v867_v53 = vunpack.c.h.bf16 %v859_v46  ;;  %v5568_v33 = vld [vmem:[#allocation6 + $0x764] sm:$0xf0]  ;;  %v4650_v39 = vor.u32 %v5504_v31, %v4649_v30  ;;  %v5388_v46 = vld [vmem:[#allocation6 + $0x1cc] sm:$0xf] }
 0x1ee   :  { %2568 = vmatpush.bf16.msrb.mxu0 %v4138_v43  ;;  %2582 = vmatpush.bf16.msrb.mxu1 %v4394_v44  ;;  %v5336_v37 = vld [vmem:[#allocation6 + $0x24] sm:$0xf0]  ;;  %v4906_v40 = vor.u32 %v5568_v33, %v4905_v32  ;;  %v4110_v33 = vor.u32 %v5364_v24, %v4107_v25  ;;  %v3979_v12 = vld [vmem:[#allocation6 + $0x28] sm:$0xf0]  ;;  %v4465_v24 = vld [vmem:[#allocation6 + $0x3d0] sm:$0xf] }
 0x1ef   :  { %v874_v56 = vmul.f32 0.20019531, %v866_v52  ;;  %v875_v57 = vmul.f32 0.20019531, %v867_v53  ;;  %v4233_v38 = vld [vmem:[#allocation6 + $0x208] sm:$0xf]  ;;  %v3978_v50 = vor.u32 %v5336_v37, %v3977_v36  ;;  %v5356_v36 = vld [vmem:[#allocation6 + $0xcc] sm:$0xf] }
 0x1f0   :  { %v5400_v41 = vld [vmem:[#allocation6 + $0x224] sm:$0xf0]  ;;  %v4075_v37 = vld [vmem:[#allocation6 + $0xe8] sm:$0xf0]  ;;  %v5457_v25 = vld [vmem:[#allocation6 + $0x3ec] sm:$0xf0] }
 0x1f1   :  { %v894_v1 = vmax.f32 %v866_v52, %v874_v56  ;;  %v895_v2 = vmax.f32 %v867_v53, %v875_v57  ;;  %v4617_v42 = vld [vmem:[#allocation6 + $0x508] sm:$0xf]  ;;  %v4234_v51 = vor.u32 %v5400_v41, %v4233_v38  ;;  %v4206_v56 = vor.u32 %v5388_v46, %v4203_v47  ;;  %v5420_v38 = vld [vmem:[#allocation6 + $0x2cc] sm:$0xf] }
 0x1f2   :  { %2569 = vmatpush.bf16.msrb.mxu0 %v4106_v54  ;;  %2583 = vmatpush.bf16.msrb.mxu1 %v4362_v55  ;;  %v5496_v43 = vld [vmem:[#allocation6 + $0x524] sm:$0xf0]  ;;  %v4462_v57 = vor.u32 %v5452_v48, %v4459_v49  ;;  %v4715_v41 = vld [vmem:[#allocation6 + $0x5e8] sm:$0xf0]  ;;  %v4078_v46 = vor.u32 %v5356_v36, %v4075_v37  ;;  %v4177_v36 = vld [vmem:[#allocation6 + $0x190] sm:$0xf] }
 0x1f3   :  { %v5921_v6 = vpack.c.bf16 %v894_v1, %v890_v63  ;;  %v5923_v7 = vpack.c.bf16 %v895_v2, %v891_v0  ;;  %v4873_v44 = vld [vmem:[#allocation6 + $0x708] sm:$0xf]  ;;  %v4618_v52 = vor.u32 %v5496_v43, %v4617_v42  ;;  %v4427_v63 = vld [vmem:[#allocation6 + $0x3a8] sm:$0xf0]  ;;  %v5385_v37 = vld [vmem:[#allocation6 + $0x1ac] sm:$0xf0] }
 0x1f4   :  { %v4874_v53 = vor.u32 %v5560_v45, %v4873_v44  ;;  %v4585_v54 = vld [vmem:[#allocation6 + $0x4c8] sm:$0xf]  ;;  %v4430_v5 = vor.u32 %v5444_v62, %v4427_v63  ;;  %v5580_v42 = vld [vmem:[#allocation6 + $0x7cc] sm:$0xf] }
 0x1f5   :  { %2490 = vmatmul.bf16.vlgmr.msrb.gmra.mxu2 %v5921_v6  ;;  %2504 = vmatmul.bf16.vlgmr.msrb.gmra.mxu3 %v5923_v7  ;;  %v5488_v55 = vld [vmem:[#allocation6 + $0x4e4] sm:$0xf0]  ;;  %v4971_v43 = vld [vmem:[#allocation6 + $0x7e8] sm:$0xf0] }
 0x1f6   :  { %2518 = vmatmul.bf16.vlgmr.msra.gmra.mxu0 %v5915_v21  ;;  %2532 = vmatmul.bf16.vlgmr.msra.gmra.mxu1 %v5917_v22  ;;  %v4841_v58 = vld [vmem:[#allocation6 + $0x6c8] sm:$0xf]  ;;  %v4586_v0 = vor.u32 %v5488_v55, %v4585_v54  ;;  %v5348_v48 = vld [vmem:[#allocation6 + $0x8c] sm:$0xf] }
 0x1f7   :  { %2570 = vmatpush.bf16.msrb.mxu0 %v4074_v8  ;;  %2584 = vmatpush.bf16.msrb.mxu1 %v4330_v9  ;;  %v5552_v59 = vld [vmem:[#allocation6 + $0x6e4] sm:$0xf0]  ;;  %v4043_v49 = vld [vmem:[#allocation6 + $0xa8] sm:$0xf0] }
 0x1f8   :  { %2594 = vmatpush.bf16.msrb.mxu2 %v4714_v13  ;;  %2608 = vmatpush.bf16.msrb.mxu3 %v4970_v14  ;;  %v4842_v1 = vor.u32 %v5552_v59, %v4841_v58  ;;  %v4553_v2 = vld [vmem:[#allocation6 + $0x488] sm:$0xf]  ;;  %v5436_v13 = vld [vmem:[#allocation6 + $0x34c] sm:$0xf]  ;;  %v4046_v58 = vor.u32 %v5348_v48, %v4043_v49  ;;  %v4145_v48 = vld [vmem:[#allocation6 + $0x150] sm:$0xf] }
 0x1f9   :  { %v5480_v3 = vld [vmem:[#allocation6 + $0x4a4] sm:$0xf0]  ;;  %v4395_v14 = vld [vmem:[#allocation6 + $0x368] sm:$0xf0]  ;;  %v5377_v49 = vld [vmem:[#allocation6 + $0x16c] sm:$0xf0] }
 0x1fa   :  { %v4809_v8 = vld [vmem:[#allocation6 + $0x688] sm:$0xf]  ;;  %v4554_v16 = vor.u32 %v5480_v3, %v4553_v2  ;;  %v4398_v19 = vor.u32 %v5436_v13, %v4395_v14  ;;  %v5508_v54 = vld [vmem:[#allocation6 + $0x58c] sm:$0xf] }
 0x1fb   :  { %2571 = vmatpush.bf16.msrb.mxu0 %v4042_v20  ;;  %2585 = vmatpush.bf16.msrb.mxu1 %v4298_v23  ;;  %v5544_v9 = vld [vmem:[#allocation6 + $0x6a4] sm:$0xf0]  ;;  %v4683_v55 = vld [vmem:[#allocation6 + $0x5a8] sm:$0xf0] }
 0x1fc   :  { %2595 = vmatpush.bf16.msrb.mxu2 %v4682_v26  ;;  %2609 = vmatpush.bf16.msrb.mxu3 %v4938_v27  ;;  %v4810_v15 = vor.u32 %v5544_v9, %v4809_v8  ;;  %v4521_v11 = vld [vmem:[#allocation6 + $0x448] sm:$0xf]  ;;  %v5428_v26 = vld [vmem:[#allocation6 + $0x30c] sm:$0xf]  ;;  %v4686_v62 = vor.u32 %v5508_v54, %v4683_v55  ;;  %v4014_v8 = vor.u32 %v5340_v60, %v4011_v61  ;;  %v4113_v60 = vld [vmem:[#allocation6 + $0x110] sm:$0xf] }
 0x1fd   :  { %v5472_v17 = vld [vmem:[#allocation6 + $0x464] sm:$0xf0]  ;;  %v4363_v27 = vld [vmem:[#allocation6 + $0x328] sm:$0xf0]  ;;  %v5369_v61 = vld [vmem:[#allocation6 + $0x12c] sm:$0xf0] }
 0x1fe   :  { %v4777_v20 = vld [vmem:[#allocation6 + $0x648] sm:$0xf]  ;;  %v4522_v28 = vor.u32 %v5472_v17, %v4521_v11  ;;  %v5500_v2 = vld [vmem:[#allocation6 + $0x54c] sm:$0xf] }
 0x1ff   :  { %2572 = vmatpush.bf16.msrb.mxu0 %v4010_v34  ;;  %2586 = vmatpush.bf16.msrb.mxu1 %v4266_v35  ;;  %v5536_v23 = vld [vmem:[#allocation6 + $0x664] sm:$0xf0]  ;;  %v4366_v34 = vor.u32 %v5428_v26, %v4363_v27  ;;  %v4651_v3 = vld [vmem:[#allocation6 + $0x568] sm:$0xf0]  ;;  %v3982_v26 = vor.u32 %v5332_v10, %v3979_v12  ;;  %v4081_v10 = vld [vmem:[#allocation6 + $0xd0] sm:$0xf] }
 0x200   :  { %2596 = vmatpush.bf16.msrb.mxu2 %v4650_v39  ;;  %2610 = vmatpush.bf16.msrb.mxu3 %v4906_v40  ;;  %v4778_v29 = vor.u32 %v5536_v23, %v4777_v20  ;;  %v4489_v30 = vld [vmem:[#allocation6 + $0x408] sm:$0xf]  ;;  %v4331_v39 = vld [vmem:[#allocation6 + $0x2e8] sm:$0xf0]  ;;  %v4654_v14 = vor.u32 %v5500_v2, %v4651_v3  ;;  %v4209_v20 = vld [vmem:[#allocation6 + $0x1d0] sm:$0xf] }
 0x201   :  { %v5464_v31 = vld [vmem:[#allocation6 + $0x424] sm:$0xf0]  ;;  %v5516_v40 = vld [vmem:[#allocation6 + $0x5cc] sm:$0xf]  ;;  %v4334_v47 = vor.u32 %v5420_v38, %v4331_v39  ;;  %v5393_v23 = vld [vmem:[#allocation6 + $0x1ec] sm:$0xf0] }
 0x202   :  { %v4745_v32 = vld [vmem:[#allocation6 + $0x608] sm:$0xf]  ;;  %v4490_v44 = vor.u32 %v5464_v31, %v4489_v30  ;;  %v5396_v13 = vld [vmem:[#allocation6 + $0x20c] sm:$0xf]  ;;  %v4433_v38 = vld [vmem:[#allocation6 + $0x390] sm:$0xf] }
 0x203   :  { %2573 = vmatpush.bf16.msrb.mxu0 %v3978_v50  ;;  %2587 = vmatpush.bf16.msrb.mxu1 %v4234_v51  ;;  %v5528_v35 = vld [vmem:[#allocation6 + $0x624] sm:$0xf0]  ;;  %v4718_v50 = vor.u32 %v5516_v40, %v4715_v41  ;;  %v4974_v51 = vor.u32 %v5580_v42, %v4971_v43  ;;  %v5492_v11 = vld [vmem:[#allocation6 + $0x50c] sm:$0xf]  ;;  %v5449_v39 = vld [vmem:[#allocation6 + $0x3ac] sm:$0xf0] }
 0x204   :  { %2597 = vmatpush.bf16.msrb.mxu2 %v4618_v52  ;;  %2611 = vmatpush.bf16.msrb.mxu3 %v4874_v53  ;;  %v4746_v45 = vor.u32 %v5528_v35, %v4745_v32  ;;  %v5412_v52 = vld [vmem:[#allocation6 + $0x28c] sm:$0xf]  ;;  %v4210_v32 = vor.u32 %v5393_v23, %v4209_v20  ;;  %v5361_v12 = vld [vmem:[#allocation6 + $0xec] sm:$0xf0] }
 0x205   :  { %2546 = vmatmul.bf16.vlgmr.msra.gmra.mxu2 %v5921_v6  ;;  %2560 = vmatmul.bf16.vlgmr.msra.gmra.mxu3 %v5923_v7  ;;  %v4299_v53 = vld [vmem:[#allocation6 + $0x2a8] sm:$0xf0]  ;;  %v4082_v20 = vor.u32 %v5361_v12, %v4081_v10  ;;  %v5381_v10 = vld [vmem:[#allocation6 + $0x194] sm:$0xf] }
 0x206   :  { %2574 = vmatmul.bf16.vlgmr.msrb.gmra.mxu0 %v5915_v21  ;;  %2588 = vmatmul.bf16.vlgmr.msrb.gmra.mxu1 %v5917_v22  ;;  %v4302_v59 = vor.u32 %v5412_v52, %v4299_v53  ;;  %v4619_v17 = vld [vmem:[#allocation6 + $0x528] sm:$0xf0]  ;;  %v4179_v12 = vld [vmem:[#allocation6 + $0x1b0] sm:$0xf0] }
 0x207   :  { %2622 = vmatpush.bf16.msra.mxu0 %v4206_v56  ;;  %2636 = vmatpush.bf16.msra.mxu1 %v4462_v57  ;;  %v5572_v56 = vld [vmem:[#allocation6 + $0x78c] sm:$0xf] }
 0x208   :  { %2598 = vmatpush.bf16.msrb.mxu2 %v4586_v0  ;;  %2612 = vmatpush.bf16.msrb.mxu3 %v4842_v1  ;;  %v4939_v57 = vld [vmem:[#allocation6 + $0x7a8] sm:$0xf0] }
 0x209   :  { %v4942_v63 = vor.u32 %v5572_v56, %v4939_v57  ;;  %v5404_v0 = vld [vmem:[#allocation6 + $0x24c] sm:$0xf]  ;;  %v4146_v56 = vor.u32 %v5377_v49, %v4145_v48  ;;  %v3985_v48 = vld [vmem:[#allocation6 + $0x10] sm:$0xf] }
 0x20a   :  { %v4267_v1 = vld [vmem:[#allocation6 + $0x268] sm:$0xf0]  ;;  %v5337_v49 = vld [vmem:[#allocation6 + $0x2c] sm:$0xf0] }
 0x20b   :  { %2623 = vmatpush.bf16.msra.mxu0 %v4174_v4  ;;  %2637 = vmatpush.bf16.msra.mxu1 %v4430_v5  ;;  %v5564_v4 = vld [vmem:[#allocation6 + $0x74c] sm:$0xf]  ;;  %v4270_v9 = vor.u32 %v5404_v0, %v4267_v1 }
 0x20c   :  { %2599 = vmatpush.bf16.msrb.mxu2 %v4554_v16  ;;  %2613 = vmatpush.bf16.msrb.mxu3 %v4810_v15  ;;  %v4907_v5 = vld [vmem:[#allocation6 + $0x768] sm:$0xf0] }
 0x20d   :  { %v4910_v16 = vor.u32 %v5564_v4, %v4907_v5  ;;  %v4235_v15 = vld [vmem:[#allocation6 + $0x228] sm:$0xf0]  ;;  %v4114_v5 = vor.u32 %v5369_v61, %v4113_v60  ;;  %v5453_v60 = vld [vmem:[#allocation6 + $0x3d4] sm:$0xf] }
 0x20e   :  { %v4238_v27 = vor.u32 %v5396_v13, %v4235_v15  ;;  %v5484_v30 = vld [vmem:[#allocation6 + $0x4cc] sm:$0xf]  ;;  %v4337_v13 = vld [vmem:[#allocation6 + $0x2d0] sm:$0xf]  ;;  %v4467_v61 = vld [vmem:[#allocation6 + $0x3f0] sm:$0xf0] }
 0x20f   :  { %2624 = vmatpush.bf16.msra.mxu0 %v4142_v18  ;;  %2638 = vmatpush.bf16.msra.mxu1 %v4398_v19  ;;  %v5556_v18 = vld [vmem:[#allocation6 + $0x70c] sm:$0xf]  ;;  %v5521_v15 = vld [vmem:[#allocation6 + $0x5ec] sm:$0xf0] }
 0x210   :  { %2600 = vmatpush.bf16.msrb.mxu2 %v4522_v28  ;;  %2614 = vmatpush.bf16.msrb.mxu3 %v4778_v29  ;;  %v4875_v19 = vld [vmem:[#allocation6 + $0x728] sm:$0xf0]  ;;  %v4622_v28 = vor.u32 %v5492_v11, %v4619_v17  ;;  %v4977_v11 = vld [vmem:[#allocation6 + $0x7d0] sm:$0xf] }
 0x211   :  { %v4878_v29 = vor.u32 %v5556_v18, %v4875_v19  ;;  %v4587_v31 = vld [vmem:[#allocation6 + $0x4e8] sm:$0xf0]  ;;  %v5585_v17 = vld [vmem:[#allocation6 + $0x7ec] sm:$0xf0] }
 0x212   :  { %v4843_v35 = vld [vmem:[#allocation6 + $0x6e8] sm:$0xf0]  ;;  %v4590_v40 = vor.u32 %v5484_v30, %v4587_v31  ;;  %v4689_v30 = vld [vmem:[#allocation6 + $0x590] sm:$0xf] }
 0x213   :  { %2625 = vmatpush.bf16.msra.mxu0 %v4110_v33  ;;  %2639 = vmatpush.bf16.msra.mxu1 %v4366_v34  ;;  %v4466_v33 = vor.u32 %v5457_v25, %v4465_v24  ;;  %v5548_v34 = vld [vmem:[#allocation6 + $0x6cc] sm:$0xf]  ;;  %v4049_v24 = vld [vmem:[#allocation6 + $0x90] sm:$0xf] }
 0x214   :  { %2601 = vmatpush.bf16.msrb.mxu2 %v4490_v44  ;;  %2615 = vmatpush.bf16.msrb.mxu3 %v4746_v45  ;;  %v4846_v41 = vor.u32 %v5548_v34, %v4843_v35  ;;  %v5476_v42 = vld [vmem:[#allocation6 + $0x48c] sm:$0xf]  ;;  %v4178_v44 = vor.u32 %v5385_v37, %v4177_v36  ;;  %v4434_v45 = vor.u32 %v5449_v39, %v4433_v38  ;;  %v5353_v25 = vld [vmem:[#allocation6 + $0xac] sm:$0xf0] }
 0x215   :  { %v4555_v43 = vld [vmem:[#allocation6 + $0x4a8] sm:$0xf0]  ;;  %v5513_v31 = vld [vmem:[#allocation6 + $0x5ac] sm:$0xf0]  ;;  %v4050_v34 = vor.u32 %v5353_v25, %v4049_v24  ;;  %v5373_v24 = vld [vmem:[#allocation6 + $0x154] sm:$0xf] }
 0x216   :  { %v4558_v52 = vor.u32 %v5476_v42, %v4555_v43  ;;  %v5468_v54 = vld [vmem:[#allocation6 + $0x44c] sm:$0xf]  ;;  %v4017_v36 = vld [vmem:[#allocation6 + $0x50] sm:$0xf]  ;;  %v4690_v38 = vor.u32 %v5513_v31, %v4689_v30  ;;  %v4147_v25 = vld [vmem:[#allocation6 + $0x170] sm:$0xf0] }
 0x217   :  { %2626 = vmatpush.bf16.msra.mxu0 %v4078_v46  ;;  %2640 = vmatpush.bf16.msra.mxu1 %v4334_v47  ;;  %v5540_v46 = vld [vmem:[#allocation6 + $0x68c] sm:$0xf]  ;;  %v5345_v37 = vld [vmem:[#allocation6 + $0x6c] sm:$0xf0] }
 0x218   :  { %2650 = vmatpush.bf16.msra.mxu2 %v4718_v50  ;;  %2664 = vmatpush.bf16.msra.mxu3 %v4974_v51  ;;  %v4811_v47 = vld [vmem:[#allocation6 + $0x6a8] sm:$0xf0]  ;;  %v4401_v50 = vld [vmem:[#allocation6 + $0x350] sm:$0xf] }
 0x219   :  { %2602 = vmatmul.bf16.vlgmr.msrb.gmra.mxu2 %v5921_v6  ;;  %2616 = vmatmul.bf16.vlgmr.msrb.gmra.mxu3 %v5923_v7  ;;  %v5441_v51 = vld [vmem:[#allocation6 + $0x36c] sm:$0xf0]  ;;  %v4814_v53 = vor.u32 %v5540_v46, %v4811_v47  ;;  %v4523_v55 = vld [vmem:[#allocation6 + $0x468] sm:$0xf0]  ;;  %v4018_v46 = vor.u32 %v5345_v37, %v4017_v36  ;;  %v5365_v36 = vld [vmem:[#allocation6 + $0x114] sm:$0xf] }
 0x21a   :  { %v4402_v57 = vor.u32 %v5441_v51, %v4401_v50  ;;  %v4526_v0 = vor.u32 %v5468_v54, %v4523_v55  ;;  %v5460_v2 = vld [vmem:[#allocation6 + $0x40c] sm:$0xf]  ;;  %v4657_v42 = vld [vmem:[#allocation6 + $0x550] sm:$0xf]  ;;  %v4115_v37 = vld [vmem:[#allocation6 + $0x130] sm:$0xf0] }
 0x21b   :  { %2627 = vmatpush.bf16.msra.mxu0 %v4046_v58  ;;  %2641 = vmatpush.bf16.msra.mxu1 %v4302_v59  ;;  %v5532_v58 = vld [vmem:[#allocation6 + $0x64c] sm:$0xf]  ;;  %v5505_v43 = vld [vmem:[#allocation6 + $0x56c] sm:$0xf0] }
 0x21c   :  { %2651 = vmatpush.bf16.msra.mxu2 %v4686_v62  ;;  %2665 = vmatpush.bf16.msra.mxu3 %v4942_v63  ;;  %v4779_v59 = vld [vmem:[#allocation6 + $0x668] sm:$0xf0]  ;;  %v4369_v62 = vld [vmem:[#allocation6 + $0x310] sm:$0xf]  ;;  %v4658_v51 = vor.u32 %v5505_v43, %v4657_v42 }
 0x21d   :  { %v5433_v63 = vld [vmem:[#allocation6 + $0x32c] sm:$0xf0]  ;;  %v4782_v1 = vor.u32 %v5532_v58, %v4779_v59  ;;  %v4491_v3 = vld [vmem:[#allocation6 + $0x428] sm:$0xf0]  ;;  %v5389_v58 = vld [vmem:[#allocation6 + $0x1d4] sm:$0xf] }
 0x21e   :  { %v5524_v4 = vld [vmem:[#allocation6 + $0x60c] sm:$0xf]  ;;  %v4494_v18 = vor.u32 %v5460_v2, %v4491_v3  ;;  %v4241_v50 = vld [vmem:[#allocation6 + $0x210] sm:$0xf]  ;;  %v4211_v59 = vld [vmem:[#allocation6 + $0x1f0] sm:$0xf0] }
 0x21f   :  { %2628 = vmatpush.bf16.msra.mxu0 %v4014_v8  ;;  %2642 = vmatpush.bf16.msra.mxu1 %v4270_v9  ;;  %v4370_v8 = vor.u32 %v5433_v63, %v4369_v62  ;;  %v4747_v9 = vld [vmem:[#allocation6 + $0x628] sm:$0xf0]  ;;  %v4625_v54 = vld [vmem:[#allocation6 + $0x510] sm:$0xf]  ;;  %v3986_v62 = vor.u32 %v5337_v49, %v3985_v48  ;;  %v5357_v48 = vld [vmem:[#allocation6 + $0xd4] sm:$0xf] }
 0x220   :  { %2652 = vmatpush.bf16.msra.mxu2 %v4654_v14  ;;  %2666 = vmatpush.bf16.msra.mxu3 %v4910_v16  ;;  %v5425_v14 = vld [vmem:[#allocation6 + $0x2ec] sm:$0xf0]  ;;  %v4750_v19 = vor.u32 %v5524_v4, %v4747_v9  ;;  %v4214_v4 = vor.u32 %v5389_v58, %v4211_v59  ;;  %v4083_v49 = vld [vmem:[#allocation6 + $0xf0] sm:$0xf0] }
 0x221   :  { %v4721_v16 = vld [vmem:[#allocation6 + $0x5d0] sm:$0xf]  ;;  %v4338_v23 = vor.u32 %v5425_v14, %v4337_v13  ;;  %v5445_v13 = vld [vmem:[#allocation6 + $0x394] sm:$0xf]  ;;  %v4086_v58 = vor.u32 %v5357_v48, %v4083_v49  ;;  %v4185_v48 = vld [vmem:[#allocation6 + $0x198] sm:$0xf] }
 0x222   :  { %v5497_v55 = vld [vmem:[#allocation6 + $0x52c] sm:$0xf0]  ;;  %v4435_v14 = vld [vmem:[#allocation6 + $0x3b0] sm:$0xf0]  ;;  %v5386_v49 = vld [vmem:[#allocation6 + $0x1b4] sm:$0xf0] }
 0x223   :  { %2629 = vmatpush.bf16.msra.mxu0 %v3982_v26  ;;  %2643 = vmatpush.bf16.msra.mxu1 %v4238_v27  ;;  %v4722_v26 = vor.u32 %v5521_v15, %v4721_v16  ;;  %v4978_v27 = vor.u32 %v5585_v17, %v4977_v11  ;;  %v4593_v2 = vld [vmem:[#allocation6 + $0x4d0] sm:$0xf] }
 0x224   :  { %2653 = vmatpush.bf16.msra.mxu2 %v4622_v28  ;;  %2667 = vmatpush.bf16.msra.mxu3 %v4878_v29  ;;  %v4305_v28 = vld [vmem:[#allocation6 + $0x290] sm:$0xf] }
 0x225   :  { %v5417_v29 = vld [vmem:[#allocation6 + $0x2ac] sm:$0xf0] }
 0x226   :  { %2630 = vmatmul.bf16.vlgmr.msra.gmra.mxu0 %v5915_v21  ;;  %2644 = vmatmul.bf16.vlgmr.msra.gmra.mxu1 %v5917_v22  ;;  %v4306_v35 = vor.u32 %v5417_v29, %v4305_v28  ;;  %v5489_v3 = vld [vmem:[#allocation6 + $0x4ec] sm:$0xf0] }
 0x227   :  { %2678 = vmatpush.bf16.msrb.mxu0 %v4210_v32  ;;  %2692 = vmatpush.bf16.msrb.mxu1 %v4466_v33  ;;  %v4945_v32 = vld [vmem:[#allocation6 + $0x790] sm:$0xf]  ;;  %v4594_v16 = vor.u32 %v5489_v3, %v4593_v2  ;;  %v5509_v2 = vld [vmem:[#allocation6 + $0x594] sm:$0xf] }
 0x228   :  { %2654 = vmatpush.bf16.msra.mxu2 %v4590_v40  ;;  %2668 = vmatpush.bf16.msra.mxu3 %v4846_v41  ;;  %v5577_v33 = vld [vmem:[#allocation6 + $0x7ac] sm:$0xf0]  ;;  %v4691_v3 = vld [vmem:[#allocation6 + $0x5b0] sm:$0xf0] }
 0x229   :  { %v4946_v39 = vor.u32 %v5577_v33, %v4945_v32  ;;  %v4273_v40 = vld [vmem:[#allocation6 + $0x250] sm:$0xf]  ;;  %v4150_v32 = vor.u32 %v5373_v24, %v4147_v25  ;;  %v5333_v24 = vld [vmem:[#allocation6 + $0x14] sm:$0xf] }
 0x22a   :  { %v5409_v41 = vld [vmem:[#allocation6 + $0x26c] sm:$0xf0]  ;;  %v3987_v25 = vld [vmem:[#allocation6 + $0x30] sm:$0xf0] }
 0x22b   :  { %2679 = vmatpush.bf16.msrb.mxu0 %v4178_v44  ;;  %2693 = vmatpush.bf16.msrb.mxu1 %v4434_v45  ;;  %v4913_v44 = vld [vmem:[#allocation6 + $0x750] sm:$0xf]  ;;  %v4274_v47 = vor.u32 %v5409_v41, %v4273_v40 }
 0x22c   :  { %2655 = vmatpush.bf16.msra.mxu2 %v4558_v52  ;;  %2669 = vmatpush.bf16.msra.mxu3 %v4814_v53  ;;  %v5569_v45 = vld [vmem:[#allocation6 + $0x76c] sm:$0xf0] }
 0x22d   :  { %v4914_v52 = vor.u32 %v5569_v45, %v4913_v44  ;;  %v5401_v53 = vld [vmem:[#allocation6 + $0x22c] sm:$0xf0]  ;;  %v4118_v45 = vor.u32 %v5365_v36, %v4115_v37  ;;  %v4473_v36 = vld [vmem:[#allocation6 + $0x3d8] sm:$0xf] }
 0x22e   :  { %v4242_v63 = vor.u32 %v5401_v53, %v4241_v50  ;;  %v5553_v9 = vld [vmem:[#allocation6 + $0x6ec] sm:$0xf0]  ;;  %v5421_v50 = vld [vmem:[#allocation6 + $0x2d4] sm:$0xf]  ;;  %v5458_v37 = vld [vmem:[#allocation6 + $0x3f4] sm:$0xf0] }
 0x22f   :  { %2680 = vmatpush.bf16.msrb.mxu0 %v4146_v56  ;;  %2694 = vmatpush.bf16.msrb.mxu1 %v4402_v57  ;;  %v4881_v56 = vld [vmem:[#allocation6 + $0x710] sm:$0xf]  ;;  %v4723_v53 = vld [vmem:[#allocation6 + $0x5f0] sm:$0xf0] }
 0x230   :  { %2656 = vmatpush.bf16.msra.mxu2 %v4526_v0  ;;  %2670 = vmatpush.bf16.msra.mxu3 %v4782_v1  ;;  %v5561_v57 = vld [vmem:[#allocation6 + $0x72c] sm:$0xf0]  ;;  %v4626_v0 = vor.u32 %v5497_v55, %v4625_v54  ;;  %v5581_v54 = vld [vmem:[#allocation6 + $0x7d4] sm:$0xf] }
 0x231   :  { %v4882_v1 = vor.u32 %v5561_v57, %v4881_v56  ;;  %v4561_v11 = vld [vmem:[#allocation6 + $0x490] sm:$0xf]  ;;  %v4979_v55 = vld [vmem:[#allocation6 + $0x7f0] sm:$0xf0] }
 0x232   :  { %v5481_v17 = vld [vmem:[#allocation6 + $0x4ac] sm:$0xf0] }
 0x233   :  { %2681 = vmatpush.bf16.msrb.mxu0 %v4114_v5  ;;  %2695 = vmatpush.bf16.msrb.mxu1 %v4370_v8  ;;  %v4470_v5 = vor.u32 %v5453_v60, %v4467_v61  ;;  %v4849_v8 = vld [vmem:[#allocation6 + $0x6d0] sm:$0xf]  ;;  %v4562_v28 = vor.u32 %v5481_v17, %v4561_v11  ;;  %v5349_v60 = vld [vmem:[#allocation6 + $0x94] sm:$0xf] }
 0x234   :  { %2657 = vmatpush.bf16.msra.mxu2 %v4494_v18  ;;  %2671 = vmatpush.bf16.msra.mxu3 %v4750_v19  ;;  %v4850_v15 = vor.u32 %v5553_v9, %v4849_v8  ;;  %v4182_v18 = vor.u32 %v5381_v10, %v4179_v12  ;;  %v4438_v19 = vor.u32 %v5445_v13, %v4435_v14  ;;  %v4529_v30 = vld [vmem:[#allocation6 + $0x450] sm:$0xf]  ;;  %v4051_v61 = vld [vmem:[#allocation6 + $0xb0] sm:$0xf0] }
 0x235   :  { %v5473_v31 = vld [vmem:[#allocation6 + $0x46c] sm:$0xf0]  ;;  %v4054_v8 = vor.u32 %v5349_v60, %v4051_v61  ;;  %v5341_v10 = vld [vmem:[#allocation6 + $0x54] sm:$0xf]  ;;  %v4694_v13 = vor.u32 %v5509_v2, %v4691_v3  ;;  %v4153_v60 = vld [vmem:[#allocation6 + $0x158] sm:$0xf] }
 0x236   :  { %v4530_v40 = vor.u32 %v5473_v31, %v4529_v30  ;;  %v4497_v42 = vld [vmem:[#allocation6 + $0x410] sm:$0xf]  ;;  %v4019_v12 = vld [vmem:[#allocation6 + $0x70] sm:$0xf0]  ;;  %v5378_v61 = vld [vmem:[#allocation6 + $0x174] sm:$0xf0] }
 0x237   :  { %2682 = vmatpush.bf16.msrb.mxu0 %v4082_v20  ;;  %2696 = vmatpush.bf16.msrb.mxu1 %v4338_v23  ;;  %v4817_v20 = vld [vmem:[#allocation6 + $0x690] sm:$0xf]  ;;  %v5501_v11 = vld [vmem:[#allocation6 + $0x554] sm:$0xf] }
 0x238   :  { %2706 = vmatpush.bf16.msrb.mxu2 %v4722_v26  ;;  %2720 = vmatpush.bf16.msrb.mxu3 %v4978_v27  ;;  %v5545_v23 = vld [vmem:[#allocation6 + $0x6ac] sm:$0xf0]  ;;  %v5437_v26 = vld [vmem:[#allocation6 + $0x354] sm:$0xf] }
 0x239   :  { %2658 = vmatmul.bf16.vlgmr.msra.gmra.mxu2 %v5921_v6  ;;  %2672 = vmatmul.bf16.vlgmr.msra.gmra.mxu3 %v5923_v7  ;;  %v4403_v27 = vld [vmem:[#allocation6 + $0x370] sm:$0xf0]  ;;  %v4818_v29 = vor.u32 %v5545_v23, %v4817_v20  ;;  %v5465_v43 = vld [vmem:[#allocation6 + $0x42c] sm:$0xf0]  ;;  %v4022_v20 = vor.u32 %v5341_v10, %v4019_v12  ;;  %v4121_v10 = vld [vmem:[#allocation6 + $0x118] sm:$0xf] }
 0x23a   :  { %v4406_v33 = vor.u32 %v5437_v26, %v4403_v27  ;;  %v4753_v44 = vld [vmem:[#allocation6 + $0x610] sm:$0xf]  ;;  %v4498_v56 = vor.u32 %v5465_v43, %v4497_v42  ;;  %v4659_v17 = vld [vmem:[#allocation6 + $0x570] sm:$0xf0]  ;;  %v5370_v12 = vld [vmem:[#allocation6 + $0x134] sm:$0xf0] }
 0x23b   :  { %2683 = vmatpush.bf16.msrb.mxu0 %v4050_v34  ;;  %2697 = vmatpush.bf16.msrb.mxu1 %v4306_v35  ;;  %v4785_v34 = vld [vmem:[#allocation6 + $0x650] sm:$0xf]  ;;  %v5397_v26 = vld [vmem:[#allocation6 + $0x214] sm:$0xf]  ;;  %v4662_v27 = vor.u32 %v5501_v11, %v4659_v17 }
 0x23c   :  { %2707 = vmatpush.bf16.msrb.mxu2 %v4690_v38  ;;  %2721 = vmatpush.bf16.msrb.mxu3 %v4946_v39  ;;  %v5537_v35 = vld [vmem:[#allocation6 + $0x66c] sm:$0xf0]  ;;  %v5429_v38 = vld [vmem:[#allocation6 + $0x314] sm:$0xf] }
 0x23d   :  { %v4371_v39 = vld [vmem:[#allocation6 + $0x330] sm:$0xf0]  ;;  %v4786_v41 = vor.u32 %v5537_v35, %v4785_v34  ;;  %v4217_v34 = vld [vmem:[#allocation6 + $0x1d8] sm:$0xf] }
 0x23e   :  { %v5493_v30 = vld [vmem:[#allocation6 + $0x514] sm:$0xf]  ;;  %v5394_v35 = vld [vmem:[#allocation6 + $0x1f4] sm:$0xf0] }
 0x23f   :  { %2684 = vmatpush.bf16.msrb.mxu0 %v4018_v46  ;;  %2698 = vmatpush.bf16.msrb.mxu1 %v4274_v47  ;;  %v4374_v46 = vor.u32 %v5429_v38, %v4371_v39  ;;  %v5529_v47 = vld [vmem:[#allocation6 + $0x62c] sm:$0xf0]  ;;  %v4627_v31 = vld [vmem:[#allocation6 + $0x530] sm:$0xf0]  ;;  %v3990_v38 = vor.u32 %v5333_v24, %v3987_v25  ;;  %v4089_v24 = vld [vmem:[#allocation6 + $0xd8] sm:$0xf] }
 0x240   :  { %2708 = vmatpush.bf16.msrb.mxu2 %v4658_v51  ;;  %2722 = vmatpush.bf16.msrb.mxu3 %v4914_v52  ;;  %v4339_v51 = vld [vmem:[#allocation6 + $0x2f0] sm:$0xf0]  ;;  %v4754_v57 = vor.u32 %v5529_v47, %v4753_v44  ;;  %v4218_v44 = vor.u32 %v5394_v35, %v4217_v34  ;;  %v5362_v25 = vld [vmem:[#allocation6 + $0xf4] sm:$0xf0] }
 0x241   :  { %v5517_v52 = vld [vmem:[#allocation6 + $0x5d4] sm:$0xf]  ;;  %v4342_v59 = vor.u32 %v5421_v50, %v4339_v51  ;;  %v4441_v50 = vld [vmem:[#allocation6 + $0x398] sm:$0xf]  ;;  %v4090_v34 = vor.u32 %v5362_v25, %v4089_v24  ;;  %v5382_v25 = vld [vmem:[#allocation6 + $0x19c] sm:$0xf] }
 0x242   :  { %v5485_v42 = vld [vmem:[#allocation6 + $0x4d4] sm:$0xf]  ;;  %v5450_v51 = vld [vmem:[#allocation6 + $0x3b4] sm:$0xf0] }
 0x243   :  { %2685 = vmatpush.bf16.msrb.mxu0 %v3986_v62  ;;  %2699 = vmatpush.bf16.msrb.mxu1 %v4242_v63  ;;  %v4726_v62 = vor.u32 %v5517_v52, %v4723_v53  ;;  %v4982_v63 = vor.u32 %v5581_v54, %v4979_v55  ;;  %v4595_v43 = vld [vmem:[#allocation6 + $0x4f0] sm:$0xf0]  ;;  %v5554_v24 = vld [vmem:[#allocation6 + $0x6f4] sm:$0xf0] }
 0x244   :  { %2709 = vmatpush.bf16.msrb.mxu2 %v4626_v0  ;;  %2723 = vmatpush.bf16.msrb.mxu3 %v4882_v1  ;;  %v5413_v0 = vld [vmem:[#allocation6 + $0x294] sm:$0xf]  ;;  %v4598_v52 = vor.u32 %v5485_v42, %v4595_v43  ;;  %v4697_v42 = vld [vmem:[#allocation6 + $0x598] sm:$0xf] }
 0x245   :  { %v4307_v1 = vld [vmem:[#allocation6 + $0x2b0] sm:$0xf0]  ;;  %v5514_v43 = vld [vmem:[#allocation6 + $0x5b4] sm:$0xf0] }
 0x246   :  { %2686 = vmatmul.bf16.vlgmr.msrb.gmra.mxu0 %v5915_v21  ;;  %2700 = vmatmul.bf16.vlgmr.msrb.gmra.mxu1 %v5917_v22  ;;  %v4310_v9 = vor.u32 %v5413_v0, %v4307_v1  ;;  %v4851_v47 = vld [vmem:[#allocation6 + $0x6f0] sm:$0xf0] }
 0x247   :  { %2734 = vmatpush.bf16.msra.mxu0 %v4214_v4  ;;  %2748 = vmatpush.bf16.msra.mxu1 %v4470_v5  ;;  %v5573_v4 = vld [vmem:[#allocation6 + $0x794] sm:$0xf] }
 0x248   :  { %2710 = vmatpush.bf16.msrb.mxu2 %v4594_v16  ;;  %2724 = vmatpush.bf16.msrb.mxu3 %v4850_v15  ;;  %v4947_v5 = vld [vmem:[#allocation6 + $0x7b0] sm:$0xf0] }
 0x249   :  { %v4950_v14 = vor.u32 %v5573_v4, %v4947_v5  ;;  %v5405_v16 = vld [vmem:[#allocation6 + $0x254] sm:$0xf]  ;;  %v4154_v4 = vor.u32 %v5378_v61, %v4153_v60  ;;  %v3993_v61 = vld [vmem:[#allocation6 + $0x18] sm:$0xf] }
 0x24a   :  { %v4275_v15 = vld [vmem:[#allocation6 + $0x270] sm:$0xf0] }
 0x24b   :  { %2735 = vmatpush.bf16.msra.mxu0 %v4182_v18  ;;  %2749 = vmatpush.bf16.msra.mxu1 %v4438_v19  ;;  %v5565_v18 = vld [vmem:[#allocation6 + $0x754] sm:$0xf]  ;;  %v4278_v23 = vor.u32 %v5405_v16, %v4275_v15 }
 0x24c   :  { %2711 = vmatpush.bf16.msrb.mxu2 %v4562_v28  ;;  %2725 = vmatpush.bf16.msrb.mxu3 %v4818_v29  ;;  %v4915_v19 = vld [vmem:[#allocation6 + $0x770] sm:$0xf0] }
 0x24d   :  { %v4918_v28 = vor.u32 %v5565_v18, %v4915_v19  ;;  %v4243_v29 = vld [vmem:[#allocation6 + $0x230] sm:$0xf0]  ;;  %v4122_v19 = vor.u32 %v5370_v12, %v4121_v10  ;;  %v4219_v10 = vld [vmem:[#allocation6 + $0x1f8] sm:$0xf0] }
 0x24e   :  { %v4246_v39 = vor.u32 %v5397_v26, %v4243_v29  ;;  %v5477_v54 = vld [vmem:[#allocation6 + $0x494] sm:$0xf]  ;;  %v4345_v26 = vld [vmem:[#allocation6 + $0x2d8] sm:$0xf]  ;;  %v5454_v12 = vld [vmem:[#allocation6 + $0x3dc] sm:$0xf] }
 0x24f   :  { %2736 = vmatpush.bf16.msra.mxu0 %v4150_v32  ;;  %2750 = vmatpush.bf16.msra.mxu1 %v4406_v33  ;;  %v5557_v32 = vld [vmem:[#allocation6 + $0x714] sm:$0xf]  ;;  %v5522_v29 = vld [vmem:[#allocation6 + $0x5f4] sm:$0xf0] }
 0x250   :  { %2712 = vmatpush.bf16.msrb.mxu2 %v4530_v40  ;;  %2726 = vmatpush.bf16.msrb.mxu3 %v4786_v41  ;;  %v4883_v33 = vld [vmem:[#allocation6 + $0x730] sm:$0xf0]  ;;  %v4630_v40 = vor.u32 %v5493_v30, %v4627_v31  ;;  %v4985_v30 = vld [vmem:[#allocation6 + $0x7d8] sm:$0xf] }
 0x251   :  { %v4886_v41 = vor.u32 %v5557_v32, %v4883_v33  ;;  %v4563_v55 = vld [vmem:[#allocation6 + $0x4b0] sm:$0xf0]  ;;  %v5586_v31 = vld [vmem:[#allocation6 + $0x7f4] sm:$0xf0] }
 0x252   :  { %v4566_v0 = vor.u32 %v5477_v54, %v4563_v55  ;;  %v5469_v2 = vld [vmem:[#allocation6 + $0x454] sm:$0xf]  ;;  %v4665_v54 = vld [vmem:[#allocation6 + $0x558] sm:$0xf] }
 0x253   :  { %2737 = vmatpush.bf16.msra.mxu0 %v4118_v45  ;;  %2751 = vmatpush.bf16.msra.mxu1 %v4374_v46  ;;  %v4474_v45 = vor.u32 %v5458_v37, %v4473_v36  ;;  %v5549_v46 = vld [vmem:[#allocation6 + $0x6d4] sm:$0xf]  ;;  %v4057_v36 = vld [vmem:[#allocation6 + $0x98] sm:$0xf] }
 0x254   :  { %2713 = vmatpush.bf16.msrb.mxu2 %v4498_v56  ;;  %2727 = vmatpush.bf16.msrb.mxu3 %v4754_v57  ;;  %v4854_v53 = vor.u32 %v5549_v46, %v4851_v47  ;;  %v4186_v56 = vor.u32 %v5386_v49, %v4185_v48  ;;  %v4442_v57 = vor.u32 %v5450_v51, %v4441_v50  ;;  %v4531_v3 = vld [vmem:[#allocation6 + $0x470] sm:$0xf0]  ;;  %v5354_v37 = vld [vmem:[#allocation6 + $0xb4] sm:$0xf0] }
 0x255   :  { %v4534_v16 = vor.u32 %v5469_v2, %v4531_v3  ;;  %v5461_v11 = vld [vmem:[#allocation6 + $0x414] sm:$0xf]  ;;  %v4058_v46 = vor.u32 %v5354_v37, %v4057_v36  ;;  %v4025_v48 = vld [vmem:[#allocation6 + $0x58] sm:$0xf]  ;;  %v4698_v50 = vor.u32 %v5514_v43, %v4697_v42  ;;  %v4155_v42 = vld [vmem:[#allocation6 + $0x178] sm:$0xf0] }
 0x256   :  { %v4499_v17 = vld [vmem:[#allocation6 + $0x430] sm:$0xf0]  ;;  %v5346_v49 = vld [vmem:[#allocation6 + $0x74] sm:$0xf0]  ;;  %v5438_v43 = vld [vmem:[#allocation6 + $0x35c] sm:$0xf] }
 0x257   :  { %2738 = vmatpush.bf16.msra.mxu0 %v4086_v58  ;;  %2752 = vmatpush.bf16.msra.mxu1 %v4342_v59  ;;  %v5541_v58 = vld [vmem:[#allocation6 + $0x694] sm:$0xf]  ;;  %v4502_v32 = vor.u32 %v5461_v11, %v4499_v17  ;;  %v5506_v55 = vld [vmem:[#allocation6 + $0x574] sm:$0xf0] }
 0x258   :  { %2762 = vmatpush.bf16.msra.mxu2 %v4726_v62  ;;  %2776 = vmatpush.bf16.msra.mxu3 %v4982_v63  ;;  %v4819_v59 = vld [vmem:[#allocation6 + $0x6b0] sm:$0xf0]  ;;  %v4409_v62 = vld [vmem:[#allocation6 + $0x358] sm:$0xf] }
 0x259   :  { %2714 = vmatmul.bf16.vlgmr.msrb.gmra.mxu2 %v5921_v6  ;;  %2728 = vmatmul.bf16.vlgmr.msrb.gmra.mxu3 %v5923_v7  ;;  %v5442_v63 = vld [vmem:[#allocation6 + $0x374] sm:$0xf0]  ;;  %v4822_v1 = vor.u32 %v5541_v58, %v4819_v59  ;;  %v5525_v18 = vld [vmem:[#allocation6 + $0x614] sm:$0xf]  ;;  %v4026_v59 = vor.u32 %v5346_v49, %v4025_v48 }
 0x25a   :  { %v4410_v5 = vor.u32 %v5442_v63, %v4409_v62  ;;  %v5338_v62 = vld [vmem:[#allocation6 + $0x34] sm:$0xf0] }
 0x25b   :  { %2739 = vmatpush.bf16.msra.mxu0 %v4054_v8  ;;  %2753 = vmatpush.bf16.msra.mxu1 %v4310_v9  ;;  %v5533_v8 = vld [vmem:[#allocation6 + $0x654] sm:$0xf]  ;;  %v4249_v63 = vld [vmem:[#allocation6 + $0x218] sm:$0xf] }
 0x25c   :  { %2763 = vmatpush.bf16.msra.mxu2 %v4694_v13  ;;  %2777 = vmatpush.bf16.msra.mxu3 %v4950_v14  ;;  %v4787_v9 = vld [vmem:[#allocation6 + $0x670] sm:$0xf0]  ;;  %v4377_v13 = vld [vmem:[#allocation6 + $0x318] sm:$0xf] }
 0x25d   :  { %v5434_v14 = vld [vmem:[#allocation6 + $0x334] sm:$0xf0]  ;;  %v4790_v15 = vor.u32 %v5533_v8, %v4787_v9  ;;  %v5390_v9 = vld [vmem:[#allocation6 + $0x1dc] sm:$0xf] }
 0x25e   :  { %v5402_v2 = vld [vmem:[#allocation6 + $0x234] sm:$0xf0] }
 0x25f   :  { %2740 = vmatpush.bf16.msra.mxu0 %v4022_v20  ;;  %2754 = vmatpush.bf16.msra.mxu1 %v4278_v23  ;;  %v4378_v20 = vor.u32 %v5434_v14, %v4377_v13  ;;  %v4755_v23 = vld [vmem:[#allocation6 + $0x630] sm:$0xf0]  ;;  %v4633_v3 = vld [vmem:[#allocation6 + $0x518] sm:$0xf]  ;;  %v4475_v13 = vld [vmem:[#allocation6 + $0x3f8] sm:$0xf0]  ;;  %v3994_v14 = vor.u32 %v5338_v62, %v3993_v61 }
 0x260   :  { %2764 = vmatpush.bf16.msra.mxu2 %v4662_v27  ;;  %2778 = vmatpush.bf16.msra.mxu3 %v4918_v28  ;;  %v5426_v27 = vld [vmem:[#allocation6 + $0x2f4] sm:$0xf0]  ;;  %v4758_v33 = vor.u32 %v5525_v18, %v4755_v23 }
 0x261   :  { %v4729_v28 = vld [vmem:[#allocation6 + $0x5d8] sm:$0xf]  ;;  %v4346_v35 = vor.u32 %v5426_v27, %v4345_v26  ;;  %v4187_v27 = vld [vmem:[#allocation6 + $0x1b8] sm:$0xf0] }
 0x262   :  { %v5947_v58 = vpop.f32.mrf.mxu0  ;;  %v5562_v8 = vld [vmem:[#allocation6 + $0x734] sm:$0xf0]  ;;  %v5949_v26 = vpop.f32.mrf.mxu1 }
 0x263   :  { %2741 = vmatpush.bf16.msra.mxu0 %v3990_v38  ;;  %2755 = vmatpush.bf16.msra.mxu1 %v4246_v39  ;;  %v4730_v38 = vor.u32 %v5522_v29, %v4729_v28  ;;  %v4986_v39 = vor.u32 %v5586_v31, %v4985_v30  ;;  %v4601_v17 = vld [vmem:[#allocation6 + $0x4d8] sm:$0xf]  ;;  %v5446_v28 = vld [vmem:[#allocation6 + $0x39c] sm:$0xf] }
 0x264   :  { %2765 = vmatpush.bf16.msra.mxu2 %v4630_v40  ;;  %2779 = vmatpush.bf16.msra.mxu3 %v4886_v41  ;;  %v4313_v40 = vld [vmem:[#allocation6 + $0x298] sm:$0xf]  ;;  %v4443_v29 = vld [vmem:[#allocation6 + $0x3b8] sm:$0xf0] }
 0x265   :  { %v5418_v41 = vld [vmem:[#allocation6 + $0x2b4] sm:$0xf0]  ;;  %v4446_v36 = vor.u32 %v5446_v28, %v4443_v29  ;;  %v4315_v28 = vld [vmem:[#allocation6 + $0x2b8] sm:$0xf0] }
 0x266   :  { %2742 = vmatmul.bf16.vlgmr.msra.gmra.mxu0 %v5915_v21  ;;  %2756 = vmatmul.bf16.vlgmr.msra.gmra.mxu1 %v5917_v22  ;;  %v4314_v47 = vor.u32 %v5418_v41, %v4313_v40  ;;  %v5490_v18 = vld [vmem:[#allocation6 + $0x4f4] sm:$0xf0]  ;;  %v5510_v29 = vld [vmem:[#allocation6 + $0x59c] sm:$0xf] }
 0x267   :  { %2790 = vmatpush.bf16.msrb.mxu0 %v4218_v44  ;;  %2804 = vmatpush.bf16.msrb.mxu1 %v4474_v45  ;;  %v4953_v44 = vld [vmem:[#allocation6 + $0x798] sm:$0xf]  ;;  %v4602_v30 = vor.u32 %v5490_v18, %v4601_v17 }
 0x268   :  { %2766 = vmatpush.bf16.msra.mxu2 %v4598_v52  ;;  %2780 = vmatpush.bf16.msra.mxu3 %v4854_v53  ;;  %v5578_v45 = vld [vmem:[#allocation6 + $0x7b4] sm:$0xf0] }
 0x269   :  { %v4954_v51 = vor.u32 %v5578_v45, %v4953_v44  ;;  %v4281_v52 = vld [vmem:[#allocation6 + $0x258] sm:$0xf]  ;;  %v4411_v44 = vld [vmem:[#allocation6 + $0x378] sm:$0xf0] }
 0x26a   :  { %v5410_v53 = vld [vmem:[#allocation6 + $0x274] sm:$0xf0] }
 0x26b   :  { %2791 = vmatpush.bf16.msrb.mxu0 %v4186_v56  ;;  %2805 = vmatpush.bf16.msrb.mxu1 %v4442_v57  ;;  %v4921_v56 = vld [vmem:[#allocation6 + $0x758] sm:$0xf]  ;;  %v4282_v60 = vor.u32 %v5410_v53, %v4281_v52  ;;  %v5366_v53 = vld [vmem:[#allocation6 + $0x11c] sm:$0xf] }
 0x26c   :  { %2767 = vmatpush.bf16.msra.mxu2 %v4566_v0  ;;  %2781 = vmatpush.bf16.msra.mxu3 %v4822_v1  ;;  %v5570_v57 = vld [vmem:[#allocation6 + $0x774] sm:$0xf0]  ;;  %v4666_v0 = vor.u32 %v5506_v55, %v4665_v54  ;;  %v4123_v54 = vld [vmem:[#allocation6 + $0x138] sm:$0xf0] }
 0x26d   :  { %v4922_v1 = vor.u32 %v5570_v57, %v4921_v56  ;;  %v4857_v23 = vld [vmem:[#allocation6 + $0x6d8] sm:$0xf]  ;;  %v5430_v55 = vld [vmem:[#allocation6 + $0x31c] sm:$0xf]  ;;  %v5959_v57 = vpop.f32.mrf.mxu1 }
 0x26e   :  { %v4858_v31 = vor.u32 %v5554_v24, %v4857_v23  ;;  %v4825_v37 = vld [vmem:[#allocation6 + $0x698] sm:$0xf]  ;;  %v4379_v56 = vld [vmem:[#allocation6 + $0x338] sm:$0xf0] }
 0x26f   :  { %2792 = vmatpush.bf16.msrb.mxu0 %v4154_v4  ;;  %2806 = vmatpush.bf16.msrb.mxu1 %v4410_v5  ;;  %v5498_v4 = vld [vmem:[#allocation6 + $0x534] sm:$0xf0]  ;;  %v4059_v23 = vld [vmem:[#allocation6 + $0xb8] sm:$0xf0] }
 0x270   :  { %2768 = vmatpush.bf16.msra.mxu2 %v4534_v16  ;;  %2782 = vmatpush.bf16.msra.mxu3 %v4790_v15  ;;  %v4889_v5 = vld [vmem:[#allocation6 + $0x718] sm:$0xf]  ;;  %v4250_v16 = vor.u32 %v5402_v2, %v4249_v63  ;;  %v4634_v15 = vor.u32 %v5498_v4, %v4633_v3  ;;  %v5358_v3 = vld [vmem:[#allocation6 + $0xdc] sm:$0xf] }
 0x271   :  { %v4890_v11 = vor.u32 %v5562_v8, %v4889_v5  ;;  %v5474_v48 = vld [vmem:[#allocation6 + $0x474] sm:$0xf0]  ;;  %v4091_v4 = vld [vmem:[#allocation6 + $0xf8] sm:$0xf0] }
 0x272   :  { %v5538_v52 = vld [vmem:[#allocation6 + $0x674] sm:$0xf0]  ;;  %v5422_v5 = vld [vmem:[#allocation6 + $0x2dc] sm:$0xf]  ;;  %v4094_v18 = vor.u32 %v5358_v3, %v4091_v4 }
 0x273   :  { %2793 = vmatpush.bf16.msrb.mxu0 %v4122_v19  ;;  %2807 = vmatpush.bf16.msrb.mxu1 %v4378_v20  ;;  %v4222_v19 = vor.u32 %v5390_v9, %v4219_v10  ;;  %v4478_v20 = vor.u32 %v5454_v12, %v4475_v13  ;;  %v4505_v61 = vld [vmem:[#allocation6 + $0x418] sm:$0xf]  ;;  %v4347_v8 = vld [vmem:[#allocation6 + $0x2f8] sm:$0xf0] }
 0x274   :  { %2769 = vmatpush.bf16.msra.mxu2 %v4502_v32  ;;  %2783 = vmatpush.bf16.msra.mxu3 %v4758_v33  ;;  %v4569_v32 = vld [vmem:[#allocation6 + $0x498] sm:$0xf]  ;;  %v5518_v9 = vld [vmem:[#allocation6 + $0x5dc] sm:$0xf] }
 0x275   :  { %v5482_v33 = vld [vmem:[#allocation6 + $0x4b4] sm:$0xf0]  ;;  %v4731_v12 = vld [vmem:[#allocation6 + $0x5f8] sm:$0xf0] }
 0x276   :  { %v4570_v45 = vor.u32 %v5482_v33, %v4569_v32  ;;  %v5466_v62 = vld [vmem:[#allocation6 + $0x434] sm:$0xf0]  ;;  %v5582_v13 = vld [vmem:[#allocation6 + $0x7dc] sm:$0xf]  ;;  %v4734_v24 = vor.u32 %v5518_v9, %v4731_v12 }
 0x277   :  { %2794 = vmatpush.bf16.msrb.mxu0 %v4090_v34  ;;  %2808 = vmatpush.bf16.msrb.mxu1 %v4346_v35  ;;  %v5951_v34 = vpop.f32.mrf.mxu0  ;;  %v4190_v35 = vor.u32 %v5382_v25, %v4187_v27  ;;  %v4761_v63 = vld [vmem:[#allocation6 + $0x618] sm:$0xf]  ;;  %v5414_v27 = vld [vmem:[#allocation6 + $0x29c] sm:$0xf] }
 0x278   :  { %2818 = vmatpush.bf16.msrb.mxu2 %v4730_v38  ;;  %2832 = vmatpush.bf16.msrb.mxu3 %v4986_v39  ;;  %v5546_v38 = vld [vmem:[#allocation6 + $0x6b4] sm:$0xf0]  ;;  %v5374_v39 = vld [vmem:[#allocation6 + $0x15c] sm:$0xf]  ;;  %v5953_v40 = vpop.f32.mrf.mxu2  ;;  %v5955_v41 = vpop.f32.mrf.mxu3 }
 0x279   :  { %2770 = vmatmul.bf16.vlgmr.msra.gmra.mxu2 %v5921_v6  ;;  %2784 = vmatmul.bf16.vlgmr.msra.gmra.mxu3 %v5923_v7  ;;  %v4158_v49 = vor.u32 %v5374_v39, %v4155_v42  ;;  %v5530_v2 = vld [vmem:[#allocation6 + $0x634] sm:$0xf0]  ;;  %v4955_v32 = vld [vmem:[#allocation6 + $0x7b8] sm:$0xf0] }
 0x27a   :  { %v4762_v17 = vor.u32 %v5530_v2, %v4761_v63  ;;  %v4635_v63 = vld [vmem:[#allocation6 + $0x538] sm:$0xf0]  ;;  %v5978_v2 = vld [vmem:[%s6041_s10] sm:$0xff] }
 0x27b   :  { %2795 = vmatpush.bf16.msrb.mxu0 %v4058_v46  ;;  %2809 = vmatpush.bf16.msrb.mxu1 %v4314_v47  ;;  %v4826_v46 = vor.u32 %v5546_v38, %v4825_v37  ;;  %v4537_v47 = vld [vmem:[#allocation6 + $0x458] sm:$0xf]  ;;  %v4027_v37 = vld [vmem:[#allocation6 + $0x78] sm:$0xf0]  ;;  %v5967_v38 = vpop.f32.mrf.mxu1 }
 0x27c   :  { %2819 = vmatpush.bf16.msrb.mxu2 %v4698_v50  ;;  %2833 = vmatpush.bf16.msrb.mxu3 %v4954_v51  ;;  %v4414_v50 = vor.u32 %v5438_v43, %v4411_v44  ;;  %v4793_v51 = vld [vmem:[#allocation6 + $0x658] sm:$0xf]  ;;  %v5406_v43 = vld [vmem:[#allocation6 + $0x25c] sm:$0xf] }
 0x27d   :  { %v4283_v44 = vld [vmem:[#allocation6 + $0x278] sm:$0xf0] }
 0x27e   :  { %v5594_v9 = vld [vmem:[#allocation7 + $0x38] sm:$0xff] }
 0x27f   :  { %2796 = vmatpush.bf16.msrb.mxu0 %v4026_v59  ;;  %2810 = vmatpush.bf16.msrb.mxu1 %v4282_v60  ;;  %v4538_v59 = vor.u32 %v5474_v48, %v4537_v47  ;;  %v4794_v60 = vor.u32 %v5538_v52, %v4793_v51  ;;  %v5961_v10 = vpop.f32.mrf.mxu0  ;;  %v5566_v47 = vld [vmem:[#allocation6 + $0x75c] sm:$0xf]  ;;  %v4286_v51 = vor.u32 %v5406_v43, %v4283_v44 }
 0x280   :  { %2820 = vmatpush.bf16.msrb.mxu2 %v4666_v0  ;;  %2834 = vmatpush.bf16.msrb.mxu3 %v4922_v1  ;;  %v4126_v0 = vor.u32 %v5366_v53, %v4123_v54  ;;  %v4382_v1 = vor.u32 %v5430_v55, %v4379_v56  ;;  %v4923_v48 = vld [vmem:[#allocation6 + $0x778] sm:$0xf0] }
 0x281   :  { %v5334_v52 = vld [vmem:[#allocation6 + $0x1c] sm:$0xf] }
 0x282   :  { %v3995_v53 = vld [vmem:[#allocation6 + $0x38] sm:$0xf0] }
 0x283   :  { %2797 = vmatpush.bf16.msrb.mxu0 %v3994_v14  ;;  %2811 = vmatpush.bf16.msrb.mxu1 %v4250_v16  ;;  %v4987_v14 = vld [vmem:[#allocation6 + $0x7f8] sm:$0xf0]  ;;  %v5963_v16 = vpop.f32.mrf.mxu2  ;;  %v3998_v3 = vor.u32 %v5334_v52, %v3995_v53 }
 0x284   :  { %2821 = vmatpush.bf16.msrb.mxu2 %v4634_v15  ;;  %2835 = vmatpush.bf16.msrb.mxu3 %v4890_v11  ;;  %v5965_v15 = vpop.f32.mrf.mxu3  ;;  %v4506_v11 = vor.u32 %v5466_v62, %v4505_v61  ;;  %v4990_v25 = vor.u32 %v5582_v13, %v4987_v14  ;;  %v4251_v61 = vld [vmem:[#allocation6 + $0x238] sm:$0xf0] }
 0x285   :  { %v5494_v62 = vld [vmem:[#allocation6 + $0x51c] sm:$0xf] }
 0x286   :  { %2798 = vmatmul.bf16.vlgmr.msrb.gmra.mxu0 %v5915_v21  ;;  %2812 = vmatmul.bf16.vlgmr.msrb.gmra.mxu1 %v5917_v22  ;;  %v5602_v12 = vld [vmem:[#allocation7 + $0x78] sm:$0xff] }
 0x287   :  { %2846 = vmatpush.bf16.msra.mxu0 %v4222_v19  ;;  %2860 = vmatpush.bf16.msra.mxu1 %v4478_v20  ;;  %v4350_v19 = vor.u32 %v5422_v5, %v4347_v8  ;;  %v5350_v20 = vld [vmem:[#allocation6 + $0x9c] sm:$0xf]  ;;  %v4638_v5 = vor.u32 %v5494_v62, %v4635_v63 }
 0x288   :  { %2822 = vmatpush.bf16.msrb.mxu2 %v4602_v30  ;;  %2836 = vmatpush.bf16.msrb.mxu3 %v4858_v31  ;;  %v4699_v30 = vld [vmem:[#allocation6 + $0x5b8] sm:$0xf0]  ;;  %v4062_v33 = vor.u32 %v5350_v20, %v4059_v23  ;;  %v1158_v20 = vperm.slane %v5978_v2, 0 }
 0x289   :  { %v5574_v31 = vld [vmem:[#allocation6 + $0x79c] sm:$0xf]  ;;  %v4702_v39 = vor.u32 %v5510_v29, %v4699_v30 }
 0x28a   :  { %v4958_v42 = vor.u32 %v5574_v31, %v4955_v32  ;;  %v5486_v13 = vld [vmem:[#allocation6 + $0x4dc] sm:$0xf]  ;;  %v2466_v30 = vadd.f32 %v5951_v34, %v1158_v20 }
 0x28b   :  { %2847 = vmatpush.bf16.msra.mxu0 %v4190_v35  ;;  %2861 = vmatpush.bf16.msra.mxu1 %v4446_v36  ;;  %v4318_v35 = vor.u32 %v5414_v27, %v4315_v28  ;;  %v5342_v36 = vld [vmem:[#allocation6 + $0x5c] sm:$0xf]  ;;  %v5971_v54 = vpop.f32.mrf.mxu2  ;;  %v5593_v27 = vld [vmem:[#allocation7 + $0x30] sm:$0xff] }
 0x28c   :  { %2823 = vmatpush.bf16.msrb.mxu2 %v4570_v45  ;;  %2837 = vmatpush.bf16.msrb.mxu3 %v4826_v46  ;;  %v5502_v45 = vld [vmem:[#allocation6 + $0x55c] sm:$0xf]  ;;  %v5973_v55 = vpop.f32.mrf.mxu3  ;;  %v5601_v28 = vld [vmem:[#allocation7 + $0x70] sm:$0xff] }
 0x28d   :  { %v4667_v46 = vld [vmem:[#allocation6 + $0x578] sm:$0xf0] }
 0x28e   :  { %v4670_v56 = vor.u32 %v5502_v45, %v4667_v46  ;;  %v4603_v14 = vld [vmem:[#allocation6 + $0x4f8] sm:$0xf0]  ;;  %v5592_v45 = vld [vmem:[#allocation7 + $0x28] sm:$0xff] }
 0x28f   :  { %2848 = vmatpush.bf16.msra.mxu0 %v4158_v49  ;;  %2862 = vmatpush.bf16.msra.mxu1 %v4414_v50  ;;  %v2521_v49 = vpop.f32.mrf.mxu0  ;;  %v4030_v50 = vor.u32 %v5342_v36, %v4027_v37  ;;  %v5478_v29 = vld [vmem:[#allocation6 + $0x49c] sm:$0xf]  ;;  %v5600_v46 = vld [vmem:[#allocation7 + $0x68] sm:$0xff] }
 0x290   :  { %2824 = vmatpush.bf16.msrb.mxu2 %v4538_v59  ;;  %2838 = vmatpush.bf16.msrb.mxu3 %v4794_v60  ;;  %v4926_v59 = vor.u32 %v5566_v47, %v4923_v48  ;;  %v5398_v60 = vld [vmem:[#allocation6 + $0x21c] sm:$0xf]  ;;  %v2480_v48 = vadd.f32 %v5959_v57, %v2466_v30  ;;  %v5588_v30 = vld [vmem:[#allocation7 + $0x8] sm:$0xff] }
 0x291   :  { %v4254_v4 = vor.u32 %v5398_v60, %v4251_v61  ;;  %v4571_v32 = vld [vmem:[#allocation6 + $0x4b8] sm:$0xf0]  ;;  %v5599_v60 = vld [vmem:[#allocation7 + $0x60] sm:$0xff] }
 0x292   :  { %v4574_v34 = vor.u32 %v5478_v29, %v4571_v32  ;;  %v5470_v47 = vld [vmem:[#allocation6 + $0x45c] sm:$0xf]  ;;  %v1161_v29 = vperm.slane %v5978_v2, 3  ;;  %v5596_v32 = vld [vmem:[#allocation7 + $0x48] sm:$0xff] }
 0x293   :  { %2849 = vmatpush.bf16.msra.mxu0 %v4126_v0  ;;  %2863 = vmatpush.bf16.msra.mxu1 %v4382_v1  ;;  %v5558_v0 = vld [vmem:[#allocation6 + $0x71c] sm:$0xf]  ;;  %v2549_v37 = vpop.f32.mrf.mxu2 }
 0x294   :  { %2825 = vmatpush.bf16.msrb.mxu2 %v4506_v11  ;;  %2839 = vmatpush.bf16.msrb.mxu3 %v4762_v17  ;;  %v4891_v1 = vld [vmem:[#allocation6 + $0x738] sm:$0xf0] }
 0x295   :  { %v4894_v8 = vor.u32 %v5558_v0, %v4891_v1  ;;  %v5550_v11 = vld [vmem:[#allocation6 + $0x6dc] sm:$0xf] }
 0x296   :  { %v4859_v17 = vld [vmem:[#allocation6 + $0x6f8] sm:$0xf0] }
 0x297   :  { %2850 = vmatpush.bf16.msra.mxu0 %v4094_v18  ;;  %2864 = vmatpush.bf16.msra.mxu1 %v4350_v19  ;;  %v1159_v18 = vperm.slane %v5978_v2, 1  ;;  %v2535_v19 = vpop.f32.mrf.mxu1  ;;  %v5983_v31 = vpop.f32.mrf.mxu0  ;;  %v5462_v61 = vld [vmem:[#allocation6 + $0x41c] sm:$0xf] }
 0x298   :  { %2874 = vmatpush.bf16.msra.mxu2 %v4734_v24  ;;  %2888 = vmatpush.bf16.msra.mxu3 %v4990_v25  ;;  %v4606_v24 = vor.u32 %v5486_v13, %v4603_v14  ;;  %v4862_v25 = vor.u32 %v5550_v11, %v4859_v17  ;;  %v4507_v62 = vld [vmem:[#allocation6 + $0x438] sm:$0xf0]  ;;  %v5597_v17 = vld [vmem:[#allocation7 + $0x50] sm:$0xff] }
 0x299   :  { %2826 = vmatmul.bf16.vlgmr.msrb.gmra.mxu2 %v5921_v6  ;;  %2840 = vmatmul.bf16.vlgmr.msrb.gmra.mxu3 %v5923_v7  ;;  %v2522_v23 = vadd.f32 %v2521_v49, %v1159_v18  ;;  %v2520_v36 = vadd.f32 %v5961_v10, %v1159_v18  ;;  %v4539_v10 = vld [vmem:[#allocation6 + $0x478] sm:$0xf0] }
 0x29a   :  { %v5534_v49 = vld [vmem:[#allocation6 + $0x65c] sm:$0xf] }
 0x29b   :  { %2851 = vmatpush.bf16.msra.mxu0 %v4062_v33  ;;  %2865 = vmatpush.bf16.msra.mxu1 %v4318_v35  ;;  %v5542_v33 = vld [vmem:[#allocation6 + $0x69c] sm:$0xf]  ;;  %v2536_v43 = vadd.f32 %v2535_v19, %v2522_v23  ;;  %v5609_v23 = vld [vmem:[#allocation7 + $0xb0] sm:$0xff] }
 0x29c   :  { %2875 = vmatpush.bf16.msra.mxu2 %v4702_v39  ;;  %2889 = vmatpush.bf16.msra.mxu3 %v4958_v42  ;;  %v4827_v35 = vld [vmem:[#allocation6 + $0x6b8] sm:$0xf0]  ;;  %v2563_v39 = vpop.f32.mrf.mxu3  ;;  %v2464_v42 = vadd.f32 %v5947_v58, %v1158_v20 }
 0x29d   :  { %v4830_v44 = vor.u32 %v5542_v33, %v4827_v35  ;;  %v4763_v63 = vld [vmem:[#allocation6 + $0x638] sm:$0xf0] }
 0x29e   :  { %v2478_v58 = vadd.f32 %v5949_v26, %v2464_v42  ;;  %v5618_v14 = vld [vmem:[#allocation7 + $0xf8] sm:$0xff] }
 0x29f   :  { %2852 = vmatpush.bf16.msra.mxu0 %v4030_v50  ;;  %2866 = vmatpush.bf16.msra.mxu1 %v4286_v51  ;;  %v4795_v50 = vld [vmem:[#allocation6 + $0x678] sm:$0xf0]  ;;  %v2494_v51 = vadd.f32 %v5963_v16, %v2480_v48  ;;  %v5993_v52 = vpop.f32.mrf.mxu1  ;;  %v5998_v1 = vpop.f32.mrf.mxu0 }
 0x2a0   :  { %2876 = vmatpush.bf16.msra.mxu2 %v4670_v56  ;;  %2890 = vmatpush.bf16.msra.mxu3 %v4926_v59  ;;  %v4542_v56 = vor.u32 %v5470_v47, %v4539_v10  ;;  %v4798_v57 = vor.u32 %v5534_v49, %v4795_v50  ;;  %v5591_v59 = vld [vmem:[#allocation7 + $0x20] sm:$0xff]  ;;  %v2492_v26 = vadd.f32 %v5953_v40, %v2478_v58 }
 0x2a1   :  { %v2508_v16 = vadd.f32 %v5965_v15, %v2494_v51  ;;  %v5610_v15 = vld [vmem:[#allocation7 + $0xb8] sm:$0xff]  ;;  %v5607_v10 = vld [vmem:[#allocation7 + $0xa0] sm:$0xff] }
 0x2a2   :  { %v2506_v40 = vadd.f32 %v5955_v41, %v2492_v26  ;;  %v5615_v49 = vld [vmem:[#allocation7 + $0xe0] sm:$0xff]  ;;  %v5605_v26 = vld [vmem:[#allocation7 + $0x90] sm:$0xff] }
 0x2a3   :  { %2853 = vmatpush.bf16.msra.mxu0 %v3998_v3  ;;  %2867 = vmatpush.bf16.msra.mxu1 %v4254_v4  ;;  %v6001_v3 = vpop.f32.mrf.mxu2 }
 0x2a4   :  { %2877 = vmatpush.bf16.msra.mxu2 %v4638_v5  ;;  %2891 = vmatpush.bf16.msra.mxu3 %v4894_v8  ;;  %v6003_v4 = vpop.f32.mrf.mxu3  ;;  %v4510_v5 = vor.u32 %v5462_v61, %v4507_v62 }
 0x2a6   :  { %2854 = vmatmul.bf16.vlgmr.msra.gmra.mxu0 %v5915_v21  ;;  %2868 = vmatmul.bf16.vlgmr.msra.gmra.mxu1 %v5917_v22  ;;  %v2534_v21 = vadd.f32 %v5967_v38, %v2520_v36  ;;  %v2550_v22 = vadd.f32 %v2549_v37, %v2536_v43  ;;  %v5526_v38 = vld [vmem:[#allocation6 + $0x61c] sm:$0xf] }
 0x2a7   :  { %3506 = vmatpush.bf16.msrb.mxu0 %v5594_v9  ;;  %3520 = vmatpush.bf16.msrb.mxu1 %v5602_v12  ;;  %v4766_v8 = vor.u32 %v5526_v38, %v4763_v63  ;;  %v5590_v9 = vld [vmem:[#allocation7 + $0x18] sm:$0xff]  ;;  %v6006_v18 = vpop.f32.mrf.mxu1 }
 0x2a8   :  { %2878 = vmatpush.bf16.msra.mxu2 %v4606_v24  ;;  %2892 = vmatpush.bf16.msra.mxu3 %v4862_v25  ;;  %v2548_v53 = vadd.f32 %v5971_v54, %v2534_v21  ;;  %v2564_v0 = vadd.f32 %v2563_v39, %v2550_v22  ;;  %v5598_v12 = vld [vmem:[#allocation7 + $0x58] sm:$0xff]  ;;  %v5617_v24 = vld [vmem:[#allocation7 + $0xf0] sm:$0xff]  ;;  %v2631_v25 = vpop.f32.mrf.mxu0  ;;  %v5608_v39 = vld [vmem:[#allocation7 + $0xa8] sm:$0xff] }
 0x2aa   :  { %v2562_v54 = vadd.f32 %v5973_v55, %v2548_v53  ;;  %v2906_v13 = vpack.c.bf16 %v2564_v0, %v2508_v16  ;;  %v5589_v55 = vld [vmem:[#allocation7 + $0x10] sm:$0xff] }
 0x2ab   :  { %3507 = vmatpush.bf16.msrb.mxu0 %v5593_v27  ;;  %3521 = vmatpush.bf16.msrb.mxu1 %v5601_v28  ;;  %v1160_v28 = vperm.slane %v5978_v2, 2  ;;  %v2605_v36 = vpop.f32.mrf.mxu2  ;;  %v5613_v0 = vld [vmem:[#allocation7 + $0xd0] sm:$0xff] }
 0x2ac   :  { %2879 = vmatpush.bf16.msra.mxu2 %v4574_v34  ;;  %2893 = vmatpush.bf16.msra.mxu3 %v4830_v44  ;;  %v2902_v11 = vpack.c.bf16 %v2562_v54, %v2506_v40  ;;  %v2918_v19 = vunpack.c.l.bf16 %v2906_v13  ;;  %v2919_v20 = vunpack.c.h.bf16 %v2906_v13  ;;  %v2619_v37 = vpop.f32.mrf.mxu3  ;;  %v2632_v34 = vadd.f32 %v2631_v25, %v1161_v29  ;;  %v5587_v44 = vld [vmem:[#allocation7] sm:$0xff]  ;;  %v5612_v40 = vld [vmem:[#allocation7 + $0xc8] sm:$0xff] }
 0x2ad   :  { %v2576_v43 = vadd.f32 %v5983_v31, %v1160_v28  ;;  %v2578_v61 = vadd.f32 %v5998_v1, %v1160_v28 }
 0x2ae   :  { %v2910_v41 = vunpack.c.l.bf16 %v2902_v11  ;;  %v2911_v27 = vunpack.c.h.bf16 %v2902_v11  ;;  %v2934_v33 = vmul.f32 0.20019531, %v2918_v19  ;;  %v2935_v35 = vmul.f32 0.20019531, %v2919_v20 }
 0x2af   :  { %3508 = vmatpush.bf16.msrb.mxu0 %v5592_v45  ;;  %3522 = vmatpush.bf16.msrb.mxu1 %v5600_v46  ;;  %v5595_v45 = vld [vmem:[#allocation7 + $0x40] sm:$0xff]  ;;  %v2645_v48 = vpop.f32.mrf.mxu1  ;;  %v2590_v22 = vadd.f32 %v5993_v52, %v2576_v43  ;;  %v2592_v16 = vadd.f32 %v6006_v18, %v2578_v61 }
 0x2b0   :  { %2880 = vmatpush.bf16.msra.mxu2 %v4542_v56  ;;  %2894 = vmatpush.bf16.msra.mxu3 %v4798_v57  ;;  %v2926_v42 = vmul.f32 0.20019531, %v2910_v41  ;;  %v2974_v46 = vmax.f32 %v2918_v19, %v2934_v33  ;;  %v2975_v47 = vmax.f32 %v2919_v20, %v2935_v35  ;;  %v2646_v58 = vadd.f32 %v2645_v48, %v2632_v34  ;;  %v2633_v51 = vpop.f32.mrf.mxu0  ;;  %v5603_v18 = vld [vmem:[#allocation7 + $0x80] sm:$0xff]  ;;  %v5621_v48 = vld [vmem:[#allocation7 + $0x110] sm:$0xff] }
 0x2b1   :  { %v2604_v62 = vadd.f32 %v6001_v3, %v2590_v22  ;;  %v2634_v52 = vadd.f32 %v2633_v51, %v1161_v29  ;;  %v5604_v3 = vld [vmem:[#allocation7 + $0x88] sm:$0xff]  ;;  %v5611_v19 = vld [vmem:[#allocation7 + $0xc0] sm:$0xff] }
 0x2b2   :  { %v2966_v50 = vmax.f32 %v2910_v41, %v2926_v42  ;;  %v5626_v41 = vld [vmem:[#allocation7 + $0x138] sm:$0xff]  ;;  %v5624_v42 = vld [vmem:[#allocation7 + $0x128] sm:$0xff]  ;;  %v5623_v34 = vld [vmem:[#allocation7 + $0x120] sm:$0xff] }
 0x2b3   :  { %3509 = vmatpush.bf16.msrb.mxu0 %v5591_v59  ;;  %3523 = vmatpush.bf16.msrb.mxu1 %v5599_v60  ;;  %v5606_v59 = vld [vmem:[#allocation7 + $0x98] sm:$0xff]  ;;  %v2618_v54 = vadd.f32 %v6003_v4, %v2604_v62  ;;  %v5620_v22 = vld [vmem:[#allocation7 + $0x108] sm:$0xff] }
 0x2b4   :  { %2881 = vmatpush.bf16.msra.mxu2 %v4510_v5  ;;  %2895 = vmatpush.bf16.msra.mxu3 %v4766_v8  ;;  %v2982_v31 = vpack.c.bf16 %v2974_v46, %v2966_v50  ;;  %v5614_v60 = vld [vmem:[#allocation7 + $0xd8] sm:$0xff]  ;;  %v2606_v8 = vadd.f32 %v2605_v36, %v2592_v16 }
 0x2b5   :  { %v5630_v46 = vld [vmem:[#allocation7 + $0x158] sm:$0xff] }
 0x2b7   :  { %3510 = vmatpush.bf16.msrb.mxu0 %v5590_v9  ;;  %3524 = vmatpush.bf16.msrb.mxu1 %v5598_v12  ;;  %v2647_v5 = vpop.f32.mrf.mxu1 }
 0x2b8   :  { %3534 = vmatpush.bf16.msrb.mxu2 %v5610_v15  ;;  %3548 = vmatpush.bf16.msrb.mxu3 %v5618_v14  ;;  %v2648_v9 = vadd.f32 %v2647_v5, %v2634_v52  ;;  %v2620_v14 = vadd.f32 %v2619_v37, %v2606_v8 }
 0x2b9   :  { %2882 = vmatmul.bf16.vlgmr.msra.gmra.mxu2 %v5921_v6  ;;  %2896 = vmatmul.bf16.vlgmr.msra.gmra.mxu3 %v5923_v7  ;;  %v5616_v6 = vld [vmem:[#allocation7 + $0xe8] sm:$0xff]  ;;  %v2927_v7 = vmul.f32 0.20019531, %v2911_v27 }
 0x2bb   :  { %3511 = vmatpush.bf16.msrb.mxu0 %v5589_v55  ;;  %3525 = vmatpush.bf16.msrb.mxu1 %v5597_v17  ;;  %v2967_v21 = vmax.f32 %v2911_v27, %v2927_v7  ;;  %v5634_v27 = vld [vmem:[#allocation7 + $0x178] sm:$0xff]  ;;  %v5632_v7 = vld [vmem:[#allocation7 + $0x168] sm:$0xff] }
 0x2bc   :  { %3535 = vmatpush.bf16.msrb.mxu2 %v5609_v23  ;;  %3549 = vmatpush.bf16.msrb.mxu3 %v5617_v24  ;;  %v2659_v56 = vpop.f32.mrf.mxu2  ;;  %v2673_v57 = vpop.f32.mrf.mxu3 }
 0x2bd   :  { %v2983_v53 = vpack.c.bf16 %v2975_v47, %v2967_v21  ;;  %v2660_v38 = vadd.f32 %v2659_v56, %v2646_v58  ;;  %v5628_v58 = vld [vmem:[#allocation7 + $0x148] sm:$0xff] }
 0x2bf   :  { %3512 = vmatpush.bf16.msrb.mxu0 %v5588_v30  ;;  %3526 = vmatpush.bf16.msrb.mxu1 %v5596_v32  ;;  %v2674_v63 = vadd.f32 %v2673_v57, %v2660_v38  ;;  %v5625_v30 = vld [vmem:[#allocation7 + $0x130] sm:$0xff]  ;;  %v1162_v57 = vperm.slane %v5978_v2, 4 }
 0x2c0   :  { %3536 = vmatpush.bf16.msrb.mxu2 %v5608_v39  ;;  %3550 = vmatpush.bf16.msrb.mxu3 %v5616_v6  ;;  %v5633_v32 = vld [vmem:[#allocation7 + $0x170] sm:$0xff] }
 0x2c1   :  { %v2903_v12 = vpack.c.bf16 %v2674_v63, %v2618_v54 }
 0x2c3   :  { %3513 = vmatpush.bf16.msrb.mxu0 %v5587_v44  ;;  %3527 = vmatpush.bf16.msrb.mxu1 %v5595_v45  ;;  %v2912_v11 = vunpack.c.l.bf16 %v2903_v12  ;;  %v2913_v55 = vunpack.c.h.bf16 %v2903_v12  ;;  %v2687_v43 = vpop.f32.mrf.mxu0  ;;  %v5631_v44 = vld [vmem:[#allocation7 + $0x160] sm:$0xff]  ;;  %v5622_v45 = vld [vmem:[#allocation7 + $0x118] sm:$0xff]  ;;  %v2701_v47 = vpop.f32.mrf.mxu1 }
 0x2c4   :  { %3537 = vmatpush.bf16.msrb.mxu2 %v5607_v10  ;;  %3551 = vmatpush.bf16.msrb.mxu3 %v5615_v49  ;;  %v2661_v1 = vpop.f32.mrf.mxu2  ;;  %v2675_v15 = vpop.f32.mrf.mxu3  ;;  %v5629_v10 = vld [vmem:[#allocation7 + $0x150] sm:$0xff]  ;;  %v2688_v62 = vadd.f32 %v2687_v43, %v1162_v57 }
 0x2c5   :  { %v2662_v13 = vadd.f32 %v2661_v1, %v2648_v9  ;;  %v2928_v20 = vmul.f32 0.20019531, %v2912_v11  ;;  %v2929_v23 = vmul.f32 0.20019531, %v2913_v55 }
 0x2c6   :  { %3514 = vmatmul.bf16.vlgmr.msrb.gmra.mxu0 %v2982_v31  ;;  %3528 = vmatmul.bf16.vlgmr.msrb.gmra.mxu1 %v2983_v53  ;;  %v5619_v31 = vld [vmem:[#allocation7 + $0x100] sm:$0xff]  ;;  %v2702_v63 = vadd.f32 %v2701_v47, %v2688_v62  ;;  %v1165_v62 = vperm.slane %v5978_v2, 7 }
 0x2c7   :  { %v2676_v17 = vadd.f32 %v2675_v15, %v2662_v13  ;;  %3562 = vmatpush.bf16.msra.mxu0 %v5626_v41  ;;  %3576 = vmatpush.bf16.msra.mxu1 %v5634_v27  ;;  %v2968_v33 = vmax.f32 %v2912_v11, %v2928_v20  ;;  %v2969_v35 = vmax.f32 %v2913_v55, %v2929_v23  ;;  %v5627_v53 = vld [vmem:[#allocation7 + $0x140] sm:$0xff] }
 0x2c8   :  { %3538 = vmatpush.bf16.msrb.mxu2 %v5606_v59  ;;  %3552 = vmatpush.bf16.msrb.mxu3 %v5614_v60  ;;  %v1163_v59 = vperm.slane %v5978_v2, 5 }
 0x2c9   :  { %v2907_v4 = vpack.c.bf16 %v2676_v17, %v2620_v14 }
 0x2cb   :  { %v2920_v24 = vunpack.c.l.bf16 %v2907_v4  ;;  %v2921_v25 = vunpack.c.h.bf16 %v2907_v4  ;;  %3563 = vmatpush.bf16.msra.mxu0 %v5625_v30  ;;  %3577 = vmatpush.bf16.msra.mxu1 %v5633_v32  ;;  %v2689_v49 = vpop.f32.mrf.mxu0  ;;  %v2703_v51 = vpop.f32.mrf.mxu1  ;;  %v5650_v30 = vld [vmem:[#allocation7 + $0x1f8] sm:$0xff] }
 0x2cc   :  { %3539 = vmatpush.bf16.msrb.mxu2 %v5605_v26  ;;  %3553 = vmatpush.bf16.msrb.mxu3 %v5613_v0  ;;  %v2690_v5 = vadd.f32 %v2689_v49, %v1162_v57  ;;  %v5643_v57 = vld [vmem:[#allocation7 + $0x1c0] sm:$0xff] }
 0x2cd   :  { %v2936_v28 = vmul.f32 0.20019531, %v2920_v24  ;;  %v2937_v29 = vmul.f32 0.20019531, %v2921_v25 }
 0x2cf   :  { %v2976_v36 = vmax.f32 %v2920_v24, %v2936_v28  ;;  %v2977_v37 = vmax.f32 %v2921_v25, %v2937_v29  ;;  %3564 = vmatpush.bf16.msra.mxu0 %v5624_v42  ;;  %3578 = vmatpush.bf16.msra.mxu1 %v5632_v7  ;;  %v5642_v29 = vld [vmem:[#allocation7 + $0x1b8] sm:$0xff] }
 0x2d0   :  { %3540 = vmatpush.bf16.msrb.mxu2 %v5604_v3  ;;  %3554 = vmatpush.bf16.msrb.mxu3 %v5612_v40  ;;  %v2704_v3 = vadd.f32 %v2703_v51, %v2690_v5 }
 0x2d1   :  { %v2984_v39 = vpack.c.bf16 %v2976_v36, %v2968_v33  ;;  %v2985_v6 = vpack.c.bf16 %v2977_v37, %v2969_v35  ;;  %v5641_v35 = vld [vmem:[#allocation7 + $0x1b0] sm:$0xff] }
 0x2d2   :  { %v5649_v36 = vld [vmem:[#allocation7 + $0x1f0] sm:$0xff] }
 0x2d3   :  { %3565 = vmatpush.bf16.msra.mxu0 %v5623_v34  ;;  %3579 = vmatpush.bf16.msra.mxu1 %v5631_v44  ;;  %v5640_v34 = vld [vmem:[#allocation7 + $0x1a8] sm:$0xff] }
 0x2d4   :  { %3541 = vmatpush.bf16.msrb.mxu2 %v5603_v18  ;;  %3555 = vmatpush.bf16.msrb.mxu3 %v5611_v19  ;;  %v5648_v44 = vld [vmem:[#allocation7 + $0x1e8] sm:$0xff] }
 0x2d7   :  { %3542 = vmatmul.bf16.vlgmr.msrb.gmra.mxu2 %v2984_v39  ;;  %3556 = vmatmul.bf16.vlgmr.msrb.gmra.mxu3 %v2985_v6 }
 0x2d8   :  { %3566 = vmatpush.bf16.msra.mxu0 %v5622_v45  ;;  %3580 = vmatpush.bf16.msra.mxu1 %v5630_v46  ;;  %v5639_v45 = vld [vmem:[#allocation7 + $0x1a0] sm:$0xff] }
 0x2d9   :  { %3590 = vmatpush.bf16.msra.mxu2 %v5642_v29  ;;  %3604 = vmatpush.bf16.msra.mxu3 %v5650_v30  ;;  %v5647_v46 = vld [vmem:[#allocation7 + $0x1e0] sm:$0xff] }
 0x2dc   :  { %v2715_v50 = vpop.f32.mrf.mxu2  ;;  %v2729_v21 = vpop.f32.mrf.mxu3  ;;  %3567 = vmatpush.bf16.msra.mxu0 %v5621_v48  ;;  %3581 = vmatpush.bf16.msra.mxu1 %v5629_v10  ;;  %v5638_v48 = vld [vmem:[#allocation7 + $0x198] sm:$0xff] }
 0x2dd   :  { %v2716_v8 = vadd.f32 %v2715_v50, %v2702_v63  ;;  %3591 = vmatpush.bf16.msra.mxu2 %v5641_v35  ;;  %3605 = vmatpush.bf16.msra.mxu3 %v5649_v36  ;;  %v5646_v10 = vld [vmem:[#allocation7 + $0x1d8] sm:$0xff]  ;;  %v5637_v50 = vld [vmem:[#allocation7 + $0x190] sm:$0xff] }
 0x2df   :  { %v2730_v40 = vadd.f32 %v2729_v21, %v2716_v8  ;;  %v5645_v21 = vld [vmem:[#allocation7 + $0x1d0] sm:$0xff] }
 0x2e0   :  { %3568 = vmatpush.bf16.msra.mxu0 %v5620_v22  ;;  %3582 = vmatpush.bf16.msra.mxu1 %v5628_v58 }
 0x2e1   :  { %3592 = vmatpush.bf16.msra.mxu2 %v5640_v34  ;;  %3606 = vmatpush.bf16.msra.mxu3 %v5648_v44  ;;  %v5664_v34 = vld [vmem:[%s6043_s12] ss:$0 sm:$0xff] }
 0x2e3   :  { %v2743_v56 = vpop.f32.mrf.mxu0  ;;  %v2757_v52 = vpop.f32.mrf.mxu1 }
 0x2e4   :  { %3569 = vmatpush.bf16.msra.mxu0 %v5619_v31  ;;  %3583 = vmatpush.bf16.msra.mxu1 %v5627_v53  ;;  %v2717_v60 = vpop.f32.mrf.mxu2  ;;  %v2731_v61 = vpop.f32.mrf.mxu3  ;;  %v2744_v38 = vadd.f32 %v2743_v56, %v1163_v59  ;;  %v5636_v31 = vld [vmem:[#allocation7 + $0x188] sm:$0xff]  ;;  %v5635_v56 = vld [vmem:[#allocation7 + $0x180] sm:$0xff] }
 0x2e5   :  { %v2718_v15 = vadd.f32 %v2717_v60, %v2704_v3  ;;  %3593 = vmatpush.bf16.msra.mxu2 %v5639_v45  ;;  %3607 = vmatpush.bf16.msra.mxu3 %v5647_v46  ;;  %v5644_v53 = vld [vmem:[#allocation7 + $0x1c8] sm:$0xff] }
 0x2e6   :  { %v2758_v26 = vadd.f32 %v2757_v52, %v2744_v38 }
 0x2e7   :  { %v2732_v19 = vadd.f32 %v2731_v61, %v2718_v15  ;;  %v1164_v61 = vperm.slane %v5978_v2, 6 }
 0x2e9   :  { %3594 = vmatpush.bf16.msra.mxu2 %v5638_v48  ;;  %3608 = vmatpush.bf16.msra.mxu3 %v5646_v10 }
 0x2eb   :  { %v2745_v0 = vpop.f32.mrf.mxu0  ;;  %v2759_v13 = vpop.f32.mrf.mxu1 }
 0x2ec   :  { %v2746_v12 = vadd.f32 %v2745_v0, %v1163_v59 }
 0x2ed   :  { %3595 = vmatpush.bf16.msra.mxu2 %v5637_v50  ;;  %3609 = vmatpush.bf16.msra.mxu3 %v5645_v21 }
 0x2ee   :  { %v2760_v14 = vadd.f32 %v2759_v13, %v2746_v12 }
 0x2f1   :  { %3596 = vmatpush.bf16.msra.mxu2 %v5636_v31  ;;  %3610 = vmatpush.bf16.msra.mxu3 %v5644_v53 }
 0x2f5   :  { %3597 = vmatpush.bf16.msra.mxu2 %v5635_v56  ;;  %3611 = vmatpush.bf16.msra.mxu3 %v5643_v57 }
 0x2fc   :  { %v2771_v16 = vpop.f32.mrf.mxu2  ;;  %v2785_v54 = vpop.f32.mrf.mxu3 }
 0x2fd   :  { %v2772_v9 = vadd.f32 %v2771_v16, %v2758_v26 }
 0x2ff   :  { %v2786_v1 = vadd.f32 %v2785_v54, %v2772_v9 }
 0x301   :  { %v2904_v11 = vpack.c.bf16 %v2786_v1, %v2730_v40 }
 0x303   :  { %v2914_v4 = vunpack.c.l.bf16 %v2904_v11  ;;  %v2915_v20 = vunpack.c.h.bf16 %v2904_v11  ;;  %v2799_v47 = vpop.f32.mrf.mxu0  ;;  %v2813_v49 = vpop.f32.mrf.mxu1 }
 0x304   :  { %v2773_v55 = vpop.f32.mrf.mxu2  ;;  %v2787_v18 = vpop.f32.mrf.mxu3  ;;  %v2800_v63 = vadd.f32 %v2799_v47, %v1164_v61 }
 0x305   :  { %v2774_v17 = vadd.f32 %v2773_v55, %v2760_v14  ;;  %v2930_v25 = vmul.f32 0.20019531, %v2914_v4  ;;  %v2931_v41 = vmul.f32 0.20019531, %v2915_v20 }
 0x306   :  { %v2814_v16 = vadd.f32 %v2813_v49, %v2800_v63 }
 0x307   :  { %v2788_v23 = vadd.f32 %v2787_v18, %v2774_v17  ;;  %v2970_v37 = vmax.f32 %v2914_v4, %v2930_v25  ;;  %v2971_v39 = vmax.f32 %v2915_v20, %v2931_v41 }
 0x309   :  { %v2908_v24 = vpack.c.bf16 %v2788_v23, %v2732_v19 }
 0x30b   :  { %v2922_v27 = vunpack.c.l.bf16 %v2908_v24  ;;  %v2923_v28 = vunpack.c.h.bf16 %v2908_v24  ;;  %v2801_v22 = vpop.f32.mrf.mxu0  ;;  %v2815_v59 = vpop.f32.mrf.mxu1 }
 0x30c   :  { %v2802_v12 = vadd.f32 %v2801_v22, %v1164_v61 }
 0x30d   :  { %v2938_v32 = vmul.f32 0.20019531, %v2922_v27  ;;  %v2939_v33 = vmul.f32 0.20019531, %v2923_v28 }
 0x30e   :  { %v2816_v15 = vadd.f32 %v2815_v59, %v2802_v12 }
 0x30f   :  { %v2978_v6 = vmax.f32 %v2922_v27, %v2938_v32  ;;  %v2979_v42 = vmax.f32 %v2923_v28, %v2939_v33 }
 0x311   :  { %v2986_v7 = vpack.c.bf16 %v2978_v6, %v2970_v37  ;;  %v2987_v43 = vpack.c.bf16 %v2979_v42, %v2971_v39 }
 0x313   :  { %3570 = vmatmul.bf16.vlgmr.msra.gmra.mxu0 %v2986_v7  ;;  %3584 = vmatmul.bf16.vlgmr.msra.gmra.mxu1 %v2987_v43 }
 0x31c   :  { %v2827_v58 = vpop.f32.mrf.mxu2  ;;  %v2841_v51 = vpop.f32.mrf.mxu3 }
 0x31d   :  { %v2828_v1 = vadd.f32 %v2827_v58, %v2814_v16 }
 0x31f   :  { %v2842_v14 = vadd.f32 %v2841_v51, %v2828_v1 }
 0x323   :  { %v2855_v60 = vpop.f32.mrf.mxu0  ;;  %v2869_v0 = vpop.f32.mrf.mxu1 }
 0x324   :  { %v2829_v38 = vpop.f32.mrf.mxu2  ;;  %v2843_v52 = vpop.f32.mrf.mxu3  ;;  %v2856_v26 = vadd.f32 %v2855_v60, %v1165_v62 }
 0x325   :  { %v2830_v55 = vadd.f32 %v2829_v38, %v2816_v15 }
 0x326   :  { %v2870_v54 = vadd.f32 %v2869_v0, %v2856_v26 }
 0x327   :  { %v2844_v20 = vadd.f32 %v2843_v52, %v2830_v55 }
 0x32b   :  { %v2857_v5 = vpop.f32.mrf.mxu0  ;;  %v2871_v11 = vpop.f32.mrf.mxu1 }
 0x32c   :  { %v2858_v40 = vadd.f32 %v2857_v5, %v1165_v62 }
 0x32e   :  { %v2872_v2 = vadd.f32 %v2871_v11, %v2858_v40 }
 0x33c   :  { %v2883_v8 = vpop.f32.mrf.mxu2  ;;  %v2897_v9 = vpop.f32.mrf.mxu3 }
 0x33d   :  { %v2884_v3 = vadd.f32 %v2883_v8, %v2870_v54 }
 0x33f   :  { %v2898_v13 = vadd.f32 %v2897_v9, %v2884_v3 }
 0x341   :  { %v2905_v17 = vpack.c.bf16 %v2898_v13, %v2842_v14 }
 0x343   :  { %v2916_v23 = vunpack.c.l.bf16 %v2905_v17  ;;  %v2917_v24 = vunpack.c.h.bf16 %v2905_v17  ;;  %v3515_v7 = vpop.f32.mrf.mxu0  ;;  %v3529_v43 = vpop.f32.mrf.mxu1 }
 0x344   :  { %v2885_v18 = vpop.f32.mrf.mxu2  ;;  %v2899_v4 = vpop.f32.mrf.mxu3  ;;  %v3516_v47 = vadd.f32 %v5664_v34, %v3515_v7 }
 0x345   :  { %v2886_v19 = vadd.f32 %v2885_v18, %v2872_v2  ;;  %v2932_v27 = vmul.f32 0.20019531, %v2916_v23  ;;  %v2933_v28 = vmul.f32 0.20019531, %v2917_v24 }
 0x346   :  { %v3530_v48 = vadd.f32 %v3529_v43, %v3516_v47 }
 0x347   :  { %v2900_v25 = vadd.f32 %v2899_v4, %v2886_v19  ;;  %v2972_v35 = vmax.f32 %v2916_v23, %v2932_v27  ;;  %v2973_v36 = vmax.f32 %v2917_v24, %v2933_v28 }
 0x349   :  { %v2909_v41 = vpack.c.bf16 %v2900_v25, %v2844_v20 }
 0x34b   :  { %v2924_v29 = vunpack.c.l.bf16 %v2909_v41  ;;  %v2925_v30 = vunpack.c.h.bf16 %v2909_v41  ;;  %v3517_v44 = vpop.f32.mrf.mxu0  ;;  %v3531_v10 = vpop.f32.mrf.mxu1 }
 0x34c   :  { %v3518_v21 = vadd.f32 %v5664_v34, %v3517_v44 }
 0x34d   :  { %v2940_v32 = vmul.f32 0.20019531, %v2924_v29  ;;  %v2941_v33 = vmul.f32 0.20019531, %v2925_v30 }
 0x34e   :  { %v3532_v31 = vadd.f32 %v3531_v10, %v3518_v21 }
 0x34f   :  { %v2980_v37 = vmax.f32 %v2924_v29, %v2940_v32  ;;  %v2981_v39 = vmax.f32 %v2925_v30, %v2941_v33 }
 0x351   :  { %v2988_v6 = vpack.c.bf16 %v2980_v37, %v2972_v35  ;;  %v2989_v42 = vpack.c.bf16 %v2981_v39, %v2973_v36 }
 0x353   :  { %3598 = vmatmul.bf16.vlgmr.msra.gmra.mxu2 %v2988_v6  ;;  %3612 = vmatmul.bf16.vlgmr.msra.gmra.mxu3 %v2989_v42 }
 0x35a   :  { %v3543_v45 = vpop.f32.mrf.mxu2  ;;  %v3557_v46 = vpop.f32.mrf.mxu3 }
 0x35b   :  { %v3544_v49 = vadd.f32 %v3543_v45, %v3530_v48 }
 0x35d   :  { %v3558_v51 = vadd.f32 %v3557_v46, %v3544_v49 }
 0x362   :  { %v3545_v22 = vpop.f32.mrf.mxu2  ;;  %v3559_v58 = vpop.f32.mrf.mxu3 }
 0x363   :  { %v3546_v57 = vadd.f32 %v3545_v22, %v3532_v31 }
 0x365   :  { %v3560_v38 = vadd.f32 %v3559_v58, %v3546_v57 }
 0x390   :  { %v3571_v50 = vpop.f32.mrf.mxu0  ;;  %v3585_v56 = vpop.f32.mrf.mxu1 }
 0x391   :  { %v3572_v53 = vadd.f32 %v3571_v50, %v3558_v51 }
 0x393   :  { %v3586_v59 = vadd.f32 %v3585_v56, %v3572_v53 }
 0x398   :  { %v3573_v60 = vpop.f32.mrf.mxu0  ;;  %v3587_v0 = vpop.f32.mrf.mxu1 }
 0x399   :  { %v3574_v63 = vadd.f32 %v3573_v60, %v3560_v38 }
 0x39b   :  { %v3588_v16 = vadd.f32 %v3587_v0, %v3574_v63 }
 0x3d6   :  { %v3599_v61 = vpop.f32.mrf.mxu2  ;;  %v3613_v62 = vpop.f32.mrf.mxu3 }
 0x3d7   :  { %v3600_v52 = vadd.f32 %v3599_v61, %v3586_v59 }
 0x3d9   :  { %v3614_v26 = vadd.f32 %v3613_v62, %v3600_v52 }
 0x3db   :  { %5665 = vtanh.f32 %v3614_v26 }
 0x3de   :  { %v3601_v54 = vpop.f32.mrf.mxu2  ;;  %v3615_v8 = vpop.f32.mrf.mxu3 }
 0x3df   :  { %v3602_v5 = vadd.f32 %v3601_v54, %v3588_v16 }
 0x3e1   :  { %v5666_v9 = vpop.eup %5665  ;;  %v3616_v12 = vadd.f32 %v3615_v8, %v3602_v5 }
 0x3e2   :  { %3620 = vst [vmem:[%s6044_s13] sm:$0xff] %v5666_v9 }
 0x3e3   :  { %5667 = vtanh.f32 %v3616_v12 }
 0x3e9   :  { %v5668_v1 = vpop.eup %5667 }
 0x3ea   :  { %3621 = vst [vmem:[%s6044_s13 + $0x8] sm:$0xff] %v5668_v1 }
 0x3eb   :  { %3626 = vsyncpa [#allocation3], 1 }
 0x3ec   :  { %3627 = vsyncpa [#allocation5], 1 }
 0x3ed   :  { %3628 = vsyncpa [#allocation8], 1 }

</bundles_post_ra>
